<compile_context>
chip_gen: v6e
topology: v6e:2x2x1
jax: 0.10.0
libtpu: 0.0.40
codegen_flags: <defaults>
</compile_context>

<pallas_src>
import numpy as np
import jax
import jax.numpy as jnp
from jax.experimental import pallas as pl
from jax.experimental.pallas import tpu as pltpu


def _unit_gcn_kernel(x_ref, w12_ref, w3d_ref, w4_ref, bias_ref, a_ref,
                     tr_ref, sg_ref, y_ref, graph_ref, x3_scr, prod_scr):
    f32 = jnp.float32
    TNBV = x_ref.shape[2]            # T * NB * V
    NBV = sg_ref.shape[1]            # NB * V
    NBVV = tr_ref.shape[1]           # NB * V * V
    T = TNBV // NBV
    O = y_ref.shape[1]               # out channels
    SO2, SR = w4_ref.shape           # 2*S*O, S*R
    SO = SO2 // 2
    S = SO // O
    R = SR // S
    NB = NBVV // a_ref.shape[1]      # lane-packed samples per grid step

    # ---- packed bias column: b1|b2, b3|down, b4, alpha*b4, bn_scale, bn_bias ----
    o1 = 2 * S * R
    o2 = o1 + SO + O
    o3 = o2 + 2 * SO
    o4 = o3 + O
    b12 = bias_ref[0:o1]             # (2*S*R, 1)
    b3d = bias_ref[o1:o2]            # (S*O + O, 1)
    b4_2 = bias_ref[o2:o3]           # (2*S*O, 1)   = b4 | alpha*b4
    bn_s = bias_ref[o3:o4]           # (O, 1)
    bn_b = bias_ref[o4:o4 + O]       # (O, 1)

    # ---- packed constant 0/1 selector matrices ----
    tile_f = tr_ref[0:NBV]           # (NB*V, NB*VV)  m[nb,v] -> [nb,u,v]
    rep_f = tr_ref[NBV:2 * NBV]      # (NB*V, NB*VV)  m[nb,u] -> [nb,u,v]
    sel_t = sg_ref[0:TNBV]           # (T*NB*V, NB*V) temporal mean
    grp_f = sg_ref[TNBV:TNBV + NBVV]  # (NB*VV, NB*V) sum over v per (nb,u)

    x = x_ref[0]                     # (C_pad, T*NB*V), lanes ordered (t, nb, v)

    # ---- temporal mean via constant selector matmul ----
    xm = jnp.dot(x, sel_t, preferred_element_type=f32)                  # (C_pad, NB*V)

    # ---- conv1 | conv2 of every subset on the temporal mean ----
    m12 = jnp.dot(w12_ref[...], xm, preferred_element_type=f32) + b12   # (2SR, NB*V)
    m1 = m12[:S * R]
    m2 = m12[S * R:]

    # ---- adaptive graph: tanh(m1[u] - m2[v]) over flattened (nb,u,v) lanes ----
    m1e = jnp.dot(m1, rep_f, preferred_element_type=f32)                # (SR, NB*VV)
    m2e = jnp.dot(m2, tile_f, preferred_element_type=f32)               # (SR, NB*VV)
    g_all = jnp.tanh(m1e - m2e)

    # ---- conv4 of all subsets AND alpha*conv4 in one stacked block-diag matmul ----
    g4_2 = jnp.dot(w4_ref[...], g_all, preferred_element_type=f32) + b4_2  # (2SO, NB*VV)
    g4 = g4_2[:SO]
    graph_ref[0] = g4                                                   # single dense store

    # ---- graph_c = alpha*graph + A  (A tiled over NB lane-blocks in-kernel) ----
    a = a_ref[...]                                                      # (SO, VV)
    a_t = a if NB == 1 else jnp.concatenate([a] * NB, axis=1)           # (SO, NB*VV)
    gc = g4_2[SO:] + a_t

    # ---- conv3 of all subsets + residual down conv, kept in VMEM scratch ----
    x3_scr[...] = jnp.dot(w3d_ref[...], x, preferred_element_type=f32) + b3d

    # ---- per-frame tile-expansion; products stacked in VMEM; ONE deep group-sum
    #      matmul over all frames (contraction NB*VV) ----
    for t in range(T):               # TODO(synk): at large T use lax.fori_loop(unroll=k)
        x3_t = x3_scr[0:SO, t * NBV:(t + 1) * NBV]                      # (SO, NB*V)
        xt_exp = jnp.dot(x3_t, tile_f, preferred_element_type=f32)      # (SO, NB*VV)
        prod_scr[t * SO:(t + 1) * SO] = gc * xt_exp
    y_stack = jnp.dot(prod_scr[...], grp_f, preferred_element_type=f32)  # (T*SO, NB*V)

    # ---- subset sum + BN + residual + ReLU, direct stores at static lane slices ----
    for t in range(T):
        yt = y_stack[t * SO:(t + 1) * SO]                               # (SO, NB*V)
        y_t = yt[0:O]
        for i in range(1, S):
            y_t = y_t + yt[i * O:(i + 1) * O]
        res_t = x3_scr[SO:SO + O, t * NBV:(t + 1) * NBV]                # down(x), frame t
        out_t = y_t * bn_s + bn_b + res_t
        y_ref[0, :, t * NBV:(t + 1) * NBV] = jnp.maximum(out_t, 0.0)


def unit_gcn_forward(x, params, samples_per_step=None):
    """x: (N, C_in, T, V) float32. Returns (y, graphs) like unit_gcn.forward."""
    N, C_in, T, V = x.shape
    S, R, C_pad = params['w1'].shape
    O = params['w3'].shape[1]
    VV = V * V

    if samples_per_step is None:
        samples_per_step = max(1, min(8, N // 2)) if N >= 2 else 1
    NB = samples_per_step
    G = -(-N // NB)                      # grid length (ceil)
    N_pad = G * NB
    NBV, NBVV, TNBV = NB * V, NB * VV, T * NB * V

    # ---- pack x: pad channels->C_pad and batch->N_pad; lanes ordered (t, nb, v) ----
    xp = jnp.zeros((N_pad, C_pad, T, V), jnp.float32)
    xp = xp.at[:N, :C_in].set(x.astype(jnp.float32))
    x_pack = (xp.reshape(G, NB, C_pad, T, V)
                .transpose(0, 2, 3, 1, 4)
                .reshape(G, C_pad, TNBV))

    alpha = params['alpha'][0]

    # ---- parameter packing (host/XLA side, outside the kernel) ----
    w12 = jnp.concatenate([params['w1'].reshape(S * R, C_pad),
                           params['w2'].reshape(S * R, C_pad)], axis=0)
    w3d = jnp.concatenate([params['w3'].reshape(S * O, C_pad),
                           params['wd_eff']], axis=0)
    w4blk = jnp.zeros((S * O, S * R), jnp.float32)
    for i in range(S):
        w4blk = w4blk.at[i * O:(i + 1) * O, i * R:(i + 1) * R].set(params['w4'][i])
    w4_2 = jnp.concatenate([w4blk, alpha * w4blk], axis=0)      # conv4 | alpha*conv4

    b12 = jnp.concatenate([params['b1'].reshape(S * R, 1),
                           params['b2'].reshape(S * R, 1)], axis=0)
    b3d = jnp.concatenate([params['b3'].reshape(S * O, 1), params['bd_eff']], axis=0)
    b4 = params['b4'].reshape(S * O, 1)
    bias_col = jnp.concatenate(
        [b12, b3d, b4, alpha * b4, params['bn_scale'], params['bn_bias']], axis=0)

    a_rep = jnp.repeat(params['A'].reshape(S, 1, VV), O, axis=1).reshape(S * O, VV)

    # ---- constant 0/1 matrices (block-diagonal over the NB lane-packed samples) ----
    eye_v = np.eye(V, dtype=np.float32)
    tile_c = np.tile(eye_v, (1, V))                    # (V, VV)   m[v] -> [u,v]
    rep_c = np.repeat(eye_v, V, axis=1)                # (V, VV)   m[u] -> [u,v]
    grp_c = np.repeat(eye_v, V, axis=0)                # (VV, V)   sum_v per u
    eye_nb = np.eye(NB, dtype=np.float32)
    const_tr = jnp.asarray(np.concatenate(
        [np.kron(eye_nb, tile_c), np.kron(eye_nb, rep_c)], axis=0))    # (2*NB*V, NB*VV)
    const_sg = jnp.asarray(np.concatenate(
        [np.tile(np.eye(NBV, dtype=np.float32) / T, (T, 1)),           # temporal mean
         np.kron(eye_nb, grp_c)], axis=0))                             # (TNBV+NBVV, NBV)

    def inv(shape):
        return pl.BlockSpec(shape, lambda g, s=shape: (0,) * len(s))

    in_specs = [
        pl.BlockSpec((1, C_pad, TNBV), lambda g: (g, 0, 0)),   # x (lane-packed)
        inv(w12.shape),                                        # conv1 | conv2
        inv(w3d.shape),                                        # conv3 (all) | down
        inv(w4_2.shape),                                       # conv4 | alpha*conv4
        inv(bias_col.shape),                                   # all biases + bn affine
        inv(a_rep.shape),                                      # A (per-channel rows)
        inv(const_tr.shape),                                   # tile | rep constants
        inv(const_sg.shape),                                   # sel_t | group-sum constants
    ]
    out_specs = (
        pl.BlockSpec((1, O, TNBV), lambda g: (g, 0, 0)),       # y (lane-dense)
        pl.BlockSpec((1, S * O, NBVV), lambda g: (g, 0, 0)),   # graphs (lane-dense)
    )
    out_shape = (
        jax.ShapeDtypeStruct((G, O, TNBV), jnp.float32),
        jax.ShapeDtypeStruct((G, S * O, NBVV), jnp.float32),
    )
    scratch_shapes = [
        pltpu.VMEM((S * O + O, TNBV), jnp.float32),            # conv3 | down output
        pltpu.VMEM((T * S * O, NBVV), jnp.float32),            # stacked per-frame products
    ]

    y_raw, g_raw = pl.pallas_call(
        _unit_gcn_kernel,
        grid=(G,),
        in_specs=in_specs,
        out_specs=out_specs,
        out_shape=out_shape,
        scratch_shapes=scratch_shapes,
        compiler_params=pltpu.CompilerParams(
            dimension_semantics=("parallel",)),
    )(x_pack, w12, w3d, w4_2, bias_col, a_rep, const_tr, const_sg)

    y = (y_raw.reshape(G, O, T, NB, V).transpose(0, 3, 1, 2, 4)
         .reshape(N_pad, O, T, V)[:N])
    graphs = (g_raw.reshape(G, S, O, NB, V, V).transpose(0, 3, 1, 2, 4, 5)
              .reshape(N_pad, S, O, V, V)[:N])
    return y, graphs


def init_params(key, C_in, C_out, S, V, C_pad):
    """Deterministic init matching unit_gcn.__init__ (kaiming fan_out convs,
    zero conv biases, bn(y) gamma=1e-6, down-bn gamma=1, alpha=0, PA=A)."""
    R = 8 if C_in in (3, 9) else C_in // 8
    ks = jax.random.split(key, 8)
    eps = 1e-5

    def kaiming(k, shape, fan_out):
        return jax.random.normal(k, shape, jnp.float32) * np.sqrt(2.0 / fan_out)

    def pad_in(w):                       # (..., C_in) -> (..., C_pad)
        out = jnp.zeros(w.shape[:-1] + (C_pad,), jnp.float32)
        return out.at[..., :C_in].set(w)

    w1 = kaiming(ks[0], (S, R, C_in), R)
    w2 = kaiming(ks[1], (S, R, C_in), R)
    w3 = kaiming(ks[2], (S, C_out, C_in), C_out)
    w4 = kaiming(ks[3], (S, C_out, R), C_out)
    A = jax.random.normal(ks[4], (S, V, V), jnp.float32) * 0.1

    bn_scale = jnp.full((C_out, 1), 1e-6 / np.sqrt(1.0 + eps), jnp.float32)
    bn_bias = jnp.zeros((C_out, 1), jnp.float32)

    wd = kaiming(ks[5], (C_out, C_in), C_out)            # down 1x1 conv
    dbn = 1.0 / np.sqrt(1.0 + eps)                       # down BN (gamma=1) folded
    wd_eff = pad_in(wd * dbn)
    bd_eff = jnp.zeros((C_out, 1), jnp.float32)

    return dict(
        w1=pad_in(w1), w2=pad_in(w2), w3=pad_in(w3), w4=w4,
        b1=jnp.zeros((S, R, 1), jnp.float32), b2=jnp.zeros((S, R, 1), jnp.float32),
        b3=jnp.zeros((S, C_out, 1), jnp.float32), b4=jnp.zeros((S, C_out, 1), jnp.float32),
        A=A, alpha=jnp.zeros((1,), jnp.float32),
        bn_scale=bn_scale, bn_bias=bn_bias, wd_eff=wd_eff, bd_eff=bd_eff,
        # unpadded copies for the pure-JAX reference
        w1_raw=w1, w2_raw=w2, w3_raw=w3)


def reference_forward(x, p):
    """Pure-JAX reference of unit_gcn.forward (same inference-mode BN folding)."""
    S = p['A'].shape[0]
    C_in = x.shape[1]
    alpha = p['alpha'][0]
    hp = jax.lax.Precision.HIGHEST
    y = None
    graphs = []
    for i in range(S):
        w1, w2, w3, w4 = p['w1_raw'][i], p['w2_raw'][i], p['w3_raw'][i], p['w4'][i]
        b1 = p['b1'][i].reshape(1, -1, 1, 1)
        b2 = p['b2'][i].reshape(1, -1, 1, 1)
        b3 = p['b3'][i].reshape(1, -1, 1, 1)
        b4 = p['b4'][i].reshape(1, -1, 1, 1)
        x1 = jnp.einsum('rc,nctv->nrtv', w1, x, precision=hp) + b1
        x2 = jnp.einsum('rc,nctv->nrtv', w2, x, precision=hp) + b2
        x3 = jnp.einsum('oc,nctv->notv', w3, x, precision=hp) + b3
        g = jnp.tanh(x1.mean(axis=2)[..., :, None] - x2.mean(axis=2)[..., None, :])
        g4 = jnp.einsum('or,nruv->nouv', w4, g, precision=hp) + b4
        graphs.append(g4)
        gc = g4 * alpha + p['A'][i][None, None]
        z = jnp.einsum('ncuv,nctv->nctu', gc, x3, precision=hp)
        y = z if y is None else y + z
    y = y * p['bn_scale'].reshape(1, -1, 1, 1) + p['bn_bias'].reshape(1, -1, 1, 1)
    r = (jnp.einsum('oc,nctv->notv', p['wd_eff'][:, :C_in], x, precision=hp)
         + p['bd_eff'].reshape(1, -1, 1, 1))
    return jnp.maximum(y + r, 0.0), jnp.stack(graphs, axis=1)


if __name__ == "__main__":
    N, C_in, C_out, T, V, S = 4, 3, 16, 8, 16, 3
    C_pad = 8

    key = jax.random.PRNGKey(0)
    kx, kp, k1, k2 = jax.random.split(key, 4)
    x = jax.random.normal(kx, (N, C_in, T, V), jnp.float32)
    params = init_params(kp, C_in, C_out, S, V, C_pad)
    # Exercise both branches meaningfully (reviewer note: with bn gamma=1e-6 the
    # graph branch is invisible next to the residual) and a nonzero alpha so the
    # adaptive graph*alpha + A path is exercised.
    params['alpha'] = jnp.array([0.5], jnp.float32)
    params['bn_scale'] = 0.5 + jax.random.uniform(k1, (C_out, 1), dtype=jnp.float32)
    params['bn_bias'] = 0.1 * jax.random.normal(k2, (C_out, 1), jnp.float32)

    # NB=2 samples per grid step -> grid length 2 (lane-packing + parallel grid).
    y, graphs = unit_gcn_forward(x, params, samples_per_step=2)
    jax.block_until_ready((y, graphs))

    y_ref, g_ref = reference_forward(x, params)
    assert y.shape == (N, C_out, T, V) and graphs.shape == (N, S, C_out, V, V)
    assert bool(jnp.allclose(y, y_ref, rtol=1e-3, atol=1e-3)), \
        float(jnp.max(jnp.abs(y - y_ref)))
    assert bool(jnp.allclose(graphs, g_ref, rtol=1e-3, atol=1e-3)), \
        float(jnp.max(jnp.abs(graphs - g_ref)))

    print("KERNEL_OK")
</pallas_src>

<mosaic_0001>
module attributes {stable_mosaic.version = 11 : i64} {
  func.func @_unit_gcn_kernel(%arg0: i32, %arg1: memref<1x8x256xf32, #tpu.memory_space<vmem>>, %arg2: memref<48x8xf32, #tpu.memory_space<vmem>>, %arg3: memref<64x8xf32, #tpu.memory_space<vmem>>, %arg4: memref<96x24xf32, #tpu.memory_space<vmem>>, %arg5: memref<240x1xf32, #tpu.memory_space<vmem>>, %arg6: memref<48x256xf32, #tpu.memory_space<vmem>>, %arg7: memref<64x512xf32, #tpu.memory_space<vmem>>, %arg8: memref<768x32xf32, #tpu.memory_space<vmem>>, %arg9: memref<1x16x256xf32, #tpu.memory_space<vmem>>, %arg10: memref<1x48x512xf32, #tpu.memory_space<vmem>>, %arg11: memref<64x256xf32, #tpu.memory_space<vmem>>, %arg12: memref<384x512xf32, #tpu.memory_space<vmem>>) attributes {dimension_semantics = [#tpu.dimension_semantics<parallel>], iteration_bounds = array<i64: 2>, scalar_prefetch = 0 : i64, scratch_operands = 2 : i64, tpu.core_type = #tpu.core_type<tc>, window_params = [{transform_indices = @transform_0, window_bounds = array<i64: 1, 8, 256>}, {pipeline_mode = #tpu.pipeline_mode<synchronous>, transform_indices = @transform_1, window_bounds = array<i64: 48, 8>}, {pipeline_mode = #tpu.pipeline_mode<synchronous>, transform_indices = @transform_2, window_bounds = array<i64: 64, 8>}, {pipeline_mode = #tpu.pipeline_mode<synchronous>, transform_indices = @transform_3, window_bounds = array<i64: 96, 24>}, {pipeline_mode = #tpu.pipeline_mode<synchronous>, transform_indices = @transform_4, window_bounds = array<i64: 240, 1>}, {pipeline_mode = #tpu.pipeline_mode<synchronous>, transform_indices = @transform_5, window_bounds = array<i64: 48, 256>}, {pipeline_mode = #tpu.pipeline_mode<synchronous>, transform_indices = @transform_6, window_bounds = array<i64: 64, 512>}, {pipeline_mode = #tpu.pipeline_mode<synchronous>, transform_indices = @transform_7, window_bounds = array<i64: 768, 32>}, {transform_indices = @transform_8, window_bounds = array<i64: 1, 16, 256>}, {transform_indices = @transform_9, window_bounds = array<i64: 1, 48, 512>}]} {
    %c0 = arith.constant 0 : index
    %c0_0 = arith.constant 0 : index
    %0 = vector.load %arg5[%c0, %c0_0] : memref<240x1xf32, #tpu.memory_space<vmem>>, vector<48x1xf32>
    %c48 = arith.constant 48 : index
    %c0_1 = arith.constant 0 : index
    %1 = vector.load %arg5[%c48, %c0_1] : memref<240x1xf32, #tpu.memory_space<vmem>>, vector<64x1xf32>
    %c112 = arith.constant 112 : index
    %c0_2 = arith.constant 0 : index
    %2 = vector.load %arg5[%c112, %c0_2] : memref<240x1xf32, #tpu.memory_space<vmem>>, vector<96x1xf32>
    %c208 = arith.constant 208 : index
    %c0_3 = arith.constant 0 : index
    %3 = vector.load %arg5[%c208, %c0_3] : memref<240x1xf32, #tpu.memory_space<vmem>>, vector<16x1xf32>
    %c224 = arith.constant 224 : index
    %c0_4 = arith.constant 0 : index
    %4 = vector.load %arg5[%c224, %c0_4] : memref<240x1xf32, #tpu.memory_space<vmem>>, vector<16x1xf32>
    %c0_5 = arith.constant 0 : index
    %c0_6 = arith.constant 0 : index
    %5 = vector.load %arg7[%c0_5, %c0_6] : memref<64x512xf32, #tpu.memory_space<vmem>>, vector<32x512xf32>
    %c32 = arith.constant 32 : index
    %c0_7 = arith.constant 0 : index
    %6 = vector.load %arg7[%c32, %c0_7] : memref<64x512xf32, #tpu.memory_space<vmem>>, vector<32x512xf32>
    %c0_8 = arith.constant 0 : index
    %c0_9 = arith.constant 0 : index
    %7 = vector.load %arg8[%c0_8, %c0_9] : memref<768x32xf32, #tpu.memory_space<vmem>>, vector<256x32xf32>
    %c256 = arith.constant 256 : index
    %c0_10 = arith.constant 0 : index
    %8 = vector.load %arg8[%c256, %c0_10] : memref<768x32xf32, #tpu.memory_space<vmem>>, vector<512x32xf32>
    %c0_11 = arith.constant 0 : index
    %c0_12 = arith.constant 0 : index
    %c0_13 = arith.constant 0 : index
    %9 = vector.load %arg1[%c0_11, %c0_12, %c0_13] : memref<1x8x256xf32, #tpu.memory_space<vmem>>, vector<1x8x256xf32>
    %10 = vector.shape_cast %9 : vector<1x8x256xf32> to vector<8x256xf32>
    %cst = arith.constant dense<0.000000e+00> : vector<8x32xf32>
    %11 = tpu.matmul %10, %7, %cst {dimension_numbers = #tpu.dot_dimension_numbers<[1], [0], [0], [1], [0, 0, 1, 1], [], []>} : vector<8x256xf32>, vector<256x32xf32>, vector<8x32xf32> -> vector<8x32xf32>
    %c0_14 = arith.constant 0 : index
    %c0_15 = arith.constant 0 : index
    %12 = vector.load %arg2[%c0_14, %c0_15] : memref<48x8xf32, #tpu.memory_space<vmem>>, vector<48x8xf32>
    %cst_16 = arith.constant dense<0.000000e+00> : vector<48x32xf32>
    %13 = tpu.matmul %12, %11, %cst_16 {dimension_numbers = #tpu.dot_dimension_numbers<[1], [0], [0], [1], [0, 0, 1, 1], [], []>} : vector<48x8xf32>, vector<8x32xf32>, vector<48x32xf32> -> vector<48x32xf32>
    %14 = vector.broadcast %0 : vector<48x1xf32> to vector<48x32xf32>
    %15 = arith.addf %13, %14 : vector<48x32xf32>
    %16 = vector.extract_strided_slice %15 {offsets = [0, 0], sizes = [24, 32], strides = [1, 1]} : vector<48x32xf32> to vector<24x32xf32>
    %17 = vector.extract_strided_slice %15 {offsets = [24, 0], sizes = [24, 32], strides = [1, 1]} : vector<48x32xf32> to vector<24x32xf32>
    %cst_17 = arith.constant dense<0.000000e+00> : vector<24x512xf32>
    %18 = tpu.matmul %16, %6, %cst_17 {dimension_numbers = #tpu.dot_dimension_numbers<[1], [0], [0], [1], [0, 0, 1, 1], [], []>} : vector<24x32xf32>, vector<32x512xf32>, vector<24x512xf32> -> vector<24x512xf32>
    %cst_18 = arith.constant dense<0.000000e+00> : vector<24x512xf32>
    %19 = tpu.matmul %17, %5, %cst_18 {dimension_numbers = #tpu.dot_dimension_numbers<[1], [0], [0], [1], [0, 0, 1, 1], [], []>} : vector<24x32xf32>, vector<32x512xf32>, vector<24x512xf32> -> vector<24x512xf32>
    %20 = arith.subf %18, %19 : vector<24x512xf32>
    %21 = math.tanh %20 : vector<24x512xf32>
    %c0_19 = arith.constant 0 : index
    %c0_20 = arith.constant 0 : index
    %22 = vector.load %arg4[%c0_19, %c0_20] : memref<96x24xf32, #tpu.memory_space<vmem>>, vector<96x24xf32>
    %cst_21 = arith.constant dense<0.000000e+00> : vector<96x512xf32>
    %23 = tpu.matmul %22, %21, %cst_21 {dimension_numbers = #tpu.dot_dimension_numbers<[1], [0], [0], [1], [0, 0, 1, 1], [], []>} : vector<96x24xf32>, vector<24x512xf32>, vector<96x512xf32> -> vector<96x512xf32>
    %24 = vector.broadcast %2 : vector<96x1xf32> to vector<96x512xf32>
    %25 = arith.addf %23, %24 : vector<96x512xf32>
    %26 = vector.extract_strided_slice %25 {offsets = [0, 0], sizes = [48, 512], strides = [1, 1]} : vector<96x512xf32> to vector<48x512xf32>
    %c0_22 = arith.constant 0 : index
    %c0_23 = arith.constant 0 : index
    %c0_24 = arith.constant 0 : index
    %27 = vector.load %arg10[%c0_22, %c0_23, %c0_24] : memref<1x48x512xf32, #tpu.memory_space<vmem>>, vector<1x48x512xf32>
    %28 = vector.shape_cast %27 : vector<1x48x512xf32> to vector<48x512xf32>
    %29 = vector.shape_cast %26 : vector<48x512xf32> to vector<1x48x512xf32>
    tpu.vector_store %arg10[%c0_22, %c0_23, %c0_24], %29 {strides = array<i32>} : memref<1x48x512xf32, #tpu.memory_space<vmem>>, vector<1x48x512xf32>,
    %c0_25 = arith.constant 0 : index
    %c0_26 = arith.constant 0 : index
    %30 = vector.load %arg6[%c0_25, %c0_26] : memref<48x256xf32, #tpu.memory_space<vmem>>, vector<48x256xf32>
    %31 = tpu.concatenate %30, %30 in 1 : vector<48x256xf32>, vector<48x256xf32> -> vector<48x512xf32>
    %32 = vector.extract_strided_slice %25 {offsets = [48, 0], sizes = [48, 512], strides = [1, 1]} : vector<96x512xf32> to vector<48x512xf32>
    %33 = arith.addf %32, %31 : vector<48x512xf32>
    %c0_27 = arith.constant 0 : index
    %c0_28 = arith.constant 0 : index
    %34 = vector.load %arg3[%c0_27, %c0_28] : memref<64x8xf32, #tpu.memory_space<vmem>>, vector<64x8xf32>
    %cst_29 = arith.constant dense<0.000000e+00> : vector<64x256xf32>
    %35 = tpu.matmul %34, %10, %cst_29 {dimension_numbers = #tpu.dot_dimension_numbers<[1], [0], [0], [1], [0, 0, 1, 1], [], []>} : vector<64x8xf32>, vector<8x256xf32>, vector<64x256xf32> -> vector<64x256xf32>
    %36 = vector.broadcast %1 : vector<64x1xf32> to vector<64x256xf32>
    %37 = arith.addf %35, %36 : vector<64x256xf32>
    %c0_30 = arith.constant 0 : index
    %c0_31 = arith.constant 0 : index
    %38 = vector.load %arg11[%c0_30, %c0_31] : memref<64x256xf32, #tpu.memory_space<vmem>>, vector<64x256xf32>
    tpu.vector_store %arg11[%c0_30, %c0_31], %37 {strides = array<i32>} : memref<64x256xf32, #tpu.memory_space<vmem>>, vector<64x256xf32>,
    %c0_32 = arith.constant 0 : index
    %c0_33 = arith.constant 0 : index
    %39 = vector.load %arg11[%c0_32, %c0_33] : memref<64x256xf32, #tpu.memory_space<vmem>>, vector<48x32xf32>
    %cst_34 = arith.constant dense<0.000000e+00> : vector<48x512xf32>
    %40 = tpu.matmul %39, %5, %cst_34 {dimension_numbers = #tpu.dot_dimension_numbers<[1], [0], [0], [1], [0, 0, 1, 1], [], []>} : vector<48x32xf32>, vector<32x512xf32>, vector<48x512xf32> -> vector<48x512xf32>
    %41 = arith.mulf %33, %40 : vector<48x512xf32>
    %c0_35 = arith.constant 0 : index
    %c0_36 = arith.constant 0 : index
    %42 = vector.load %arg12[%c0_35, %c0_36] : memref<384x512xf32, #tpu.memory_space<vmem>>, vector<48x512xf32>
    tpu.vector_store %arg12[%c0_35, %c0_36], %41 {strides = array<i32>} : memref<384x512xf32, #tpu.memory_space<vmem>>, vector<48x512xf32>,
    %c0_37 = arith.constant 0 : index
    %c32_38 = arith.constant 32 : index
    %43 = vector.load %arg11[%c0_37, %c32_38] : memref<64x256xf32, #tpu.memory_space<vmem>>, vector<48x32xf32>
    %cst_39 = arith.constant dense<0.000000e+00> : vector<48x512xf32>
    %44 = tpu.matmul %43, %5, %cst_39 {dimension_numbers = #tpu.dot_dimension_numbers<[1], [0], [0], [1], [0, 0, 1, 1], [], []>} : vector<48x32xf32>, vector<32x512xf32>, vector<48x512xf32> -> vector<48x512xf32>
    %45 = arith.mulf %33, %44 : vector<48x512xf32>
    %c48_40 = arith.constant 48 : index
    %c0_41 = arith.constant 0 : index
    %46 = vector.load %arg12[%c48_40, %c0_41] : memref<384x512xf32, #tpu.memory_space<vmem>>, vector<48x512xf32>
    tpu.vector_store %arg12[%c48_40, %c0_41], %45 {strides = array<i32>} : memref<384x512xf32, #tpu.memory_space<vmem>>, vector<48x512xf32>,
    %c0_42 = arith.constant 0 : index
    %c64 = arith.constant 64 : index
    %47 = vector.load %arg11[%c0_42, %c64] : memref<64x256xf32, #tpu.memory_space<vmem>>, vector<48x32xf32>
    %cst_43 = arith.constant dense<0.000000e+00> : vector<48x512xf32>
    %48 = tpu.matmul %47, %5, %cst_43 {dimension_numbers = #tpu.dot_dimension_numbers<[1], [0], [0], [1], [0, 0, 1, 1], [], []>} : vector<48x32xf32>, vector<32x512xf32>, vector<48x512xf32> -> vector<48x512xf32>
    %49 = arith.mulf %33, %48 : vector<48x512xf32>
    %c96 = arith.constant 96 : index
    %c0_44 = arith.constant 0 : index
    %50 = vector.load %arg12[%c96, %c0_44] : memref<384x512xf32, #tpu.memory_space<vmem>>, vector<48x512xf32>
    tpu.vector_store %arg12[%c96, %c0_44], %49 {strides = array<i32>} : memref<384x512xf32, #tpu.memory_space<vmem>>, vector<48x512xf32>,
    %c0_45 = arith.constant 0 : index
    %c96_46 = arith.constant 96 : index
    %51 = vector.load %arg11[%c0_45, %c96_46] : memref<64x256xf32, #tpu.memory_space<vmem>>, vector<48x32xf32>
    %cst_47 = arith.constant dense<0.000000e+00> : vector<48x512xf32>
    %52 = tpu.matmul %51, %5, %cst_47 {dimension_numbers = #tpu.dot_dimension_numbers<[1], [0], [0], [1], [0, 0, 1, 1], [], []>} : vector<48x32xf32>, vector<32x512xf32>, vector<48x512xf32> -> vector<48x512xf32>
    %53 = arith.mulf %33, %52 : vector<48x512xf32>
    %c144 = arith.constant 144 : index
    %c0_48 = arith.constant 0 : index
    %54 = vector.load %arg12[%c144, %c0_48] : memref<384x512xf32, #tpu.memory_space<vmem>>, vector<48x512xf32>
    tpu.vector_store %arg12[%c144, %c0_48], %53 {strides = array<i32>} : memref<384x512xf32, #tpu.memory_space<vmem>>, vector<48x512xf32>,
    %c0_49 = arith.constant 0 : index
    %c128 = arith.constant 128 : index
    %55 = vector.load %arg11[%c0_49, %c128] : memref<64x256xf32, #tpu.memory_space<vmem>>, vector<48x32xf32>
    %cst_50 = arith.constant dense<0.000000e+00> : vector<48x512xf32>
    %56 = tpu.matmul %55, %5, %cst_50 {dimension_numbers = #tpu.dot_dimension_numbers<[1], [0], [0], [1], [0, 0, 1, 1], [], []>} : vector<48x32xf32>, vector<32x512xf32>, vector<48x512xf32> -> vector<48x512xf32>
    %57 = arith.mulf %33, %56 : vector<48x512xf32>
    %c192 = arith.constant 192 : index
    %c0_51 = arith.constant 0 : index
    %58 = vector.load %arg12[%c192, %c0_51] : memref<384x512xf32, #tpu.memory_space<vmem>>, vector<48x512xf32>
    tpu.vector_store %arg12[%c192, %c0_51], %57 {strides = array<i32>} : memref<384x512xf32, #tpu.memory_space<vmem>>, vector<48x512xf32>,
    %c0_52 = arith.constant 0 : index
    %c160 = arith.constant 160 : index
    %59 = vector.load %arg11[%c0_52, %c160] : memref<64x256xf32, #tpu.memory_space<vmem>>, vector<48x32xf32>
    %cst_53 = arith.constant dense<0.000000e+00> : vector<48x512xf32>
    %60 = tpu.matmul %59, %5, %cst_53 {dimension_numbers = #tpu.dot_dimension_numbers<[1], [0], [0], [1], [0, 0, 1, 1], [], []>} : vector<48x32xf32>, vector<32x512xf32>, vector<48x512xf32> -> vector<48x512xf32>
    %61 = arith.mulf %33, %60 : vector<48x512xf32>
    %c240 = arith.constant 240 : index
    %c0_54 = arith.constant 0 : index
    %62 = vector.load %arg12[%c240, %c0_54] : memref<384x512xf32, #tpu.memory_space<vmem>>, vector<48x512xf32>
    tpu.vector_store %arg12[%c240, %c0_54], %61 {strides = array<i32>} : memref<384x512xf32, #tpu.memory_space<vmem>>, vector<48x512xf32>,
    %c0_55 = arith.constant 0 : index
    %c192_56 = arith.constant 192 : index
    %63 = vector.load %arg11[%c0_55, %c192_56] : memref<64x256xf32, #tpu.memory_space<vmem>>, vector<48x32xf32>
    %cst_57 = arith.constant dense<0.000000e+00> : vector<48x512xf32>
    %64 = tpu.matmul %63, %5, %cst_57 {dimension_numbers = #tpu.dot_dimension_numbers<[1], [0], [0], [1], [0, 0, 1, 1], [], []>} : vector<48x32xf32>, vector<32x512xf32>, vector<48x512xf32> -> vector<48x512xf32>
    %65 = arith.mulf %33, %64 : vector<48x512xf32>
    %c288 = arith.constant 288 : index
    %c0_58 = arith.constant 0 : index
    %66 = vector.load %arg12[%c288, %c0_58] : memref<384x512xf32, #tpu.memory_space<vmem>>, vector<48x512xf32>
    tpu.vector_store %arg12[%c288, %c0_58], %65 {strides = array<i32>} : memref<384x512xf32, #tpu.memory_space<vmem>>, vector<48x512xf32>,
    %c0_59 = arith.constant 0 : index
    %c224_60 = arith.constant 224 : index
    %67 = vector.load %arg11[%c0_59, %c224_60] : memref<64x256xf32, #tpu.memory_space<vmem>>, vector<48x32xf32>
    %cst_61 = arith.constant dense<0.000000e+00> : vector<48x512xf32>
    %68 = tpu.matmul %67, %5, %cst_61 {dimension_numbers = #tpu.dot_dimension_numbers<[1], [0], [0], [1], [0, 0, 1, 1], [], []>} : vector<48x32xf32>, vector<32x512xf32>, vector<48x512xf32> -> vector<48x512xf32>
    %69 = arith.mulf %33, %68 : vector<48x512xf32>
    %c336 = arith.constant 336 : index
    %c0_62 = arith.constant 0 : index
    %70 = vector.load %arg12[%c336, %c0_62] : memref<384x512xf32, #tpu.memory_space<vmem>>, vector<48x512xf32>
    tpu.vector_store %arg12[%c336, %c0_62], %69 {strides = array<i32>} : memref<384x512xf32, #tpu.memory_space<vmem>>, vector<48x512xf32>,
    %c0_63 = arith.constant 0 : index
    %c0_64 = arith.constant 0 : index
    %71 = vector.load %arg12[%c0_63, %c0_64] : memref<384x512xf32, #tpu.memory_space<vmem>>, vector<384x512xf32>
    %cst_65 = arith.constant dense<0.000000e+00> : vector<384x32xf32>
    %72 = tpu.matmul %71, %8, %cst_65 {dimension_numbers = #tpu.dot_dimension_numbers<[1], [0], [0], [1], [0, 0, 1, 1], [], []>} : vector<384x512xf32>, vector<512x32xf32>, vector<384x32xf32> -> vector<384x32xf32>
    %73 = vector.extract_strided_slice %72 {offsets = [0, 0], sizes = [48, 32], strides = [1, 1]} : vector<384x32xf32> to vector<48x32xf32>
    %74 = vector.extract_strided_slice %73 {offsets = [0, 0], sizes = [16, 32], strides = [1, 1]} : vector<48x32xf32> to vector<16x32xf32>
    %75 = vector.extract_strided_slice %73 {offsets = [16, 0], sizes = [16, 32], strides = [1, 1]} : vector<48x32xf32> to vector<16x32xf32>
    %76 = arith.addf %74, %75 : vector<16x32xf32>
    %77 = vector.extract_strided_slice %73 {offsets = [32, 0], sizes = [16, 32], strides = [1, 1]} : vector<48x32xf32> to vector<16x32xf32>
    %78 = arith.addf %76, %77 : vector<16x32xf32>
    %c48_66 = arith.constant 48 : index
    %c0_67 = arith.constant 0 : index
    %79 = vector.load %arg11[%c48_66, %c0_67] : memref<64x256xf32, #tpu.memory_space<vmem>>, vector<16x32xf32>
    %80 = vector.broadcast %3 : vector<16x1xf32> to vector<16x32xf32>
    %81 = arith.mulf %78, %80 : vector<16x32xf32>
    %82 = vector.broadcast %4 : vector<16x1xf32> to vector<16x32xf32>
    %83 = arith.addf %81, %82 : vector<16x32xf32>
    %84 = arith.addf %83, %79 : vector<16x32xf32>
    %cst_68 = arith.constant 0.000000e+00 : f32
    %85 = vector.broadcast %cst_68 : f32 to vector<16x32xf32>
    %86 = arith.maximumf %84, %85 : vector<16x32xf32>
    %c0_69 = arith.constant 0 : index
    %c0_70 = arith.constant 0 : index
    %c0_71 = arith.constant 0 : index
    %87 = vector.load %arg9[%c0_69, %c0_70, %c0_71] : memref<1x16x256xf32, #tpu.memory_space<vmem>>, vector<1x16x32xf32>
    %88 = vector.shape_cast %87 : vector<1x16x32xf32> to vector<16x32xf32>
    %89 = vector.shape_cast %86 : vector<16x32xf32> to vector<1x16x32xf32>
    tpu.vector_store %arg9[%c0_69, %c0_70, %c0_71], %89 {strides = array<i32>} : memref<1x16x256xf32, #tpu.memory_space<vmem>>, vector<1x16x32xf32>,
    %90 = vector.extract_strided_slice %72 {offsets = [48, 0], sizes = [48, 32], strides = [1, 1]} : vector<384x32xf32> to vector<48x32xf32>
    %91 = vector.extract_strided_slice %90 {offsets = [0, 0], sizes = [16, 32], strides = [1, 1]} : vector<48x32xf32> to vector<16x32xf32>
    %92 = vector.extract_strided_slice %90 {offsets = [16, 0], sizes = [16, 32], strides = [1, 1]} : vector<48x32xf32> to vector<16x32xf32>
    %93 = arith.addf %91, %92 : vector<16x32xf32>
    %94 = vector.extract_strided_slice %90 {offsets = [32, 0], sizes = [16, 32], strides = [1, 1]} : vector<48x32xf32> to vector<16x32xf32>
    %95 = arith.addf %93, %94 : vector<16x32xf32>
    %c48_72 = arith.constant 48 : index
    %c32_73 = arith.constant 32 : index
    %96 = vector.load %arg11[%c48_72, %c32_73] : memref<64x256xf32, #tpu.memory_space<vmem>>, vector<16x32xf32>
    %97 = vector.broadcast %3 : vector<16x1xf32> to vector<16x32xf32>
    %98 = arith.mulf %95, %97 : vector<16x32xf32>
    %99 = vector.broadcast %4 : vector<16x1xf32> to vector<16x32xf32>
    %100 = arith.addf %98, %99 : vector<16x32xf32>
    %101 = arith.addf %100, %96 : vector<16x32xf32>
    %cst_74 = arith.constant 0.000000e+00 : f32
    %102 = vector.broadcast %cst_74 : f32 to vector<16x32xf32>
    %103 = arith.maximumf %101, %102 : vector<16x32xf32>
    %c0_75 = arith.constant 0 : index
    %c0_76 = arith.constant 0 : index
    %c32_77 = arith.constant 32 : index
    %104 = vector.load %arg9[%c0_75, %c0_76, %c32_77] : memref<1x16x256xf32, #tpu.memory_space<vmem>>, vector<1x16x32xf32>
    %105 = vector.shape_cast %104 : vector<1x16x32xf32> to vector<16x32xf32>
    %106 = vector.shape_cast %103 : vector<16x32xf32> to vector<1x16x32xf32>
    tpu.vector_store %arg9[%c0_75, %c0_76, %c32_77], %106 {strides = array<i32>} : memref<1x16x256xf32, #tpu.memory_space<vmem>>, vector<1x16x32xf32>,
    %107 = vector.extract_strided_slice %72 {offsets = [96, 0], sizes = [48, 32], strides = [1, 1]} : vector<384x32xf32> to vector<48x32xf32>
    %108 = vector.extract_strided_slice %107 {offsets = [0, 0], sizes = [16, 32], strides = [1, 1]} : vector<48x32xf32> to vector<16x32xf32>
    %109 = vector.extract_strided_slice %107 {offsets = [16, 0], sizes = [16, 32], strides = [1, 1]} : vector<48x32xf32> to vector<16x32xf32>
    %110 = arith.addf %108, %109 : vector<16x32xf32>
    %111 = vector.extract_strided_slice %107 {offsets = [32, 0], sizes = [16, 32], strides = [1, 1]} : vector<48x32xf32> to vector<16x32xf32>
    %112 = arith.addf %110, %111 : vector<16x32xf32>
    %c48_78 = arith.constant 48 : index
    %c64_79 = arith.constant 64 : index
    %113 = vector.load %arg11[%c48_78, %c64_79] : memref<64x256xf32, #tpu.memory_space<vmem>>, vector<16x32xf32>
    %114 = vector.broadcast %3 : vector<16x1xf32> to vector<16x32xf32>
    %115 = arith.mulf %112, %114 : vector<16x32xf32>
    %116 = vector.broadcast %4 : vector<16x1xf32> to vector<16x32xf32>
    %117 = arith.addf %115, %116 : vector<16x32xf32>
    %118 = arith.addf %117, %113 : vector<16x32xf32>
    %cst_80 = arith.constant 0.000000e+00 : f32
    %119 = vector.broadcast %cst_80 : f32 to vector<16x32xf32>
    %120 = arith.maximumf %118, %119 : vector<16x32xf32>
    %c0_81 = arith.constant 0 : index
    %c0_82 = arith.constant 0 : index
    %c64_83 = arith.constant 64 : index
    %121 = vector.load %arg9[%c0_81, %c0_82, %c64_83] : memref<1x16x256xf32, #tpu.memory_space<vmem>>, vector<1x16x32xf32>
    %122 = vector.shape_cast %121 : vector<1x16x32xf32> to vector<16x32xf32>
    %123 = vector.shape_cast %120 : vector<16x32xf32> to vector<1x16x32xf32>
    tpu.vector_store %arg9[%c0_81, %c0_82, %c64_83], %123 {strides = array<i32>} : memref<1x16x256xf32, #tpu.memory_space<vmem>>, vector<1x16x32xf32>,
    %124 = vector.extract_strided_slice %72 {offsets = [144, 0], sizes = [48, 32], strides = [1, 1]} : vector<384x32xf32> to vector<48x32xf32>
    %125 = vector.extract_strided_slice %124 {offsets = [0, 0], sizes = [16, 32], strides = [1, 1]} : vector<48x32xf32> to vector<16x32xf32>
    %126 = vector.extract_strided_slice %124 {offsets = [16, 0], sizes = [16, 32], strides = [1, 1]} : vector<48x32xf32> to vector<16x32xf32>
    %127 = arith.addf %125, %126 : vector<16x32xf32>
    %128 = vector.extract_strided_slice %124 {offsets = [32, 0], sizes = [16, 32], strides = [1, 1]} : vector<48x32xf32> to vector<16x32xf32>
    %129 = arith.addf %127, %128 : vector<16x32xf32>
    %c48_84 = arith.constant 48 : index
    %c96_85 = arith.constant 96 : index
    %130 = vector.load %arg11[%c48_84, %c96_85] : memref<64x256xf32, #tpu.memory_space<vmem>>, vector<16x32xf32>
    %131 = vector.broadcast %3 : vector<16x1xf32> to vector<16x32xf32>
    %132 = arith.mulf %129, %131 : vector<16x32xf32>
    %133 = vector.broadcast %4 : vector<16x1xf32> to vector<16x32xf32>
    %134 = arith.addf %132, %133 : vector<16x32xf32>
    %135 = arith.addf %134, %130 : vector<16x32xf32>
    %cst_86 = arith.constant 0.000000e+00 : f32
    %136 = vector.broadcast %cst_86 : f32 to vector<16x32xf32>
    %137 = arith.maximumf %135, %136 : vector<16x32xf32>
    %c0_87 = arith.constant 0 : index
    %c0_88 = arith.constant 0 : index
    %c96_89 = arith.constant 96 : index
    %138 = vector.load %arg9[%c0_87, %c0_88, %c96_89] : memref<1x16x256xf32, #tpu.memory_space<vmem>>, vector<1x16x32xf32>
    %139 = vector.shape_cast %138 : vector<1x16x32xf32> to vector<16x32xf32>
    %140 = vector.shape_cast %137 : vector<16x32xf32> to vector<1x16x32xf32>
    tpu.vector_store %arg9[%c0_87, %c0_88, %c96_89], %140 {strides = array<i32>} : memref<1x16x256xf32, #tpu.memory_space<vmem>>, vector<1x16x32xf32>,
    %141 = vector.extract_strided_slice %72 {offsets = [192, 0], sizes = [48, 32], strides = [1, 1]} : vector<384x32xf32> to vector<48x32xf32>
    %142 = vector.extract_strided_slice %141 {offsets = [0, 0], sizes = [16, 32], strides = [1, 1]} : vector<48x32xf32> to vector<16x32xf32>
    %143 = vector.extract_strided_slice %141 {offsets = [16, 0], sizes = [16, 32], strides = [1, 1]} : vector<48x32xf32> to vector<16x32xf32>
    %144 = arith.addf %142, %143 : vector<16x32xf32>
    %145 = vector.extract_strided_slice %141 {offsets = [32, 0], sizes = [16, 32], strides = [1, 1]} : vector<48x32xf32> to vector<16x32xf32>
    %146 = arith.addf %144, %145 : vector<16x32xf32>
    %c48_90 = arith.constant 48 : index
    %c128_91 = arith.constant 128 : index
    %147 = vector.load %arg11[%c48_90, %c128_91] : memref<64x256xf32, #tpu.memory_space<vmem>>, vector<16x32xf32>
    %148 = vector.broadcast %3 : vector<16x1xf32> to vector<16x32xf32>
    %149 = arith.mulf %146, %148 : vector<16x32xf32>
    %150 = vector.broadcast %4 : vector<16x1xf32> to vector<16x32xf32>
    %151 = arith.addf %149, %150 : vector<16x32xf32>
    %152 = arith.addf %151, %147 : vector<16x32xf32>
    %cst_92 = arith.constant 0.000000e+00 : f32
    %153 = vector.broadcast %cst_92 : f32 to vector<16x32xf32>
    %154 = arith.maximumf %152, %153 : vector<16x32xf32>
    %c0_93 = arith.constant 0 : index
    %c0_94 = arith.constant 0 : index
    %c128_95 = arith.constant 128 : index
    %155 = vector.load %arg9[%c0_93, %c0_94, %c128_95] : memref<1x16x256xf32, #tpu.memory_space<vmem>>, vector<1x16x32xf32>
    %156 = vector.shape_cast %155 : vector<1x16x32xf32> to vector<16x32xf32>
    %157 = vector.shape_cast %154 : vector<16x32xf32> to vector<1x16x32xf32>
    tpu.vector_store %arg9[%c0_93, %c0_94, %c128_95], %157 {strides = array<i32>} : memref<1x16x256xf32, #tpu.memory_space<vmem>>, vector<1x16x32xf32>,
    %158 = vector.extract_strided_slice %72 {offsets = [240, 0], sizes = [48, 32], strides = [1, 1]} : vector<384x32xf32> to vector<48x32xf32>
    %159 = vector.extract_strided_slice %158 {offsets = [0, 0], sizes = [16, 32], strides = [1, 1]} : vector<48x32xf32> to vector<16x32xf32>
    %160 = vector.extract_strided_slice %158 {offsets = [16, 0], sizes = [16, 32], strides = [1, 1]} : vector<48x32xf32> to vector<16x32xf32>
    %161 = arith.addf %159, %160 : vector<16x32xf32>
    %162 = vector.extract_strided_slice %158 {offsets = [32, 0], sizes = [16, 32], strides = [1, 1]} : vector<48x32xf32> to vector<16x32xf32>
    %163 = arith.addf %161, %162 : vector<16x32xf32>
    %c48_96 = arith.constant 48 : index
    %c160_97 = arith.constant 160 : index
    %164 = vector.load %arg11[%c48_96, %c160_97] : memref<64x256xf32, #tpu.memory_space<vmem>>, vector<16x32xf32>
    %165 = vector.broadcast %3 : vector<16x1xf32> to vector<16x32xf32>
    %166 = arith.mulf %163, %165 : vector<16x32xf32>
    %167 = vector.broadcast %4 : vector<16x1xf32> to vector<16x32xf32>
    %168 = arith.addf %166, %167 : vector<16x32xf32>
    %169 = arith.addf %168, %164 : vector<16x32xf32>
    %cst_98 = arith.constant 0.000000e+00 : f32
    %170 = vector.broadcast %cst_98 : f32 to vector<16x32xf32>
    %171 = arith.maximumf %169, %170 : vector<16x32xf32>
    %c0_99 = arith.constant 0 : index
    %c0_100 = arith.constant 0 : index
    %c160_101 = arith.constant 160 : index
    %172 = vector.load %arg9[%c0_99, %c0_100, %c160_101] : memref<1x16x256xf32, #tpu.memory_space<vmem>>, vector<1x16x32xf32>
    %173 = vector.shape_cast %172 : vector<1x16x32xf32> to vector<16x32xf32>
    %174 = vector.shape_cast %171 : vector<16x32xf32> to vector<1x16x32xf32>
    tpu.vector_store %arg9[%c0_99, %c0_100, %c160_101], %174 {strides = array<i32>} : memref<1x16x256xf32, #tpu.memory_space<vmem>>, vector<1x16x32xf32>,
    %175 = vector.extract_strided_slice %72 {offsets = [288, 0], sizes = [48, 32], strides = [1, 1]} : vector<384x32xf32> to vector<48x32xf32>
    %176 = vector.extract_strided_slice %175 {offsets = [0, 0], sizes = [16, 32], strides = [1, 1]} : vector<48x32xf32> to vector<16x32xf32>
    %177 = vector.extract_strided_slice %175 {offsets = [16, 0], sizes = [16, 32], strides = [1, 1]} : vector<48x32xf32> to vector<16x32xf32>
    %178 = arith.addf %176, %177 : vector<16x32xf32>
    %179 = vector.extract_strided_slice %175 {offsets = [32, 0], sizes = [16, 32], strides = [1, 1]} : vector<48x32xf32> to vector<16x32xf32>
    %180 = arith.addf %178, %179 : vector<16x32xf32>
    %c48_102 = arith.constant 48 : index
    %c192_103 = arith.constant 192 : index
    %181 = vector.load %arg11[%c48_102, %c192_103] : memref<64x256xf32, #tpu.memory_space<vmem>>, vector<16x32xf32>
    %182 = vector.broadcast %3 : vector<16x1xf32> to vector<16x32xf32>
    %183 = arith.mulf %180, %182 : vector<16x32xf32>
    %184 = vector.broadcast %4 : vector<16x1xf32> to vector<16x32xf32>
    %185 = arith.addf %183, %184 : vector<16x32xf32>
    %186 = arith.addf %185, %181 : vector<16x32xf32>
    %cst_104 = arith.constant 0.000000e+00 : f32
    %187 = vector.broadcast %cst_104 : f32 to vector<16x32xf32>
    %188 = arith.maximumf %186, %187 : vector<16x32xf32>
    %c0_105 = arith.constant 0 : index
    %c0_106 = arith.constant 0 : index
    %c192_107 = arith.constant 192 : index
    %189 = vector.load %arg9[%c0_105, %c0_106, %c192_107] : memref<1x16x256xf32, #tpu.memory_space<vmem>>, vector<1x16x32xf32>
    %190 = vector.shape_cast %189 : vector<1x16x32xf32> to vector<16x32xf32>
    %191 = vector.shape_cast %188 : vector<16x32xf32> to vector<1x16x32xf32>
    tpu.vector_store %arg9[%c0_105, %c0_106, %c192_107], %191 {strides = array<i32>} : memref<1x16x256xf32, #tpu.memory_space<vmem>>, vector<1x16x32xf32>,
    %192 = vector.extract_strided_slice %72 {offsets = [336, 0], sizes = [48, 32], strides = [1, 1]} : vector<384x32xf32> to vector<48x32xf32>
    %193 = vector.extract_strided_slice %192 {offsets = [0, 0], sizes = [16, 32], strides = [1, 1]} : vector<48x32xf32> to vector<16x32xf32>
    %194 = vector.extract_strided_slice %192 {offsets = [16, 0], sizes = [16, 32], strides = [1, 1]} : vector<48x32xf32> to vector<16x32xf32>
    %195 = arith.addf %193, %194 : vector<16x32xf32>
    %196 = vector.extract_strided_slice %192 {offsets = [32, 0], sizes = [16, 32], strides = [1, 1]} : vector<48x32xf32> to vector<16x32xf32>
    %197 = arith.addf %195, %196 : vector<16x32xf32>
    %c48_108 = arith.constant 48 : index
    %c224_109 = arith.constant 224 : index
    %198 = vector.load %arg11[%c48_108, %c224_109] : memref<64x256xf32, #tpu.memory_space<vmem>>, vector<16x32xf32>
    %199 = vector.broadcast %3 : vector<16x1xf32> to vector<16x32xf32>
    %200 = arith.mulf %197, %199 : vector<16x32xf32>
    %201 = vector.broadcast %4 : vector<16x1xf32> to vector<16x32xf32>
    %202 = arith.addf %200, %201 : vector<16x32xf32>
    %203 = arith.addf %202, %198 : vector<16x32xf32>
    %cst_110 = arith.constant 0.000000e+00 : f32
    %204 = vector.broadcast %cst_110 : f32 to vector<16x32xf32>
    %205 = arith.maximumf %203, %204 : vector<16x32xf32>
    %c0_111 = arith.constant 0 : index
    %c0_112 = arith.constant 0 : index
    %c224_113 = arith.constant 224 : index
    %206 = vector.load %arg9[%c0_111, %c0_112, %c224_113] : memref<1x16x256xf32, #tpu.memory_space<vmem>>, vector<1x16x32xf32>
    %207 = vector.shape_cast %206 : vector<1x16x32xf32> to vector<16x32xf32>
    %208 = vector.shape_cast %205 : vector<16x32xf32> to vector<1x16x32xf32>
    tpu.vector_store %arg9[%c0_111, %c0_112, %c224_113], %208 {strides = array<i32>} : memref<1x16x256xf32, #tpu.memory_space<vmem>>, vector<1x16x32xf32>,
    return
  }
  func.func @transform_0(%arg0: i32) -> (i32, i32, i32) {
    %c0_i32 = arith.constant 0 : i32
    %c0_i32_0 = arith.constant 0 : i32
    %c0_i32_1 = arith.constant 0 : i32
    return %arg0, %c0_i32, %c0_i32_0 : i32, i32, i32
  }
  func.func @transform_1(%arg0: i32) -> (i32, i32) {
    %c0_i32 = arith.constant 0 : i32
    %c0_i32_0 = arith.constant 0 : i32
    %c0_i32_1 = arith.constant 0 : i32
    return %c0_i32, %c0_i32_0 : i32, i32
  }
  func.func @transform_2(%arg0: i32) -> (i32, i32) {
    %c0_i32 = arith.constant 0 : i32
    %c0_i32_0 = arith.constant 0 : i32
    %c0_i32_1 = arith.constant 0 : i32
    return %c0_i32, %c0_i32_0 : i32, i32
  }
  func.func @transform_3(%arg0: i32) -> (i32, i32) {
    %c0_i32 = arith.constant 0 : i32
    %c0_i32_0 = arith.constant 0 : i32
    %c0_i32_1 = arith.constant 0 : i32
    return %c0_i32, %c0_i32_0 : i32, i32
  }
  func.func @transform_4(%arg0: i32) -> (i32, i32) {
    %c0_i32 = arith.constant 0 : i32
    %c0_i32_0 = arith.constant 0 : i32
    %c0_i32_1 = arith.constant 0 : i32
    return %c0_i32, %c0_i32_0 : i32, i32
  }
  func.func @transform_5(%arg0: i32) -> (i32, i32) {
    %c0_i32 = arith.constant 0 : i32
    %c0_i32_0 = arith.constant 0 : i32
    %c0_i32_1 = arith.constant 0 : i32
    return %c0_i32, %c0_i32_0 : i32, i32
  }
  func.func @transform_6(%arg0: i32) -> (i32, i32) {
    %c0_i32 = arith.constant 0 : i32
    %c0_i32_0 = arith.constant 0 : i32
    %c0_i32_1 = arith.constant 0 : i32
    return %c0_i32, %c0_i32_0 : i32, i32
  }
  func.func @transform_7(%arg0: i32) -> (i32, i32) {
    %c0_i32 = arith.constant 0 : i32
    %c0_i32_0 = arith.constant 0 : i32
    %c0_i32_1 = arith.constant 0 : i32
    return %c0_i32, %c0_i32_0 : i32, i32
  }
  func.func @transform_8(%arg0: i32) -> (i32, i32, i32) {
    %c0_i32 = arith.constant 0 : i32
    %c0_i32_0 = arith.constant 0 : i32
    %c0_i32_1 = arith.constant 0 : i32
    return %arg0, %c0_i32, %c0_i32_0 : i32, i32, i32
  }
  func.func @transform_9(%arg0: i32) -> (i32, i32, i32) {
    %c0_i32 = arith.constant 0 : i32
    %c0_i32_0 = arith.constant 0 : i32
    %c0_i32_1 = arith.constant 0 : i32
    return %arg0, %c0_i32, %c0_i32_0 : i32, i32, i32
  }
}

</mosaic_0001>

<bundles_post_ra>
// kernel: tpu_custom_call.1
= control target key start
LH: loop header
LB: loop body
LE: loop exit
PB: predicated region body
PF: predicated region fallthrough
CT: control target
= control target key end

     0   :  { %s8307_s0 = inlined_call_operand.vmem [shape: f32[2,8,256], index: 0, kind: input, shape index: {}]   ;;  %s8308_s1 = inlined_call_operand.vmem [shape: f32[48,8], index: 1, kind: input, shape index: {}]   ;;  %s8309_s2 = inlined_call_operand.vmem [shape: f32[64,8], index: 2, kind: input, shape index: {}]   ;;  %s8310_s3 = inlined_call_operand.vmem [shape: f32[96,24], index: 3, kind: input, shape index: {}]   ;;  %s8311_s4 = inlined_call_operand.vmem [shape: f32[240,1], index: 4, kind: input, shape index: {}]   ;;  %s8312_s5 = inlined_call_operand.vmem [shape: f32[48,256], index: 5, kind: input, shape index: {}]   ;;  %s8313_s6 = inlined_call_operand.vmem [shape: f32[64,512], index: 6, kind: input, shape index: {}]   ;;  %s8314_s7 = inlined_call_operand.vmem [shape: f32[768,32], index: 7, kind: input, shape index: {}]   ;;  %s8315_s8 = inlined_call_operand.hbm [shape: f32[2,16,256], index: 8, kind: output, shape index: {0}]   ;;  %s8316_s9 = inlined_call_operand.hbm [shape: f32[2,48,512], index: 9, kind: output, shape index: {1}]  }
   0x1   :  { %8332 = sst [smem:[#allocation85_spill]] %s8307_s0 }
   0x2   :  { %8333 = sst [smem:[#allocation86_spill]] %s8308_s1 }
   0x3   :  { %15 = vsyncpa [#allocation5], 0 }
   0x4   :  { %17 = vsyncpa [#allocation5 + $0x1], 0 }
   0x5   :  { %18 = vsyncpa [#allocation7], 0 }
   0x6   :  { %20 = vsyncpa [#allocation7 + $0x1], 0  ;;  %s5651_s30 = smov 0   ;;  %s5653_s10 = smov 0  }
   0x7   :  { %s5655_s11 = smov 0   ;;  %s5657_s12 = smov 0  }
   0x8 LB: > { %s5672_s13 = sadd.s32 4294967295, %s5589_s12   ;;  %s5183_s14 = sadd.s32 4294967294, %s5589_s12   ;;  %s5589_s12 = sphi %s5657_s12, %s8573_s12   ;;  %s5585_s11 = sphi %s5655_s11, %s8572_s11   ;;  %s5581_s10 = sphi %s5653_s10, %s8571_s10   ;;  %s5577_s30 = sphi %s5651_s30, %s8570_s30  }
   0x9   : > { %s5676_s15 = sadd.s32 1, %s5589_s12   ;;  %s206_s16 = sadd.s32 1, %s5585_s11 }
   0xa   : > { %s203_s17 = ssub.s32 %s5589_s12, %s5676_s15  ;;  %p216_p0 = scmp.ne.s32.totalorder %s5585_s11, %s5581_s10 }
   0xb   : > { %p204_p1 = scmp.eq.s32.totalorder %s203_s17, 0  ;;  %p217_p2 = scmp.eq.s32.totalorder %s5672_s13, 1 }
   0xc   : > { %p222_p3 = scmp.ne.s32.totalorder %s5581_s10, %s5577_s30  ;;  %p223_p4 = scmp.eq.s32.totalorder %s5183_s14, 1 }
   0xd   : > { %s5687_s18 = scalar_select %p204_p1, %s5585_s11, %s206_s16  }
   0xe   : > { %p5689_p5 = por %p217_p2, %p216_p0  ;;  %p5693_p6 = por %p223_p4, %p222_p3 }
   0xf   : > { %p5186_p7 = scmp.ge.s32.totalorder %s5589_s12, 1  ;;  %p296_p8 = scmp.lt.s32.totalorder %s5589_s12, 3 }
  0x11   : > { %p297_p9 = pnand %p5186_p7, %p296_p8 }
  0x13   : > { %300 = sbr.rel (%p297_p9) target bundleno = 1825 (0x721), region = 52 }
  0x18   : > { %v435_v0 = vld [vmem:[%s8314_s7 + $0xf8] sm:$0xff]  ;;  %v434_v2 = vld [vmem:[%s8314_s7 + $0xf0] sm:$0xff]  ;;  %p337_p10 = scmp.lt.s32.totalorder %s5672_s13, 1  ;;  %v433_v4 = vld [vmem:[%s8314_s7 + $0xe8] sm:$0xff]  ;;  %s8336_s0 = sld [smem:[#allocation85_spill]]  ;;  %vm608_vm0 = vcmask 64512  }
  0x19   : > { %v419_v1 = vld [vmem:[%s8314_s7 + $0x78] sm:$0xff]  ;;  %5344 = vmatprep.subr.mxu0 %v435_v0  ;;  %v418_v3 = vld [vmem:[%s8314_s7 + $0x70] sm:$0xff]  ;;  %v417_v5 = vld [vmem:[%s8314_s7 + $0x68] sm:$0xff]  ;;  %s8337_s1 = sld [smem:[#allocation86_spill]]  ;;  %v5591_v37 = vmov 0   ;;  %vm722_vm1 = vcmask 261120  }
  0x1a   : > { %5345 = vmatpush3.msra.mxu0 %v419_v1  ;;  %s338_s16 = scalar_select %p337_p10, %s5672_s13, 1  ;;  %v432_v6 = vld [vmem:[%s8314_s7 + $0xe0] sm:$0xff]  ;;  %v431_v8 = vld [vmem:[%s8314_s7 + $0xd8] sm:$0xff]  ;;  %v430_v10 = vld [vmem:[%s8314_s7 + $0xd0] sm:$0xff]  ;;  %5457 = vset.pattern.permute.xlu0 %v5591_v37  ;;  %vm1169_vm2 = vcmask 195584   ;;  %vm4873_vm3 = vcmask 523520  }
  0x1b   : > { %5346 = vmatprep.subr.mxu0 %v434_v2  ;;  %v416_v7 = vld [vmem:[%s8314_s7 + $0x60] sm:$0xff]  ;;  %v415_v9 = vld [vmem:[%s8314_s7 + $0x58] sm:$0xff]  ;;  %v414_v11 = vld [vmem:[%s8314_s7 + $0x50] sm:$0xff]  ;;  %5458 = vset.pattern.permute.xlu1 %v5591_v37  ;;  %s8330_s29 = smov 96   ;;  %s5594_s14 = smov 64   ;;  %vm4906_vm4 = vcmask 785920  }
  0x1c   : > { %5347 = vmatpush3.msra.mxu0 %v418_v3  ;;  %s5342_s24 = sshll.u32 %s338_s16, 4  ;;  %v429_v12 = vld [vmem:[%s8314_s7 + $0xc8] sm:$0xff]  ;;  %v428_v15 = vld [vmem:[%s8314_s7 + $0xc0] sm:$0xff]  ;;  %v427_v17 = vld [vmem:[%s8314_s7 + $0xb8] sm:$0xff]  ;;  %s8317_s17 = smov 32  }
  0x1d   : > { %5348 = vmatprep.subr.mxu0 %v433_v4  ;;  %v413_v14 = vld [vmem:[%s8314_s7 + $0x48] sm:$0xff]  ;;  %v412_v16 = vld [vmem:[%s8314_s7 + $0x40] sm:$0xff]  ;;  %v411_v18 = vld [vmem:[%s8314_s7 + $0x38] sm:$0xff]  ;;  %v8319_v4 = vmov 0.0   ;;  %s8374_s28 = smov 32   ;;  %s7575_s21 = sand.u32 1, %s5581_s10  }
  0x1e   : > { %5349 = vmatpush3.msra.mxu0 %v417_v5  ;;  %s5734_s22 = scalar_lea.vmem %s8336_s0, %s5342_s24  ;;  %v426_v19 = vld [vmem:[%s8314_s7 + $0xb0] sm:$0xff]  ;;  %v425_v21 = vld [vmem:[%s8314_s7 + $0xa8] sm:$0xff]  ;;  %v424_v23 = vld [vmem:[%s8314_s7 + $0xa0] sm:$0xff]  ;;  %s5187_s23 = sshll.u32 %s7575_s21, 5 }
  0x1f   : > { %5350 = vmatprep.subr.mxu0 %v432_v6  ;;  %v5746_v13 = vld [vmem:[%s5734_s22 + $0x8] sm:$0xff]  ;;  %v410_v20 = vld [vmem:[%s8314_s7 + $0x30] sm:$0xff]  ;;  %v408_v24 = vld [vmem:[%s8314_s7 + $0x20] sm:$0xff]  ;;  %s8137_s25 = scalar_lea.vmem [#allocation4], %s5187_s23  ;;  %s5404_s26 = smul.u32 3072, %s5672_s13 }
  0x20   : > { %5351 = vmatpush3.msra.mxu0 %v416_v7  ;;  %566 = vmatprep.mubr.f32.mxu0 %v5746_v13  ;;  %v409_v22 = vld [vmem:[%s8314_s7 + $0x28] sm:$0xff]  ;;  %v423_v25 = vld [vmem:[%s8314_s7 + $0x98] sm:$0xff]  ;;  %v422_v27 = vld [vmem:[%s8314_s7 + $0x90] sm:$0xff] }
  0x21   : > { %5352 = vmatprep.subr.mxu0 %v431_v8  ;;  %v407_v26 = vld [vmem:[%s8314_s7 + $0x18] sm:$0xff]  ;;  %v406_v28 = vld [vmem:[%s8314_s7 + $0x10] sm:$0xff]  ;;  %v421_v29 = vld [vmem:[%s8314_s7 + $0x88] sm:$0xff] }
  0x22   : > { %5353 = vmatpush3.msra.mxu0 %v415_v9  ;;  %v405_v30 = vld [vmem:[%s8314_s7 + $0x8] sm:$0xff]  ;;  %v420_v31 = vld [vmem:[%s8314_s7 + $0x80] sm:$0xff]  ;;  %v344_v36 = vld [vmem:[%s8311_s4 + $0x10] sm:$0xff] }
  0x23   : > { %5354 = vmatprep.subr.mxu0 %v430_v10  ;;  %v404_v32 = vld [vmem:[%s8314_s7] sm:$0xff]  ;;  %590 = vperm.xlu1 %5458, %v344_v36   ;;  %v343_v38 = vld [vmem:[%s8311_s4 + $0x8] sm:$0xff]  ;;  %v345_v39 = vld [vmem:[%s8311_s4 + $0x18] sm:$0xff] }
  0x24   : > { %5355 = vmatpush3.msra.mxu0 %v414_v11  ;;  %v5807_v33 = vld [vmem:[%s5734_s22] sm:$0xff]  ;;  %v347_v41 = vld [vmem:[%s8311_s4 + $0x28] sm:$0xff]  ;;  %v348_v42 = vld [vmem:[%s8311_s4 + $0x30] sm:$0xff]  ;;  %s8202_s22 = scalar_lea.hbm %s8316_s9, %s5404_s26  ;;  %s5596_s26 = smov [#allocation6]  }
  0x25   : > { %5356 = vmatprep.subr.mxu0 %v429_v12  ;;  %v572_v34 = vld [vmem:[%s8337_s1] sm:$0xff]  ;;  %v349_v43 = vld [vmem:[%s8311_s4 + $0x38] sm:$0xff]  ;;  %v351_v45 = vld [vmem:[%s8311_s4 + $0x48] sm:$0xff] }
  0x26   : > { %5357 = vmatpush3.msra.mxu0 %v413_v14  ;;  %5388 = vmatprep.mubr.msk.f32.mxu1 %vm608_vm0, %v572_v34  ;;  %v342_v35 = vld [vmem:[%s8311_s4] sm:$0xff]  ;;  %v352_v46 = vld [vmem:[%s8311_s4 + $0x50] sm:$0xff]  ;;  %v353_v47 = vld [vmem:[%s8311_s4 + $0x58] sm:$0xff] }
  0x27   : > { %5358 = vmatprep.subr.mxu0 %v428_v15  ;;  %580 = vperm.xlu0 %5457, %v342_v35   ;;  %v346_v40 = vld [vmem:[%s8311_s4 + $0x20] sm:$0xff]  ;;  %v573_v51 = vld [vmem:[%s8337_s1 + $0x8] sm:$0xff]  ;;  %v574_v53 = vld [vmem:[%s8337_s1 + $0x10] sm:$0xff] }
  0x28   : > { %5359 = vmatpush3.msra.mxu0 %v412_v16  ;;  %595 = vperm.xlu1 %5458, %v345_v39   ;;  %v350_v44 = vld [vmem:[%s8311_s4 + $0x40] sm:$0xff]  ;;  %v401_v52 = vld [vmem:[%s8313_s6 + $0xe8] sm:$0xff]  ;;  %v575_v56 = vld [vmem:[%s8337_s1 + $0x18] sm:$0xff] }
  0x29   : > { %5360 = vmatprep.subr.mxu0 %v427_v17  ;;  %v400_v54 = vld [vmem:[%s8313_s6 + $0xe0] sm:$0xff]  ;;  %v397_v55 = vld [vmem:[%s8313_s6 + $0xc8] sm:$0xff]  ;;  %v5888_v61 = vld [vmem:[%s8313_s6 + $0x78] sm:$0xff] }
  0x2a   : > { %5361 = vmatpush3.msra.mxu0 %v411_v18  ;;  %v576_v57 = vld [vmem:[%s8337_s1 + $0x20] sm:$0xff]  ;;  %v577_v58 = vld [vmem:[%s8337_s1 + $0x28] sm:$0xff]  ;;  %v5897_v63 = vld [vmem:[%s8313_s6 + $0x70] sm:$0xff] }
  0x2b   : > { %5362 = vmatprep.subr.mxu0 %v426_v19  ;;  %585 = vperm.xlu0 %5457, %v343_v38   ;;  %v396_v59 = vld [vmem:[%s8313_s6 + $0xc0] sm:$0xff]  ;;  %v393_v60 = vld [vmem:[%s8313_s6 + $0xa8] sm:$0xff]  ;;  %v5906_v1 = vld [vmem:[%s8313_s6 + $0x58] sm:$0xff] }
  0x2c   : > { %5363 = vmatpush3.msra.mxu0 %v410_v20  ;;  %605 = vperm.xlu1 %5458, %v347_v41   ;;  %v392_v62 = vld [vmem:[%s8313_s6 + $0xa0] sm:$0xff]  ;;  %v389_v0 = vld [vmem:[%s8313_s6 + $0x88] sm:$0xff]  ;;  %v5915_v3 = vld [vmem:[%s8313_s6 + $0x50] sm:$0xff] }
  0x2d   : > { %5364 = vmatprep.subr.mxu0 %v425_v21  ;;  %v388_v2 = vld [vmem:[%s8313_s6 + $0x80] sm:$0xff]  ;;  %v5921_v5 = vld [vmem:[%s8313_s6 + $0x38] sm:$0xff]  ;;  %v5927_v6 = vld [vmem:[%s8313_s6 + $0x30] sm:$0xff] }
  0x2e   : > { %5365 = vmatpush3.msra.mxu0 %v409_v22  ;;  %v5934_v7 = vld [vmem:[%s8313_s6 + $0x18] sm:$0xff]  ;;  %v5940_v8 = vld [vmem:[%s8313_s6 + $0x10] sm:$0xff]  ;;  %v5977_v35 = vld [vmem:[%s8313_s6 + $0x68] sm:$0xff] }
  0x2f   : > { %5366 = vmatprep.subr.mxu0 %v424_v23  ;;  %600 = vperm.xlu0 %5457, %v346_v40   ;;  %v403_v9 = vld [vmem:[%s8313_s6 + $0xf8] sm:$0xff]  ;;  %v402_v17 = vld [vmem:[%s8313_s6 + $0xf0] sm:$0xff]  ;;  %v5987_v38 = vld [vmem:[%s8313_s6 + $0x60] sm:$0xff] }
  0x30   : > { %5367 = vmatpush3.msra.mxu0 %v408_v24  ;;  %1555 = vperm.xlu1 %5458, %v349_v43   ;;  %v399_v20 = vld [vmem:[%s8313_s6 + $0xd8] sm:$0xff]  ;;  %v398_v22 = vld [vmem:[%s8313_s6 + $0xd0] sm:$0xff]  ;;  %v5992_v39 = vld [vmem:[%s8313_s6 + $0x48] sm:$0xff] }
  0x31   : > { %5368 = vmatprep.subr.mxu0 %v423_v25  ;;  %v395_v24 = vld [vmem:[%s8313_s6 + $0xb8] sm:$0xff]  ;;  %v5999_v40 = vld [vmem:[%s8313_s6 + $0x40] sm:$0xff]  ;;  %v6006_v41 = vld [vmem:[%s8313_s6 + $0x28] sm:$0xff] }
  0x32   : > { %5369 = vmatpush3.msra.mxu0 %v407_v26  ;;  %v394_v26 = vld [vmem:[%s8313_s6 + $0xb0] sm:$0xff]  ;;  %v6019_v43 = vld [vmem:[%s8313_s6 + $0x8] sm:$0xff] }
  0x33   : > { %5370 = vmatprep.subr.mxu0 %v422_v27  ;;  %1550 = vperm.xlu0 %5457, %v348_v42   ;;  %v6012_v42 = vld [vmem:[%s8313_s6 + $0x20] sm:$0xff] }
  0x34   : > { %5371 = vmatpush3.msra.mxu0 %v406_v28  ;;  %1565 = vperm.xlu1 %5458, %v351_v45   ;;  %v391_v28 = vld [vmem:[%s8313_s6 + $0x98] sm:$0xff] }
  0x35   : > { %5372 = vmatprep.subr.mxu0 %v421_v29  ;;  %v390_v29 = vld [vmem:[%s8313_s6 + $0x90] sm:$0xff] }
  0x36   : > { %5373 = vmatpush3.msra.mxu0 %v405_v30 }
  0x37   : > { %5374 = vmatprep.subr.mxu0 %v420_v31  ;;  %1560 = vperm.xlu0 %5457, %v350_v44   ;;  %v6026_v44 = vld [vmem:[%s8313_s6] sm:$0xff] }
  0x38   : > { %5375 = vmatpush3.msra.mxu0 %v404_v32  ;;  %1575 = vperm.xlu1 %5458, %v353_v47  }
  0x39   : > { %567 = vmatmul.mubr.f32.vlgmr.msra.gmra.mxu0 %v5807_v33  ;;  %1014 = vmatprep.subr.mxu0 %v5888_v61 }
  0x3a   : > { %1015 = vmatpush1.msra.mxu0 %v5897_v63  ;;  %1054 = vmatprep.mubr.f32.mxu0 %v8319_v4 }
  0x3b   : > { %1570 = vperm.xlu0 %5457, %v352_v46   ;;  %1016 = vmatprep.subr.mxu0 %v5906_v1 }
  0x3c   : > { %1017 = vmatpush1.msra.mxu0 %v5915_v3 }
  0x3d   : > { %1018 = vmatprep.subr.mxu0 %v5921_v5 }
  0x3e   : > { %1019 = vmatpush1.msra.mxu0 %v5927_v6 }
  0x3f   : > { %1020 = vmatprep.subr.mxu0 %v5934_v7 }
  0x40   : > { %1021 = vmatpush1.msra.mxu0 %v5940_v8 }
  0x9e   : > { %v591_v11 = vpop.permute.xlu1 %590 }
  0xa2   : > { %v581_v10 = vpop.permute.xlu0 %580 }
  0xa3   : > { %v596_v18 = vpop.permute.xlu1 %595 }
  0xa6   : > { %v586_v15 = vpop.permute.xlu0 %585 }
  0xa7   : > { %v606_v36 = vpop.permute.xlu1 %605 }
  0xaa   : > { %v601_v30 = vpop.permute.xlu0 %600 }
  0xf9   : > { %v5376_v48 = vpop.f32.mrf.mxu0 }
  0xfb   : > { %v5377_v49 = vpop.f32.mrf.mxu0 }
  0xfc   : > { %v5378_v50 = vadd.f32 %v5377_v49, %v5376_v48 }
  0xfe   : > { %5386 = vmatprep.subr.mxu1 %v5378_v50 }
  0xff   : > { %5387 = vmatpush3.msra.mxu1 %v5378_v50 }
 0x100   : > { %5389 = vmatmul.mubr.msk.f32.vlgmr.msra.gmra.mxu1 %vm608_vm0, %v573_v51  ;;  %756 = vmatprep.subr.mxu1 %v401_v52 }
 0x101   : > { %5391 = vmatprep.mubr.msk.f32.mxu1 %vm608_vm0, %v574_v53  ;;  %757 = vmatpush1.msra.mxu1 %v400_v54 }
 0x102   : > { %758 = vmatprep.subr.mxu1 %v397_v55 }
 0x103   : > { %759 = vmatpush1.msra.mxu1 %v396_v59 }
 0x104   : > { %5392 = vmatmul.mubr.msk.f32.gmra.mxu1 %vm608_vm0, %v575_v56  ;;  %760 = vmatprep.subr.mxu1 %v393_v60 }
 0x105   : > { %5394 = vmatprep.mubr.msk.f32.mxu1 %vm608_vm0, %v576_v57  ;;  %761 = vmatpush1.msra.mxu1 %v392_v62 }
 0x106   : > { %762 = vmatprep.subr.mxu1 %v389_v0 }
 0x107   : > { %763 = vmatpush1.msra.mxu1 %v388_v2 }
 0x108   : > { %5395 = vmatmul.mubr.msk.f32.gmra.mxu1 %vm608_vm0, %v577_v58  ;;  %839 = vmatprep.subr.mxu1 %v403_v9 }
 0x109   : > { %796 = vmatprep.mubr.f32.mxu1 %v8319_v4 }
 0x1c0   : > { %v5390_v12 = vpop.f32.mrf.mxu1 }
 0x1c1   : > { %v699_v25 = vadd.f32 %v5390_v12, %v586_v15 }
 0x1c2   : > { %v693_v14 = vpop.f32.mrf.mxu1 }
 0x1c3   : > { %v694_v16 = vadd.f32 %v693_v14, %v581_v10 }
 0x1c4   : > { %v5393_v19 = vpop.f32.mrf.mxu1 }
 0x1c5   : > { %v709_v21 = vadd.f32 %v5393_v19, %v596_v18  ;;  %5196 = vmatmul.mubr.msk.f32.vlgmr.msra.gmra.mxu1 %vm722_vm1, %v694_v16 }
 0x1c6   : > { %v703_v23 = vpop.f32.mrf.mxu1  ;;  %802 = vmatprep.mubr.f32.mxu1 %v8319_v4  ;;  %840 = vmatpush1.msra.mxu1 %v402_v17 }
 0x1c7   : > { %5205 = vmatmul.mubr.msk.f32.vlgmr.msra.gmra.mxu0 %vm722_vm1, %v709_v21  ;;  %841 = vmatprep.subr.mxu1 %v399_v20  ;;  %v704_v32 = vadd.f32 %v703_v23, %v591_v11 }
 0x1c8   : > { %v5396_v27 = vpop.f32.mrf.mxu1  ;;  %842 = vmatpush1.msra.mxu1 %v398_v22  ;;  %1060 = vmatprep.mubr.f32.mxu0 %v8319_v4 }
 0x1c9   : > { %5197 = vmatmul.mubr.msk.f32.gmra.mxu1 %vm722_vm1, %v699_v25  ;;  %843 = vmatprep.subr.mxu1 %v395_v24  ;;  %v719_v37 = vadd.f32 %v5396_v27, %v606_v36  ;;  %v1098_v36 = vld [vmem:[%s8310_s3 + $0x8] sm:$0xff] }
 0x1ca   : > { %v713_v31 = vpop.f32.mrf.mxu1  ;;  %808 = vmatprep.mubr.f32.mxu1 %v8319_v4  ;;  %844 = vmatpush1.msra.mxu1 %v394_v26 }
 0x1cb   : > { %v714_v34 = vadd.f32 %v713_v31, %v601_v30  ;;  %845 = vmatprep.subr.mxu1 %v391_v28 }
 0x1cc   : > { %846 = vmatpush1.msra.mxu1 %v390_v29 }
 0x1cd   : > { %5198 = vmatmul.mubr.msk.f32.gmra.mxu1 %vm722_vm1, %v704_v32  ;;  %5206 = vmatmul.mubr.msk.f32.gmra.mxu0 %vm722_vm1, %v714_v34 }
 0x1ce   : > { %879 = vmatprep.mubr.f32.mxu1 %v8319_v4  ;;  %1066 = vmatprep.mubr.f32.mxu0 %v8319_v4 }
 0x1cf   : > { %931 = vmatprep.subr.mxu1 %v5977_v35 }
 0x1d1   : > { %5199 = vmatmul.mubr.msk.f32.vlgmr.msra.gmra.mxu1 %vm722_vm1, %v694_v16  ;;  %5207 = vmatmul.mubr.msk.f32.gmra.mxu0 %vm722_vm1, %v719_v37 }
 0x1d2   : > { %885 = vmatprep.mubr.f32.mxu1 %v8319_v4  ;;  %932 = vmatpush1.msra.mxu1 %v5987_v38 }
 0x1d3   : > { %933 = vmatprep.subr.mxu1 %v5992_v39  ;;  %1407 = vmatprep.mubr.f32.mxu0 %v8319_v4 }
 0x1d4   : > { %934 = vmatpush1.msra.mxu1 %v5999_v40 }
 0x1d5   : > { %5200 = vmatmul.mubr.msk.f32.gmra.mxu1 %vm722_vm1, %v699_v25  ;;  %935 = vmatprep.subr.mxu1 %v6006_v41 }
 0x1d6   : > { %891 = vmatprep.mubr.f32.mxu1 %v8319_v4  ;;  %936 = vmatpush1.msra.mxu1 %v6012_v42 }
 0x1d7   : > { %937 = vmatprep.subr.mxu1 %v6019_v43 }
 0x1d8   : > { %938 = vmatpush1.msra.mxu1 %v6026_v44 }
 0x1d9   : > { %5201 = vmatmul.mubr.msk.f32.gmra.mxu1 %vm722_vm1, %v704_v32 }
 0x1da   : > { %971 = vmatprep.mubr.f32.mxu1 %v8319_v4 }
 0x1dd   : > { %5202 = vmatmul.mubr.msk.f32.vlgmr.msra.gmra.mxu1 %vm722_vm1, %v709_v21 }
 0x1de   : > { %977 = vmatprep.mubr.f32.mxu1 %v8319_v4 }
 0x1e1   : > { %5203 = vmatmul.mubr.msk.f32.gmra.mxu1 %vm722_vm1, %v714_v34  ;;  %v1097_v34 = vld [vmem:[%s8310_s3] sm:$0xff] }
 0x1e2   : > { %983 = vmatprep.mubr.f32.mxu1 %v8319_v4 }
 0x1e5   : > { %5204 = vmatmul.mubr.msk.f32.gmra.mxu1 %vm722_vm1, %v719_v37 }
 0x1e6   : > { %1270 = vmatprep.mubr.f32.mxu1 %v8319_v4 }
 0x285   : > { %v798_v45 = vpop.f32.mrf.mxu1 }
 0x287   : > { %v800_v46 = vpop.f32.mrf.mxu1  ;;  %v1056_v47 = vpop.f32.mrf.mxu0 }
 0x289   : > { %v804_v48 = vpop.f32.mrf.mxu1  ;;  %v1058_v50 = vpop.f32.mrf.mxu0 }
 0x28b   : > { %v806_v49 = vpop.f32.mrf.mxu1 }
 0x28d   : > { %v810_v51 = vpop.f32.mrf.mxu1  ;;  %v1062_v52 = vpop.f32.mrf.mxu0 }
 0x28f   : > { %v812_v53 = vpop.f32.mrf.mxu1  ;;  %v1064_v55 = vpop.f32.mrf.mxu0 }
 0x291   : > { %v881_v54 = vpop.f32.mrf.mxu1  ;;  %v1068_v58 = vpop.f32.mrf.mxu0 }
 0x292   : > { %v1075_v15 = vsub.f32 %v881_v54, %v1056_v47  ;;  %v1099_v47 = vld [vmem:[%s8310_s3 + $0x10] sm:$0xff]  ;;  %v1104_v54 = vld [vmem:[%s8310_s3 + $0x38] sm:$0xff] }
 0x293   : > { %v883_v56 = vpop.f32.mrf.mxu1  ;;  %v1070_v62 = vpop.f32.mrf.mxu0 }
 0x294   : > { %v1076_v14 = vsub.f32 %v883_v56, %v1058_v50  ;;  %v1106_v56 = vld [vmem:[%s8310_s3 + $0x48] sm:$0xff] }
 0x295   : > { %v887_v57 = vpop.f32.mrf.mxu1 }
 0x296   : > { %v1079_v11 = vsub.f32 %v887_v57, %v1062_v52  ;;  %v1101_v52 = vld [vmem:[%s8310_s3 + $0x20] sm:$0xff]  ;;  %v1107_v57 = vld [vmem:[%s8310_s3 + $0x50] sm:$0xff] }
 0x297   : > { %v889_v59 = vpop.f32.mrf.mxu1 }
 0x298   : > { %v1080_v9 = vsub.f32 %v889_v59, %v1064_v55  ;;  %v1105_v55 = vld [vmem:[%s8310_s3 + $0x40] sm:$0xff] }
 0x299   : > { %v893_v60 = vpop.f32.mrf.mxu1  ;;  %v1540_v59 = vld [vmem:[%s8309_s2] sm:$0xff] }
 0x29a   : > { %v1083_v0 = vsub.f32 %v893_v60, %v1068_v58  ;;  %v1108_v58 = vld [vmem:[%s8310_s3 + $0x58] sm:$0xff]  ;;  %v1541_v60 = vld [vmem:[%s8309_s2 + $0x8] sm:$0xff] }
 0x29b   : > { %v895_v2 = vpop.f32.mrf.mxu1 }
 0x29c   : > { %v1084_v10 = vsub.f32 %v895_v2, %v1070_v62  ;;  %v1543_v62 = vld [vmem:[%s8309_s2 + $0x18] sm:$0xff]  ;;  %v1545_v2 = vld [vmem:[%s8309_s2 + $0x28] sm:$0xff] }
 0x29d   : > { %v973_v12 = vpop.f32.mrf.mxu1 }
 0x29e   : > { %5459 = vtanh.f32 %v1084_v10  ;;  %v1073_v27 = vsub.f32 %v798_v45, %v973_v12  ;;  %v1547_v10 = vld [vmem:[%s8309_s2 + $0x38] sm:$0xff] }
 0x29f   : > { %5461 = vtanh.f32 %v1083_v0  ;;  %v975_v16 = vpop.f32.mrf.mxu1  ;;  %v1544_v0 = vld [vmem:[%s8309_s2 + $0x20] sm:$0xff] }
 0x2a0   : > { %5463 = vtanh.f32 %v1080_v9  ;;  %v1074_v25 = vsub.f32 %v800_v46, %v975_v16  ;;  %v1546_v9 = vld [vmem:[%s8309_s2 + $0x30] sm:$0xff] }
 0x2a1   : > { %5465 = vtanh.f32 %v1079_v11  ;;  %v979_v17 = vpop.f32.mrf.mxu1 }
 0x2a2   : > { %5467 = vtanh.f32 %v1076_v14  ;;  %v1077_v24 = vsub.f32 %v804_v48, %v979_v17 }
 0x2a3   : > { %5469 = vtanh.f32 %v1075_v15  ;;  %v981_v18 = vpop.f32.mrf.mxu1 }
 0x2a4   : > { %v1078_v22 = vsub.f32 %v806_v49, %v981_v18 }
 0x2a5   : > { %v985_v19 = vpop.f32.mrf.mxu1 }
 0x2a6   : > { %v1081_v20 = vsub.f32 %v810_v51, %v985_v19  ;;  %v1100_v51 = vld [vmem:[%s8310_s3 + $0x18] sm:$0xff] }
 0x2a7   : > { %v987_v21 = vpop.f32.mrf.mxu1 }
 0x2a8   : > { %v1082_v23 = vsub.f32 %v812_v53, %v987_v21  ;;  %v1102_v53 = vld [vmem:[%s8310_s3 + $0x28] sm:$0xff] }
 0x2aa   : > { %5471 = vtanh.f32 %v1082_v23 }
 0x2ab   : > { %v5460_v26 = vpop.eup %5459  ;;  %5473 = vtanh.f32 %v1081_v20 }
 0x2ac   : > { %v5462_v28 = vpop.eup %5461  ;;  %5475 = vtanh.f32 %v1078_v22  ;;  %1369 = vmatprep.subr.mxu0 %v5460_v26 }
 0x2ad   : > { %v5464_v29 = vpop.eup %5463  ;;  %5477 = vtanh.f32 %v1077_v24  ;;  %1370 = vmatpush1.msra.mxu0 %v5462_v28 }
 0x2ae   : > { %v5466_v30 = vpop.eup %5465  ;;  %5479 = vtanh.f32 %v1074_v25  ;;  %1371 = vmatprep.subr.mxu0 %v5464_v29 }
 0x2af   : > { %v5468_v31 = vpop.eup %5467  ;;  %5481 = vtanh.f32 %v1073_v27  ;;  %1372 = vmatpush1.msra.mxu0 %v5466_v30 }
 0x2b0   : > { %v5470_v32 = vpop.eup %5469  ;;  %1373 = vmatprep.subr.mxu0 %v5468_v31 }
 0x2b1   : > { %1374 = vmatpush1.msra.mxu0 %v5470_v32 }
 0x2b2   : > { %5220 = vmatmul.mubr.msk.f32.vlgmr.msra.gmra.mxu0 %vm1169_vm2, %v1097_v34  ;;  %1789 = vmatprep.subr.mxu0 %v5977_v35 }
 0x2b3   : > { %1413 = vmatprep.mubr.f32.mxu0 %v8319_v4  ;;  %1790 = vmatpush1.msra.mxu0 %v5987_v38 }
 0x2b4   : > { %1791 = vmatprep.subr.mxu0 %v5992_v39 }
 0x2b5   : > { %1792 = vmatpush1.msra.mxu0 %v5999_v40 }
 0x2b6   : > { %5221 = vmatmul.mubr.msk.f32.gmra.mxu0 %vm1169_vm2, %v1098_v36  ;;  %1793 = vmatprep.subr.mxu0 %v6006_v41 }
 0x2b7   : > { %v5472_v37 = vpop.eup %5471  ;;  %1419 = vmatprep.mubr.f32.mxu0 %v8319_v4  ;;  %1794 = vmatpush1.msra.mxu0 %v6012_v42 }
 0x2b8   : > { %v5474_v45 = vpop.eup %5473  ;;  %1232 = vmatprep.subr.mxu1 %v5472_v37  ;;  %1795 = vmatprep.subr.mxu0 %v6019_v43 }
 0x2b9   : > { %v5476_v46 = vpop.eup %5475  ;;  %1233 = vmatpush1.msra.mxu1 %v5474_v45  ;;  %1796 = vmatpush1.msra.mxu0 %v6026_v44 }
 0x2ba   : > { %v5478_v48 = vpop.eup %5477  ;;  %1234 = vmatprep.subr.mxu1 %v5476_v46  ;;  %5222 = vmatmul.mubr.msk.f32.gmra.mxu0 %vm1169_vm2, %v1099_v47 }
 0x2bb   : > { %v5480_v49 = vpop.eup %5479  ;;  %1235 = vmatpush1.msra.mxu1 %v5478_v48  ;;  %1425 = vmatprep.mubr.f32.mxu0 %v8319_v4 }
 0x2bc   : > { %v5482_v50 = vpop.eup %5481  ;;  %1236 = vmatprep.subr.mxu1 %v5480_v49  ;;  %1890 = vmatprep.subr.mxu0 %v5888_v61  ;;  %v6240_v49 = vpop.permute.xlu0 %1550 }
 0x2bd   : > { %1237 = vmatpush1.msra.mxu1 %v5482_v50 }
 0x2be   : > { %5208 = vmatmul.mubr.msk.f32.vlgmr.msra.gmra.mxu1 %vm1169_vm2, %v1097_v34  ;;  %5397 = vmatprep.subr.mxu1 %v5460_v26 }
 0x2bf   : > { %5400 = vmatpush1.msra.mxu1 %v5462_v28  ;;  %1276 = vmatprep.mubr.f32.mxu1 %v8319_v4 }
 0x2c0   : > { %5398 = vmatprep.subr.mxu1 %v5464_v29  ;;  %5223 = vmatmul.mubr.msk.f32.gmra.mxu0 %vm1169_vm2, %v1100_v51 }
 0x2c1   : > { %5401 = vmatpush1.msra.mxu1 %v5466_v30  ;;  %1431 = vmatprep.mubr.f32.mxu0 %v8319_v4 }
 0x2c2   : > { %5209 = vmatmul.mubr.msk.f32.gmra.mxu1 %vm1169_vm2, %v1098_v36  ;;  %5399 = vmatprep.subr.mxu1 %v5468_v31 }
 0x2c3   : > { %5402 = vmatpush1.msra.mxu1 %v5470_v32  ;;  %1282 = vmatprep.mubr.f32.mxu1 %v8319_v4 }
 0x2c4   : > { %1642 = vmatprep.subr.mxu1 %v5746_v13  ;;  %5224 = vmatmul.mubr.msk.f32.gmra.mxu0 %vm1169_vm2, %v1101_v52  ;;  %v1103_v13 = vld [vmem:[%s8310_s3 + $0x30] sm:$0xff] }
 0x2c5   : > { %1437 = vmatprep.mubr.f32.mxu0 %v8319_v4 }
 0x2c6   : > { %5210 = vmatmul.mubr.msk.f32.gmra.mxu1 %vm1169_vm2, %v1099_v47 }
 0x2c7   : > { %1288 = vmatprep.mubr.f32.mxu1 %v8319_v4 }
 0x2c8   : > { %5225 = vmatmul.mubr.msk.f32.gmra.mxu0 %vm1169_vm2, %v1102_v53 }
 0x2c9   : > { %1443 = vmatprep.mubr.f32.mxu0 %v8319_v4 }
 0x2ca   : > { %5211 = vmatmul.mubr.msk.f32.gmra.mxu1 %vm1169_vm2, %v1100_v51 }
 0x2cb   : > { %1294 = vmatprep.mubr.f32.mxu1 %v8319_v4 }
 0x2cc   : > { %5226 = vmatmul.mubr.msk.f32.gmra.mxu0 %vm1169_vm2, %v1103_v13 }
 0x2cd   : > { %1449 = vmatprep.mubr.f32.mxu0 %v8319_v4 }
 0x2ce   : > { %5212 = vmatmul.mubr.msk.f32.gmra.mxu1 %vm1169_vm2, %v1101_v52 }
 0x2cf   : > { %1300 = vmatprep.mubr.f32.mxu1 %v8319_v4 }
 0x2d0   : > { %5227 = vmatmul.mubr.msk.f32.gmra.mxu0 %vm1169_vm2, %v1104_v54 }
 0x2d1   : > { %1455 = vmatprep.mubr.f32.mxu0 %v8319_v4 }
 0x2d2   : > { %5213 = vmatmul.mubr.msk.f32.gmra.mxu1 %vm1169_vm2, %v1102_v53  ;;  %v6251_v53 = vpop.permute.xlu1 %1555 }
 0x2d3   : > { %1306 = vmatprep.mubr.f32.mxu1 %v8319_v4 }
 0x2d4   : > { %5228 = vmatmul.mubr.msk.f32.gmra.mxu0 %vm1169_vm2, %v1105_v55 }
 0x2d5   : > { %1461 = vmatprep.mubr.f32.mxu0 %v8319_v4 }
 0x2d6   : > { %5214 = vmatmul.mubr.msk.f32.gmra.mxu1 %vm1169_vm2, %v1103_v13 }
 0x2d7   : > { %1312 = vmatprep.mubr.f32.mxu1 %v8319_v4 }
 0x2d8   : > { %5229 = vmatmul.mubr.msk.f32.gmra.mxu0 %vm1169_vm2, %v1106_v56 }
 0x2d9   : > { %1829 = vmatprep.mubr.f32.mxu0 %v8319_v4 }
 0x2da   : > { %5215 = vmatmul.mubr.msk.f32.gmra.mxu1 %vm1169_vm2, %v1104_v54 }
 0x2db   : > { %1318 = vmatprep.mubr.f32.mxu1 %v8319_v4 }
 0x2de   : > { %5216 = vmatmul.mubr.msk.f32.gmra.mxu1 %vm1169_vm2, %v1105_v55 }
 0x2df   : > { %1324 = vmatprep.mubr.f32.mxu1 %v8319_v4 }
 0x2e2   : > { %5217 = vmatmul.mubr.msk.f32.gmra.mxu1 %vm1169_vm2, %v1106_v56  ;;  %v6262_v56 = vpop.permute.xlu0 %1560 }
 0x2e3   : > { %1330 = vmatprep.mubr.f32.mxu1 %v8319_v4 }
 0x2e6   : > { %5218 = vmatmul.mubr.msk.f32.gmra.mxu1 %vm1169_vm2, %v1107_v57 }
 0x2e7   : > { %1336 = vmatprep.mubr.f32.mxu1 %v8319_v4 }
 0x2ea   : > { %5219 = vmatmul.mubr.msk.f32.gmra.mxu1 %vm1169_vm2, %v1108_v58 }
 0x2eb   : > { %1467 = vmatprep.mubr.f32.mxu1 %v8319_v4 }
 0x2ee   : > { %5230 = vmatmul.mubr.msk.f32.vlgmr.msra.gmra.mxu1 %vm1169_vm2, %v1107_v57 }
 0x2ef   : > { %1473 = vmatprep.mubr.f32.mxu1 %v8319_v4  ;;  %1643 = vmatpush1.msra.mxu1 %v5807_v33  ;;  %v1542_v33 = vld [vmem:[%s8309_s2 + $0x10] sm:$0xff] }
 0x2f0   : > { %2075 = vmatprep.subr.mxu1 %v5977_v35 }
 0x2f2   : > { %5231 = vmatmul.mubr.msk.f32.gmra.mxu1 %vm1169_vm2, %v1108_v58 }
 0x2f3   : > { %1676 = vmatprep.mubr.f32.mxu1 %v8319_v4 }
 0x2f6   : > { %5232 = vmatmul.mubr.msk.f32.vlgmr.msra.gmra.mxu1 %vm608_vm0, %v1540_v59 }
 0x2f7   : > { %1682 = vmatprep.mubr.f32.mxu1 %v8319_v4  ;;  %2076 = vmatpush1.msra.mxu1 %v5987_v38 }
 0x2f8   : > { %2077 = vmatprep.subr.mxu1 %v5992_v39 }
 0x2f9   : > { %2078 = vmatpush1.msra.mxu1 %v5999_v40 }
 0x2fa   : > { %5233 = vmatmul.mubr.msk.f32.gmra.mxu1 %vm608_vm0, %v1541_v60  ;;  %2079 = vmatprep.subr.mxu1 %v6006_v41  ;;  %v6273_v60 = vpop.permute.xlu1 %1565 }
 0x2fb   : > { %1688 = vmatprep.mubr.f32.mxu1 %v8319_v4  ;;  %2080 = vmatpush1.msra.mxu1 %v6012_v42 }
 0x2fc   : > { %2081 = vmatprep.subr.mxu1 %v6019_v43 }
 0x2fd   : > { %2082 = vmatpush1.msra.mxu1 %v6026_v44 }
 0x2fe   : > { %5234 = vmatmul.mubr.msk.f32.gmra.mxu1 %vm608_vm0, %v1542_v33  ;;  %2361 = vmatprep.subr.mxu1 %v5977_v35 }
 0x2ff   : > { %1694 = vmatprep.mubr.f32.mxu1 %v8319_v4 }
 0x302   : > { %5235 = vmatmul.mubr.msk.f32.gmra.mxu1 %vm608_vm0, %v1543_v62 }
 0x303   : > { %1700 = vmatprep.mubr.f32.mxu1 %v8319_v4 }
 0x306   : > { %5236 = vmatmul.mubr.msk.f32.gmra.mxu1 %vm608_vm0, %v1544_v0 }
 0x307   : > { %1706 = vmatprep.mubr.f32.mxu1 %v8319_v4 }
 0x30a   : > { %5237 = vmatmul.mubr.msk.f32.gmra.mxu1 %vm608_vm0, %v1545_v2  ;;  %v1571_v2 = vpop.permute.xlu0 %1570 }
 0x30b   : > { %1712 = vmatprep.mubr.f32.mxu1 %v8319_v4 }
 0x30e   : > { %5238 = vmatmul.mubr.msk.f32.gmra.mxu1 %vm608_vm0, %v1546_v9 }
 0x30f   : > { %1718 = vmatprep.mubr.f32.mxu1 %v8319_v4 }
 0x312   : > { %5239 = vmatmul.mubr.msk.f32.gmra.mxu1 %vm608_vm0, %v1547_v10 }
 0x313   : > { %2115 = vmatprep.mubr.f32.mxu1 %v8319_v4 }
 0x37e   : > { %v6184_v11 = vpop.f32.mrf.mxu1 }
 0x37f   : > { %8338 = vst [vmem:[#allocation10_spill] sm:$0xff] %v6184_v11 }
 0x380   : > { %v6186_v12 = vpop.f32.mrf.mxu1 }
 0x381   : > { %8339 = vst [vmem:[#allocation11_spill] sm:$0xff] %v6186_v12 }
 0x382   : > { %v6188_v14 = vpop.f32.mrf.mxu1 }
 0x383   : > { %8340 = vst [vmem:[#allocation12_spill] sm:$0xff] %v6188_v14 }
 0x384   : > { %v6190_v15 = vpop.f32.mrf.mxu1 }
 0x385   : > { %8341 = vst [vmem:[#allocation13_spill] sm:$0xff] %v6190_v15  ;;  %v6726_v15 = vld [vmem:[%s8313_s6] sm:$0xff] }
 0x386   : > { %v6192_v16 = vpop.f32.mrf.mxu1 }
 0x387   : > { %8342 = vst [vmem:[#allocation14_spill] sm:$0xff] %v6192_v16  ;;  %v6702_v16 = vld [vmem:[%s8313_s6 + $0x20] sm:$0xff] }
 0x388   : > { %v6194_v17 = vpop.f32.mrf.mxu1 }
 0x389   : > { %8343 = vst [vmem:[#allocation15_spill] sm:$0xff] %v6194_v17 }
 0x38a   : > { %v6196_v18 = vpop.f32.mrf.mxu1 }
 0x38b   : > { %8344 = vst [vmem:[#allocation16_spill] sm:$0xff] %v6196_v18 }
 0x38c   : > { %v6198_v19 = vpop.f32.mrf.mxu1 }
 0x38d   : > { %8345 = vst [vmem:[#allocation17_spill] sm:$0xff] %v6198_v19 }
 0x38e   : > { %v6200_v20 = vpop.f32.mrf.mxu1 }
 0x38f   : > { %8346 = vst [vmem:[#allocation18_spill] sm:$0xff] %v6200_v20 }
 0x390   : > { %v6202_v21 = vpop.f32.mrf.mxu1 }
 0x391   : > { %8347 = vst [vmem:[#allocation19_spill] sm:$0xff] %v6202_v21 }
 0x392   : > { %v6204_v22 = vpop.f32.mrf.mxu1 }
 0x393   : > { %8348 = vst [vmem:[#allocation20_spill] sm:$0xff] %v6204_v22 }
 0x394   : > { %v6206_v23 = vpop.f32.mrf.mxu1 }
 0x395   : > { %8349 = vst [vmem:[#allocation21_spill] sm:$0xff] %v6206_v23 }
 0x396   : > { %v6208_v24 = vpop.f32.mrf.mxu1 }
 0x398   : > { %v6210_v25 = vpop.f32.mrf.mxu1 }
 0x39a   : > { %v6212_v26 = vpop.f32.mrf.mxu1 }
 0x39c   : > { %v6214_v27 = vpop.f32.mrf.mxu1 }
 0x39e   : > { %v6216_v28 = vpop.f32.mrf.mxu1 }
 0x3a0   : > { %v6218_v29 = vpop.f32.mrf.mxu1 }
 0x3a2   : > { %v6220_v30 = vpop.f32.mrf.mxu1 }
 0x3a4   : > { %v6222_v31 = vpop.f32.mrf.mxu1 }
 0x3a6   : > { %v6224_v32 = vpop.f32.mrf.mxu1 }
 0x3a7   : > { %8350 = vst [vmem:[#allocation22_spill] sm:$0xff] %v6224_v32 }
 0x3a8   : > { %v6226_v34 = vpop.f32.mrf.mxu1 }
 0x3aa   : > { %v6228_v36 = vpop.f32.mrf.mxu1 }
 0x3ab   : > { %8351 = vst [vmem:[#allocation23_spill] sm:$0xff] %v6228_v36 }
 0x3ac   : > { %v6230_v37 = vpop.f32.mrf.mxu1 }
 0x3ad   : > { %8352 = vst [vmem:[#allocation24_spill] sm:$0xff] %v6230_v37 }
 0x3ae   : > { %v6232_v45 = vpop.f32.mrf.mxu1 }
 0x3af   : > { %8353 = vst [vmem:[#allocation25_spill] sm:$0xff] %v6232_v45 }
 0x3b0   : > { %v6234_v46 = vpop.f32.mrf.mxu1 }
 0x3b1   : > { %8354 = vst [vmem:[#allocation26_spill] sm:$0xff] %v6234_v46 }
 0x3b2   : > { %v6236_v47 = vpop.f32.mrf.mxu1 }
 0x3b3   : > { %8355 = vst [vmem:[#allocation27_spill] sm:$0xff] %v6236_v47 }
 0x3b4   : > { %v6238_v48 = vpop.f32.mrf.mxu1 }
 0x3b5   : > { %8356 = vst [vmem:[#allocation28_spill] sm:$0xff] %v6238_v48 }
 0x3b6   : > { %v1678_v50 = vpop.f32.mrf.mxu1 }
 0x3b7   : > { %v6243_v51 = vadd.f32 %v1678_v50, %v6240_v49 }
 0x3b8   : > { %v6245_v52 = vpop.f32.mrf.mxu1 }
 0x3b9   : > { %2027 = vrot.lane.b32.xlu0 %v6243_v51, %s8330_s29  ;;  %5240 = vmatmul.mubr.msk.f32.vlgmr.msra.gmra.mxu0 %vm722_vm1, %v6243_v51 }
 0x3ba   : > { %v1684_v13 = vpop.f32.mrf.mxu1  ;;  %1835 = vmatprep.mubr.f32.mxu0 %v8319_v4  ;;  %1891 = vmatpush1.msra.mxu0 %v5897_v63 }
 0x3bb   : > { %v1685_v54 = vadd.f32 %v1684_v13, %v6251_v53  ;;  %1892 = vmatprep.subr.mxu0 %v5906_v1  ;;  %v1576_v13 = vpop.permute.xlu1 %1575 }
 0x3bc   : > { %v6257_v55 = vpop.f32.mrf.mxu1  ;;  %1893 = vmatpush1.msra.mxu0 %v5915_v3 }
 0x3bd   : > { %2029 = vrot.lane.b32.xlu1 %v1685_v54, %s8330_s29  ;;  %5241 = vmatmul.mubr.msk.f32.gmra.mxu0 %vm722_vm1, %v1685_v54 }
 0x3be   : > { %v1690_v57 = vpop.f32.mrf.mxu1  ;;  %1841 = vmatprep.mubr.f32.mxu0 %v8319_v4  ;;  %1894 = vmatprep.subr.mxu0 %v5921_v5 }
 0x3bf   : > { %v1691_v58 = vadd.f32 %v1690_v57, %v6262_v56  ;;  %1895 = vmatpush1.msra.mxu0 %v5927_v6 }
 0x3c0   : > { %v6268_v59 = vpop.f32.mrf.mxu1  ;;  %1896 = vmatprep.subr.mxu0 %v5934_v7 }
 0x3c1   : > { %2031 = vrot.lane.b32.xlu0 %v1691_v58, %s8330_s29  ;;  %5242 = vmatmul.mubr.msk.f32.gmra.mxu0 %vm722_vm1, %v1691_v58 }
 0x3c2   : > { %v1696_v33 = vpop.f32.mrf.mxu1  ;;  %1847 = vmatprep.mubr.f32.mxu0 %v8319_v4  ;;  %1897 = vmatpush1.msra.mxu0 %v5940_v8 }
 0x3c3   : > { %v1697_v62 = vadd.f32 %v1696_v33, %v6273_v60  ;;  %2176 = vmatprep.subr.mxu0 %v5888_v61 }
 0x3c4   : > { %v1698_v0 = vpop.f32.mrf.mxu1 }
 0x3c5   : > { %2033 = vrot.lane.b32.xlu1 %v1697_v62, %s8330_s29  ;;  %5243 = vmatmul.mubr.msk.f32.gmra.mxu0 %vm722_vm1, %v1697_v62 }
 0x3c6   : > { %v1702_v9 = vpop.f32.mrf.mxu1  ;;  %1853 = vmatprep.mubr.f32.mxu0 %v8319_v4 }
 0x3c7   : > { %v1703_v10 = vadd.f32 %v1702_v9, %v1571_v2  ;;  %v354_v9 = vld [vmem:[%s8311_s4 + $0x60] sm:$0xff] }
 0x3c8   : > { %v1704_v50 = vpop.f32.mrf.mxu1 }
 0x3c9   : > { %2035 = vrot.lane.b32.xlu0 %v1703_v10, %s8330_s29  ;;  %5244 = vmatmul.mubr.msk.f32.gmra.mxu0 %vm722_vm1, %v1703_v10 }
 0x3ca   : > { %v1708_v57 = vpop.f32.mrf.mxu1  ;;  %1859 = vmatprep.mubr.f32.mxu0 %v8319_v4 }
 0x3cb   : > { %v1709_v33 = vadd.f32 %v1708_v57, %v1576_v13  ;;  %v370_v57 = vld [vmem:[%s8311_s4 + $0xe0] sm:$0xff] }
 0x3cd   : > { %2037 = vrot.lane.b32.xlu1 %v1709_v33, %s8330_s29  ;;  %2313 = vrot.lane.b32.xlu0 %v6243_v51, %s5594_s14 }
 0x3ce   : > { %5245 = vmatmul.mubr.msk.f32.gmra.mxu0 %vm722_vm1, %v1709_v33 }
 0x3cf   : > { %1930 = vmatprep.mubr.f32.mxu0 %v8319_v4 }
 0x3d1   : > { %2315 = vrot.lane.b32.xlu1 %v1685_v54, %s5594_s14  ;;  %2317 = vrot.lane.b32.xlu0 %v1691_v58, %s5594_s14 }
 0x3d2   : > { %5246 = vmatmul.mubr.msk.f32.vlgmr.msra.gmra.mxu0 %vm722_vm1, %v6243_v51 }
 0x3d3   : > { %1936 = vmatprep.mubr.f32.mxu0 %v8319_v4  ;;  %2177 = vmatpush1.msra.mxu0 %v5897_v63 }
 0x3d4   : > { %2178 = vmatprep.subr.mxu0 %v5906_v1 }
 0x3d5   : > { %2319 = vrot.lane.b32.xlu1 %v1697_v62, %s5594_s14  ;;  %2321 = vrot.lane.b32.xlu0 %v1703_v10, %s5594_s14 }
 0x3d6   : > { %5247 = vmatmul.mubr.msk.f32.gmra.mxu0 %vm722_vm1, %v1685_v54 }
 0x3d7   : > { %1942 = vmatprep.mubr.f32.mxu0 %v8319_v4  ;;  %2179 = vmatpush1.msra.mxu0 %v5915_v3 }
 0x3d8   : > { %2180 = vmatprep.subr.mxu0 %v5921_v5 }
 0x3d9   : > { %2323 = vrot.lane.b32.xlu1 %v1709_v33, %s5594_s14  ;;  %2599 = vrot.lane.b32.xlu0 %v6243_v51, %s8317_s17  ;;  %v6321_v51 = vadd.f32 %v6245_v52, %v6240_v49  ;;  %v6342_v49 = vadd.f32 %v1698_v0, %v6273_v60  ;;  %v6344_v52 = vadd.f32 %v1704_v50, %v1571_v2  ;;  %v365_v60 = vld [vmem:[%s8311_s4 + $0xb8] sm:$0xff]  ;;  %v366_v0 = vld [vmem:[%s8311_s4 + $0xc0] sm:$0xff] }
 0x3da   : > { %5248 = vmatmul.mubr.msk.f32.gmra.mxu0 %vm722_vm1, %v1691_v58  ;;  %v367_v2 = vld [vmem:[%s8311_s4 + $0xc8] sm:$0xff]  ;;  %v368_v50 = vld [vmem:[%s8311_s4 + $0xd0] sm:$0xff] }
 0x3db   : > { %1948 = vmatprep.mubr.f32.mxu0 %v8319_v4  ;;  %2181 = vmatpush1.msra.mxu0 %v5927_v6 }
 0x3dc   : > { %2182 = vmatprep.subr.mxu0 %v5934_v7 }
 0x3dd   : > { %2601 = vrot.lane.b32.xlu1 %v1685_v54, %s8317_s17  ;;  %2603 = vrot.lane.b32.xlu0 %v1691_v58, %s8317_s17  ;;  %v6330_v54 = vadd.f32 %v6257_v55, %v6251_v53  ;;  %v6334_v58 = vadd.f32 %v6268_v59, %v6262_v56  ;;  %v362_v55 = vld [vmem:[%s8311_s4 + $0xa0] sm:$0xff]  ;;  %v363_v56 = vld [vmem:[%s8311_s4 + $0xa8] sm:$0xff] }
 0x3de   : > { %5249 = vmatmul.mubr.msk.f32.gmra.mxu0 %vm722_vm1, %v1697_v62  ;;  %v364_v59 = vld [vmem:[%s8311_s4 + $0xb0] sm:$0xff] }
 0x3df   : > { %1954 = vmatprep.mubr.f32.mxu0 %v8319_v4  ;;  %2183 = vmatpush1.msra.mxu0 %v5940_v8 }
 0x3e0   : > { %2462 = vmatprep.subr.mxu0 %v5888_v61 }
 0x3e1   : > { %2605 = vrot.lane.b32.xlu1 %v1697_v62, %s8317_s17  ;;  %2607 = vrot.lane.b32.xlu0 %v1703_v10, %s8317_s17  ;;  %v1710_v62 = vpop.f32.mrf.mxu1 }
 0x3e2   : > { %5250 = vmatmul.mubr.msk.f32.gmra.mxu0 %vm722_vm1, %v1703_v10  ;;  %v6350_v53 = vadd.f32 %v1710_v62, %v1576_v13  ;;  %v355_v10 = vld [vmem:[%s8311_s4 + $0x68] sm:$0xff]  ;;  %v369_v13 = vld [vmem:[%s8311_s4 + $0xd8] sm:$0xff] }
 0x3e3   : > { %1960 = vmatprep.mubr.f32.mxu0 %v8319_v4 }
 0x3e5   : > { %2609 = vrot.lane.b32.xlu1 %v1709_v33, %s8317_s17  ;;  %3159 = vrot.lane.b32.xlu0 %v6321_v51, %s8330_s29 }
 0x3e6   : > { %5251 = vmatmul.mubr.msk.f32.gmra.mxu0 %vm722_vm1, %v1709_v33  ;;  %v371_v33 = vld [vmem:[%s8311_s4 + $0xe8] sm:$0xff] }
 0x3e7   : > { %2216 = vmatprep.mubr.f32.mxu0 %v8319_v4 }
 0x3e9   : > { %3161 = vrot.lane.b32.xlu1 %v6330_v54, %s8330_s29  ;;  %3163 = vrot.lane.b32.xlu0 %v6334_v58, %s8330_s29 }
 0x3ed   : > { %3165 = vrot.lane.b32.xlu1 %v6342_v49, %s8330_s29  ;;  %3167 = vrot.lane.b32.xlu0 %v6344_v52, %s8330_s29 }
 0x3f1   : > { %3169 = vrot.lane.b32.xlu1 %v6350_v53, %s8330_s29  ;;  %3445 = vrot.lane.b32.xlu0 %v6321_v51, %s5594_s14 }
 0x3f5   : > { %3447 = vrot.lane.b32.xlu1 %v6330_v54, %s5594_s14  ;;  %3449 = vrot.lane.b32.xlu0 %v6334_v58, %s5594_s14 }
 0x3f9   : > { %3451 = vrot.lane.b32.xlu1 %v6342_v49, %s5594_s14  ;;  %3453 = vrot.lane.b32.xlu0 %v6344_v52, %s5594_s14 }
 0x3fd   : > { %3455 = vrot.lane.b32.xlu1 %v6350_v53, %s5594_s14  ;;  %3731 = vrot.lane.b32.xlu0 %v6321_v51, %s8317_s17 }
 0x401   : > { %3733 = vrot.lane.b32.xlu1 %v6330_v54, %s8317_s17  ;;  %3735 = vrot.lane.b32.xlu0 %v6334_v58, %s8317_s17 }
 0x405   : > { %3737 = vrot.lane.b32.xlu1 %v6342_v49, %s8317_s17  ;;  %3739 = vrot.lane.b32.xlu0 %v6344_v52, %s8317_s17 }
 0x409   : > { %1141 = vperm.xlu1 %5458, %v362_v55   ;;  %3741 = vrot.lane.b32.xlu0 %v6350_v53, %s8317_s17  ;;  %s5403_s17 = smul.u32 192, %s7575_s21 }
 0x40b   : > { %s7628_s16 = scalar_lea.vmem [#allocation6], %s5403_s17 }
 0x40c   : > { %s5089_s24 = sshll.u32 %s7628_s16, 4  ;;  %s8208_s24 = int_to_ptr.vmem [resolvable:$true] %s5089_s24 }
 0x40d   : > { %1146 = vperm.xlu1 %5458, %v363_v56   ;;  %1151 = vperm.xlu0 %5457, %v364_v59   ;;  %s5499_s23 = scalar_lea.vmem %s8208_s24, 3072 }
 0x40e   : > { %p5500_p11 = scmp.ne.s32.totalorder %s8208_s24, %s5499_s23 }
 0x410   : > { %p5501_p12 = pnand %p5500_p11, %p5689_p5 }
 0x411   : > { %1156 = vperm.xlu1 %5458, %v365_v60   ;;  %1161 = vperm.xlu0 %5457, %v366_v0   ;;  %v6450_v0 = vpop.f32.mrf.mxu0 }
 0x412   : > { %8357 = vst [vmem:[#allocation29_spill] sm:$0xff] %v6450_v0  ;;  %p5502_p13 = pneg %p5501_p12 }
 0x415   : > { %1166 = vperm.xlu1 %5458, %v367_v2   ;;  %1580 = vperm.xlu0 %5457, %v354_v9  }
 0x419   : > { %1585 = vperm.xlu1 %5458, %v355_v10   ;;  %4815 = vperm.xlu0 %5457, %v368_v50  }
 0x41d   : > { %4820 = vperm.xlu1 %5458, %v369_v13   ;;  %4827 = vperm.xlu0 %5457, %v370_v57  }
 0x421   : > { %4832 = vperm.xlu1 %5458, %v371_v33  }
 0x42b   : > { %v2028_v62 = vpop.permute.xlu0 %2027 }
 0x42c   : > { %5252 = vmatmul.mubr.msk.f32.vlgmr.msra.gmra.mxu1 %vm722_vm1, %v2028_v62  ;;  %5258 = vmatmul.mubr.msk.f32.vlgmr.msra.gmra.mxu0 %vm722_vm1, %v2028_v62 }
 0x42d   : > { %2121 = vmatprep.mubr.f32.mxu1 %v8319_v4  ;;  %2222 = vmatprep.mubr.f32.mxu0 %v8319_v4 }
 0x42e   : > { %2362 = vmatpush1.msra.mxu1 %v5987_v38  ;;  %2463 = vmatpush1.msra.mxu0 %v5897_v63 }
 0x42f   : > { %v2030_v55 = vpop.permute.xlu1 %2029  ;;  %2363 = vmatprep.subr.mxu1 %v5992_v39  ;;  %2464 = vmatprep.subr.mxu0 %v5906_v1 }
 0x430   : > { %5253 = vmatmul.mubr.msk.f32.gmra.mxu1 %vm722_vm1, %v2030_v55  ;;  %5259 = vmatmul.mubr.msk.f32.gmra.mxu0 %vm722_vm1, %v2030_v55 }
 0x431   : > { %2127 = vmatprep.mubr.f32.mxu1 %v8319_v4  ;;  %2228 = vmatprep.mubr.f32.mxu0 %v8319_v4 }
 0x432   : > { %2364 = vmatpush1.msra.mxu1 %v5999_v40  ;;  %2465 = vmatpush1.msra.mxu0 %v5915_v3 }
 0x433   : > { %v2032_v56 = vpop.permute.xlu0 %2031  ;;  %2365 = vmatprep.subr.mxu1 %v6006_v41  ;;  %2466 = vmatprep.subr.mxu0 %v5921_v5 }
 0x434   : > { %5254 = vmatmul.mubr.msk.f32.gmra.mxu1 %vm722_vm1, %v2032_v56  ;;  %5260 = vmatmul.mubr.msk.f32.gmra.mxu0 %vm722_vm1, %v2032_v56 }
 0x435   : > { %2133 = vmatprep.mubr.f32.mxu1 %v8319_v4  ;;  %2234 = vmatprep.mubr.f32.mxu0 %v8319_v4 }
 0x436   : > { %2366 = vmatpush1.msra.mxu1 %v6012_v42  ;;  %2467 = vmatpush1.msra.mxu0 %v5927_v6 }
 0x437   : > { %v2034_v59 = vpop.permute.xlu1 %2033  ;;  %2367 = vmatprep.subr.mxu1 %v6019_v43  ;;  %2468 = vmatprep.subr.mxu0 %v5934_v7 }
 0x438   : > { %5255 = vmatmul.mubr.msk.f32.gmra.mxu1 %vm722_vm1, %v2034_v59  ;;  %5261 = vmatmul.mubr.msk.f32.gmra.mxu0 %vm722_vm1, %v2034_v59  ;;  %v6507_v59 = vld [vmem:[%s8313_s6 + $0x78] sm:$0xff] }
 0x439   : > { %2139 = vmatprep.mubr.f32.mxu1 %v8319_v4  ;;  %2240 = vmatprep.mubr.f32.mxu0 %v8319_v4 }
 0x43a   : > { %2368 = vmatpush1.msra.mxu1 %v6026_v44  ;;  %2469 = vmatpush1.msra.mxu0 %v5940_v8 }
 0x43b   : > { %v2036_v60 = vpop.permute.xlu0 %2035  ;;  %2647 = vmatprep.subr.mxu1 %v5977_v35  ;;  %2748 = vmatprep.subr.mxu0 %v5888_v61  ;;  %v6456_v61 = vpop.f32.mrf.mxu0 }
 0x43c   : > { %5256 = vmatmul.mubr.msk.f32.gmra.mxu1 %vm722_vm1, %v2036_v60  ;;  %5262 = vmatmul.mubr.msk.f32.gmra.mxu0 %vm722_vm1, %v2036_v60  ;;  %8358 = vst [vmem:[#allocation30_spill] sm:$0xff] %v6456_v61 }
 0x43d   : > { %2145 = vmatprep.mubr.f32.mxu1 %v8319_v4  ;;  %2246 = vmatprep.mubr.f32.mxu0 %v8319_v4  ;;  %v6464_v50 = vpop.f32.mrf.mxu0 }
 0x43e   : > { %8359 = vst [vmem:[#allocation31_spill] sm:$0xff] %v6464_v50 }
 0x43f   : > { %v2038_v2 = vpop.permute.xlu1 %2037  ;;  %v2314_v9 = vpop.permute.xlu0 %2313 }
 0x440   : > { %5257 = vmatmul.mubr.msk.f32.gmra.mxu1 %vm722_vm1, %v2038_v2  ;;  %5263 = vmatmul.mubr.msk.f32.gmra.mxu0 %vm722_vm1, %v2038_v2 }
 0x441   : > { %2401 = vmatprep.mubr.f32.mxu1 %v8319_v4  ;;  %2502 = vmatprep.mubr.f32.mxu0 %v8319_v4 }
 0x443   : > { %v2316_v8 = vpop.permute.xlu1 %2315  ;;  %v2318_v10 = vpop.permute.xlu0 %2317 }
 0x444   : > { %5264 = vmatmul.mubr.msk.f32.vlgmr.msra.gmra.mxu1 %vm722_vm1, %v2314_v9  ;;  %5270 = vmatmul.mubr.msk.f32.vlgmr.msra.gmra.mxu0 %vm722_vm1, %v2314_v9 }
 0x445   : > { %2407 = vmatprep.mubr.f32.mxu1 %v8319_v4  ;;  %2508 = vmatprep.mubr.f32.mxu0 %v8319_v4 }
 0x446   : > { %2648 = vmatpush1.msra.mxu1 %v5987_v38  ;;  %2749 = vmatpush1.msra.mxu0 %v5897_v63  ;;  %v6474_v63 = vpop.f32.mrf.mxu0 }
 0x447   : > { %v2320_v13 = vpop.permute.xlu1 %2319  ;;  %v2322_v57 = vpop.permute.xlu0 %2321  ;;  %2649 = vmatprep.subr.mxu1 %v5992_v39  ;;  %2750 = vmatprep.subr.mxu0 %v5906_v1  ;;  %8360 = vst [vmem:[#allocation32_spill] sm:$0xff] %v6474_v63 }
 0x448   : > { %5265 = vmatmul.mubr.msk.f32.gmra.mxu1 %vm722_vm1, %v2316_v8  ;;  %5271 = vmatmul.mubr.msk.f32.gmra.mxu0 %vm722_vm1, %v2316_v8  ;;  %v6484_v1 = vpop.f32.mrf.mxu0 }
 0x449   : > { %2413 = vmatprep.mubr.f32.mxu1 %v8319_v4  ;;  %2514 = vmatprep.mubr.f32.mxu0 %v8319_v4  ;;  %8361 = vst [vmem:[#allocation33_spill] sm:$0xff] %v6484_v1 }
 0x44a   : > { %2650 = vmatpush1.msra.mxu1 %v5999_v40  ;;  %2751 = vmatpush1.msra.mxu0 %v5915_v3 }
 0x44b   : > { %v2324_v33 = vpop.permute.xlu1 %2323  ;;  %v2600_v62 = vpop.permute.xlu0 %2599  ;;  %2651 = vmatprep.subr.mxu1 %v6006_v41  ;;  %2752 = vmatprep.subr.mxu0 %v5921_v5 }
 0x44c   : > { %5266 = vmatmul.mubr.msk.f32.gmra.mxu1 %vm722_vm1, %v2318_v10  ;;  %5272 = vmatmul.mubr.msk.f32.gmra.mxu0 %vm722_vm1, %v2318_v10  ;;  %v6492_v5 = vpop.f32.mrf.mxu0 }
 0x44d   : > { %2419 = vmatprep.mubr.f32.mxu1 %v8319_v4  ;;  %2520 = vmatprep.mubr.f32.mxu0 %v8319_v4  ;;  %8362 = vst [vmem:[#allocation34_spill] sm:$0xff] %v6492_v5  ;;  %v6678_v5 = vld [vmem:[%s8313_s6 + $0x40] sm:$0xff] }
 0x44e   : > { %2652 = vmatpush1.msra.mxu1 %v6012_v42  ;;  %2753 = vmatpush1.msra.mxu0 %v5927_v6  ;;  %v6498_v6 = vld [vmem:[%s8313_s6 + $0x10] sm:$0xff]  ;;  %v6514_v60 = vpop.f32.mrf.mxu0 }
 0x44f   : > { %v2602_v3 = vpop.permute.xlu1 %2601  ;;  %v2604_v55 = vpop.permute.xlu0 %2603  ;;  %2653 = vmatprep.subr.mxu1 %v6019_v43  ;;  %2754 = vmatprep.subr.mxu0 %v5934_v7  ;;  %8363 = vst [vmem:[#allocation35_spill] sm:$0xff] %v6514_v60  ;;  %v6659_v60 = vld [vmem:[%s8313_s6 + $0x48] sm:$0xff] }
 0x450   : > { %5267 = vmatmul.mubr.msk.f32.gmra.mxu1 %vm722_vm1, %v2320_v13  ;;  %5273 = vmatmul.mubr.msk.f32.gmra.mxu0 %vm722_vm1, %v2320_v13  ;;  %v6524_v9 = vpop.f32.mrf.mxu0 }
 0x451   : > { %2425 = vmatprep.mubr.f32.mxu1 %v8319_v4  ;;  %2526 = vmatprep.mubr.f32.mxu0 %v8319_v4  ;;  %8364 = vst [vmem:[#allocation36_spill] sm:$0xff] %v6524_v9  ;;  %v6652_v9 = vld [vmem:[%s8313_s6 + $0x60] sm:$0xff] }
 0x452   : > { %2654 = vmatpush1.msra.mxu1 %v6026_v44  ;;  %2755 = vmatpush1.msra.mxu0 %v6498_v6  ;;  %v6534_v13 = vpop.f32.mrf.mxu0 }
 0x453   : > { %v2606_v7 = vpop.permute.xlu1 %2605  ;;  %v6501_v56 = vpop.permute.xlu0 %2607  ;;  %2921 = vmatprep.subr.mxu1 %v5977_v35  ;;  %3022 = vmatprep.subr.mxu0 %v6507_v59  ;;  %8365 = vst [vmem:[#allocation37_spill] sm:$0xff] %v6534_v13 }
 0x454   : > { %5268 = vmatmul.mubr.msk.f32.gmra.mxu1 %vm722_vm1, %v2322_v57  ;;  %5274 = vmatmul.mubr.msk.f32.gmra.mxu0 %vm722_vm1, %v2322_v57  ;;  %v6540_v57 = vld [vmem:[%s8313_s6 + $0x70] sm:$0xff] }
 0x455   : > { %2431 = vmatprep.mubr.f32.mxu1 %v8319_v4  ;;  %2532 = vmatprep.mubr.f32.mxu0 %v8319_v4 }
 0x457   : > { %v6516_v2 = vpop.permute.xlu1 %2609  ;;  %v6518_v35 = vpop.permute.xlu0 %3159 }
 0x458   : > { %5269 = vmatmul.mubr.msk.f32.gmra.mxu1 %vm722_vm1, %v2324_v33  ;;  %5275 = vmatmul.mubr.msk.f32.gmra.mxu0 %vm722_vm1, %v2324_v33 }
 0x459   : > { %2687 = vmatprep.mubr.f32.mxu1 %v8319_v4  ;;  %2788 = vmatprep.mubr.f32.mxu0 %v8319_v4 }
 0x45b   : > { %v6526_v8 = vpop.permute.xlu1 %3161  ;;  %v6528_v10 = vpop.permute.xlu0 %3163 }
 0x45c   : > { %5276 = vmatmul.mubr.msk.f32.vlgmr.msra.gmra.mxu1 %vm722_vm1, %v2600_v62  ;;  %5282 = vmatmul.mubr.msk.f32.vlgmr.msra.gmra.mxu0 %vm722_vm1, %v2600_v62  ;;  %v6551_v62 = vld [vmem:[%s8313_s6 + $0x58] sm:$0xff] }
 0x45d   : > { %2693 = vmatprep.mubr.f32.mxu1 %v8319_v4  ;;  %2794 = vmatprep.mubr.f32.mxu0 %v8319_v4 }
 0x45e   : > { %2922 = vmatpush1.msra.mxu1 %v5987_v38  ;;  %3023 = vmatpush1.msra.mxu0 %v6540_v57  ;;  %v6558_v38 = vpop.f32.mrf.mxu0 }
 0x45f   : > { %v6543_v33 = vpop.permute.xlu1 %3165  ;;  %v6545_v23 = vpop.permute.xlu0 %3167  ;;  %2923 = vmatprep.subr.mxu1 %v5992_v39  ;;  %3024 = vmatprep.subr.mxu0 %v6551_v62  ;;  %8366 = vst [vmem:[#allocation38_spill] sm:$0xff] %v6558_v38  ;;  %v6564_v39 = vld [vmem:[%s8313_s6 + $0x50] sm:$0xff] }
 0x460   : > { %5277 = vmatmul.mubr.msk.f32.gmra.mxu1 %vm722_vm1, %v2602_v3  ;;  %5283 = vmatmul.mubr.msk.f32.gmra.mxu0 %vm722_vm1, %v2602_v3  ;;  %v6575_v3 = vld [vmem:[%s8313_s6 + $0x38] sm:$0xff] }
 0x461   : > { %2699 = vmatprep.mubr.f32.mxu1 %v8319_v4  ;;  %2800 = vmatprep.mubr.f32.mxu0 %v8319_v4 }
 0x462   : > { %2924 = vmatpush1.msra.mxu1 %v5999_v40  ;;  %3025 = vmatpush1.msra.mxu0 %v6564_v39  ;;  %v6582_v40 = vpop.f32.mrf.mxu0 }
 0x463   : > { %v6567_v22 = vpop.permute.xlu1 %3169  ;;  %v6569_v13 = vpop.permute.xlu0 %3445  ;;  %2925 = vmatprep.subr.mxu1 %v6006_v41  ;;  %3026 = vmatprep.subr.mxu0 %v6575_v3  ;;  %8367 = vst [vmem:[#allocation39_spill] sm:$0xff] %v6582_v40  ;;  %v6588_v41 = vld [vmem:[%s8313_s6 + $0x30] sm:$0xff] }
 0x464   : > { %5278 = vmatmul.mubr.msk.f32.gmra.mxu1 %vm722_vm1, %v2604_v55  ;;  %5284 = vmatmul.mubr.msk.f32.gmra.mxu0 %vm722_vm1, %v2604_v55  ;;  %v6597_v55 = vld [vmem:[%s8313_s6 + $0x18] sm:$0xff]  ;;  %v6606_v40 = vpop.f32.mrf.mxu0 }
 0x465   : > { %2705 = vmatprep.mubr.f32.mxu1 %v8319_v4  ;;  %2806 = vmatprep.mubr.f32.mxu0 %v8319_v4  ;;  %8369 = vst [vmem:[#allocation40_spill] sm:$0xff] %v6606_v40 }
 0x466   : > { %2926 = vmatpush1.msra.mxu1 %v6012_v42  ;;  %3027 = vmatpush1.msra.mxu0 %v6588_v41  ;;  %v8368_v42 = vmov 0.0  }
 0x467   : > { %v6591_v38 = vpop.permute.xlu0 %3449  ;;  %2927 = vmatprep.subr.mxu1 %v6019_v43  ;;  %3028 = vmatprep.subr.mxu0 %v6597_v55  ;;  %v6600_v4 = vpop.permute.xlu1 %3447  ;;  %v6613_v43 = vld [vmem:[%s8313_s6 + $0x68] sm:$0xff] }
 0x468   : > { %5279 = vmatmul.mubr.msk.f32.gmra.mxu1 %vm722_vm1, %v2606_v7  ;;  %5285 = vmatmul.mubr.msk.f32.gmra.mxu0 %vm722_vm1, %v2606_v7 }
 0x469   : > { %2711 = vmatprep.mubr.f32.mxu1 %v8368_v42  ;;  %2812 = vmatprep.mubr.f32.mxu0 %v8368_v42 }
 0x46a   : > { %2928 = vmatpush1.msra.mxu1 %v6026_v44  ;;  %3029 = vmatpush1.msra.mxu0 %v6498_v6  ;;  %v6625_v44 = vpop.f32.mrf.mxu0 }
 0x46b   : > { %3207 = vmatprep.subr.mxu1 %v6613_v43  ;;  %3308 = vmatprep.subr.mxu0 %v6507_v59  ;;  %v6617_v7 = vpop.permute.xlu0 %3453  ;;  %v6627_v40 = vpop.permute.xlu1 %3451 }
 0x46c   : > { %5280 = vmatmul.mubr.msk.f32.gmra.mxu1 %vm722_vm1, %v6501_v56  ;;  %5286 = vmatmul.mubr.msk.f32.gmra.mxu0 %vm722_vm1, %v6501_v56  ;;  %v6635_v21 = vpop.f32.mrf.mxu0 }
 0x46d   : > { %2717 = vmatprep.mubr.f32.mxu1 %v8368_v42  ;;  %2818 = vmatprep.mubr.f32.mxu0 %v8368_v42 }
 0x46f   : > { %v6637_v56 = vpop.permute.xlu0 %3731  ;;  %v6639_v20 = vpop.permute.xlu1 %3455 }
 0x470   : > { %5281 = vmatmul.mubr.msk.f32.gmra.mxu1 %vm722_vm1, %v6516_v2  ;;  %5287 = vmatmul.mubr.msk.f32.gmra.mxu0 %vm722_vm1, %v6516_v2  ;;  %v6647_v2 = vpop.f32.mrf.mxu0 }
 0x471   : > { %2961 = vmatprep.mubr.f32.mxu1 %v8368_v42  ;;  %3062 = vmatprep.mubr.f32.mxu0 %v8368_v42 }
 0x472   : > { %v6671_v19 = vpop.f32.mrf.mxu0 }
 0x473   : > { %v6673_v18 = vpop.permute.xlu1 %3733 }
 0x474   : > { %5288 = vmatmul.mubr.msk.f32.vlgmr.msra.gmra.mxu1 %vm722_vm1, %v6321_v51  ;;  %5294 = vmatmul.mubr.msk.f32.vlgmr.msra.gmra.mxu0 %vm722_vm1, %v6321_v51  ;;  %v6663_v51 = vpop.permute.xlu0 %3735  ;;  %v6695_v1 = vpop.f32.mrf.mxu0 }
 0x475   : > { %2967 = vmatprep.mubr.f32.mxu1 %v8368_v42  ;;  %3068 = vmatprep.mubr.f32.mxu0 %v8368_v42 }
 0x476   : > { %3208 = vmatpush1.msra.mxu1 %v6652_v9  ;;  %3309 = vmatpush1.msra.mxu0 %v6540_v57  ;;  %v6721_v50 = vpop.f32.mrf.mxu0 }
 0x477   : > { %3209 = vmatprep.subr.mxu1 %v6659_v60  ;;  %3310 = vmatprep.subr.mxu0 %v6551_v62  ;;  %v6713_v63 = vpop.permute.xlu1 %3737 }
 0x478   : > { %5289 = vmatmul.mubr.msk.f32.gmra.mxu1 %vm722_vm1, %v6330_v54  ;;  %5295 = vmatmul.mubr.msk.f32.gmra.mxu0 %vm722_vm1, %v6330_v54  ;;  %v6685_v54 = vld [vmem:[%s8313_s6 + $0x28] sm:$0xff]  ;;  %v6697_v17 = vpop.permute.xlu0 %3739  ;;  %v6741_v61 = vpop.f32.mrf.mxu0 }
 0x479   : > { %2973 = vmatprep.mubr.f32.mxu1 %v8368_v42  ;;  %3074 = vmatprep.mubr.f32.mxu0 %v8368_v42  ;;  %8370 = vst [vmem:[#allocation41_spill] sm:$0xff] %v6741_v61 }
 0x47a   : > { %3210 = vmatpush1.msra.mxu1 %v6678_v5  ;;  %3311 = vmatpush1.msra.mxu0 %v6564_v39  ;;  %v6753_v11 = vpop.f32.mrf.mxu0 }
 0x47b   : > { %3211 = vmatprep.subr.mxu1 %v6685_v54  ;;  %3312 = vmatprep.subr.mxu0 %v6575_v3 }
 0x47c   : > { %5290 = vmatmul.mubr.msk.f32.gmra.mxu1 %vm722_vm1, %v6334_v58  ;;  %5296 = vmatmul.mubr.msk.f32.gmra.mxu0 %vm722_vm1, %v6334_v58  ;;  %v6709_v58 = vld [vmem:[%s8313_s6 + $0x8] sm:$0xff]  ;;  %v6764_v36 = vpop.f32.mrf.mxu0 }
 0x47d   : > { %2979 = vmatprep.mubr.f32.mxu1 %v8368_v42  ;;  %3080 = vmatprep.mubr.f32.mxu0 %v8368_v42 }
 0x47e   : > { %3212 = vmatpush1.msra.mxu1 %v6702_v16  ;;  %3313 = vmatpush1.msra.mxu0 %v6588_v41  ;;  %v6774_v46 = vpop.f32.mrf.mxu0 }
 0x47f   : > { %3213 = vmatprep.subr.mxu1 %v6709_v58  ;;  %3314 = vmatprep.subr.mxu0 %v6597_v55 }
 0x480   : > { %5291 = vmatmul.mubr.msk.f32.gmra.mxu1 %vm722_vm1, %v6342_v49  ;;  %5297 = vmatmul.mubr.msk.f32.gmra.mxu0 %vm722_vm1, %v6342_v49  ;;  %v6732_v49 = vpop.permute.xlu0 %3741 }
 0x481   : > { %2985 = vmatprep.mubr.f32.mxu1 %v8368_v42  ;;  %3086 = vmatprep.mubr.f32.mxu0 %v8368_v42 }
 0x482   : > { %3214 = vmatpush1.msra.mxu1 %v6726_v15  ;;  %3315 = vmatpush1.msra.mxu0 %v6498_v6 }
 0x483   : > { %3493 = vmatprep.subr.mxu1 %v6613_v43  ;;  %3594 = vmatprep.subr.mxu0 %v6507_v59 }
 0x484   : > { %v6734_v14 = vpop.permute.xlu1 %1141  ;;  %5292 = vmatmul.mubr.msk.f32.gmra.mxu1 %vm722_vm1, %v6344_v52  ;;  %5298 = vmatmul.mubr.msk.f32.gmra.mxu0 %vm722_vm1, %v6344_v52  ;;  %v1714_v52 = vpop.f32.mrf.mxu1 }
 0x485   : > { %2991 = vmatprep.mubr.f32.mxu1 %v8368_v42  ;;  %3092 = vmatprep.mubr.f32.mxu0 %v8368_v42 }
 0x488   : > { %v6744_v0 = vpop.permute.xlu1 %1146  ;;  %5293 = vmatmul.mubr.msk.f32.gmra.mxu1 %vm722_vm1, %v6350_v53  ;;  %v6748_v12 = vpop.permute.xlu0 %1151  ;;  %5299 = vmatmul.mubr.msk.f32.gmra.mxu0 %vm722_vm1, %v6350_v53 }
 0x489   : > { %3247 = vmatprep.mubr.f32.mxu1 %v8368_v42  ;;  %3348 = vmatprep.mubr.f32.mxu0 %v8368_v42  ;;  %v1716_v53 = vpop.f32.mrf.mxu1 }
 0x48c   : > { %v6756_v47 = vpop.permute.xlu1 %1156  ;;  %5300 = vmatmul.mubr.msk.f32.vlgmr.msra.gmra.mxu1 %vm722_vm1, %v6518_v35  ;;  %v6760_v48 = vpop.permute.xlu0 %1161  ;;  %5306 = vmatmul.mubr.msk.f32.vlgmr.msra.gmra.mxu0 %vm722_vm1, %v6518_v35 }
 0x48d   : > { %3253 = vmatprep.mubr.f32.mxu1 %v8368_v42  ;;  %3354 = vmatprep.mubr.f32.mxu0 %v8368_v42  ;;  %v1720_v35 = vpop.f32.mrf.mxu1 }
 0x48e   : > { %3494 = vmatpush1.msra.mxu1 %v6652_v9  ;;  %3595 = vmatpush1.msra.mxu0 %v6540_v57 }
 0x48f   : > { %3495 = vmatprep.subr.mxu1 %v6659_v60  ;;  %3596 = vmatprep.subr.mxu0 %v6551_v62 }
 0x490   : > { %v6768_v45 = vpop.permute.xlu1 %1166  ;;  %5301 = vmatmul.mubr.msk.f32.gmra.mxu1 %vm722_vm1, %v6526_v8  ;;  %v1581_v37 = vpop.permute.xlu0 %1580  ;;  %5307 = vmatmul.mubr.msk.f32.gmra.mxu0 %vm722_vm1, %v6526_v8 }
 0x491   : > { %8371 = vst [vmem:[#allocation42_spill] sm:$0xff] %v6768_v45  ;;  %v6776_v32 = vadd.f32 %v1714_v52, %v1581_v37  ;;  %3259 = vmatprep.mubr.f32.mxu1 %v8368_v42  ;;  %3360 = vmatprep.mubr.f32.mxu0 %v8368_v42  ;;  %v6790_v8 = vpop.f32.mrf.mxu0  ;;  %v6820_v52 = vadd.f32 %v1716_v53, %v1581_v37  ;;  %v446_v53 = vld [vmem:[%s8314_s7 + $0x150] sm:$0xff] }
 0x492   : > { %3496 = vmatpush1.msra.mxu1 %v6678_v5  ;;  %3597 = vmatpush1.msra.mxu0 %v6564_v39 }
 0x493   : > { %8372 = vst [vmem:[#allocation43_spill] sm:$0xff] %v6776_v32  ;;  %4855 = vrot.lane.b32.xlu0 %v6776_v32, %s8330_s29  ;;  %8375 = vst [vmem:[#allocation45_spill] sm:$0xff] %v6820_v52  ;;  %3497 = vmatprep.subr.mxu1 %v6685_v54 }
 0x494   : > { %v1586_v45 = vpop.permute.xlu1 %1585  ;;  %5302 = vmatmul.mubr.msk.f32.gmra.mxu1 %vm722_vm1, %v6528_v10  ;;  %5308 = vmatmul.mubr.msk.f32.gmra.mxu0 %vm722_vm1, %v6528_v10  ;;  %v6804_v10 = vpop.f32.mrf.mxu0 }
 0x495   : > { %v6784_v61 = vadd.f32 %v1720_v35, %v1586_v45  ;;  %3265 = vmatprep.mubr.f32.mxu1 %v8368_v42  ;;  %3366 = vmatprep.mubr.f32.mxu0 %v8368_v42  ;;  %v1722_v35 = vpop.f32.mrf.mxu1 }
 0x496   : > { %3598 = vmatprep.subr.mxu0 %v6575_v3  ;;  %3498 = vmatpush1.msra.mxu1 %v6702_v16  ;;  %v6834_v37 = vadd.f32 %v1722_v35, %v1586_v45  ;;  %v478_v35 = vld [vmem:[%s8314_s7 + $0x250] sm:$0xff] }
 0x497   : > { %8373 = vst [vmem:[#allocation44_spill] sm:$0xff] %v6784_v61  ;;  %4857 = vrot.lane.b32.xlu1 %v6784_v61, %s8330_s29  ;;  %4888 = vrot.lane.b32.xlu0 %v6776_v32, %s5594_s14 }
 0x498   : > { %5303 = vmatmul.mubr.msk.f32.gmra.mxu1 %vm722_vm1, %v6543_v33  ;;  %5309 = vmatmul.mubr.msk.f32.gmra.mxu0 %vm722_vm1, %v6543_v33  ;;  %v6818_v33 = vpop.f32.mrf.mxu0  ;;  %8376 = vst [vmem:[#allocation46_spill] sm:$0xff] %v6834_v37 }
 0x499   : > { %3271 = vmatprep.mubr.f32.mxu1 %v8368_v42  ;;  %3372 = vmatprep.mubr.f32.mxu0 %v8368_v42 }
 0x49a   : > { %3599 = vmatpush1.msra.mxu0 %v6588_v41  ;;  %3499 = vmatprep.subr.mxu1 %v6709_v58 }
 0x49b   : > { %4890 = vrot.lane.b32.xlu1 %v6784_v61, %s5594_s14  ;;  %4921 = vrot.lane.b32.xlu0 %v6776_v32, %s8374_s28 }
 0x49c   : > { %5304 = vmatmul.mubr.msk.f32.gmra.mxu1 %vm722_vm1, %v6545_v23  ;;  %5310 = vmatmul.mubr.msk.f32.gmra.mxu0 %vm722_vm1, %v6545_v23  ;;  %v6832_v23 = vpop.f32.mrf.mxu0 }
 0x49d   : > { %3277 = vmatprep.mubr.f32.mxu1 %v8368_v42  ;;  %3378 = vmatprep.mubr.f32.mxu0 %v8368_v42 }
 0x49e   : > { %3600 = vmatprep.subr.mxu0 %v6597_v55  ;;  %3500 = vmatpush1.msra.mxu1 %v6726_v15  ;;  %v6848_v45 = vpop.f32.mrf.mxu0 }
 0x49f   : > { %4923 = vrot.lane.b32.xlu1 %v6784_v61, %s8374_s28  ;;  %4970 = vrot.lane.b32.xlu0 %v6820_v52, %s8330_s29 }
 0x4a0   : > { %5305 = vmatmul.mubr.msk.f32.gmra.mxu1 %vm722_vm1, %v6567_v22  ;;  %5311 = vmatmul.mubr.msk.f32.gmra.mxu0 %vm722_vm1, %v6567_v22  ;;  %v6862_v22 = vpop.f32.mrf.mxu0 }
 0x4a1   : > { %3533 = vmatprep.mubr.f32.mxu1 %v8368_v42  ;;  %3601 = vmatpush1.msra.mxu0 %v6498_v6 }
 0x4a2   : > { %3634 = vmatprep.mubr.f32.mxu0 %v8368_v42  ;;  %3779 = vmatprep.subr.mxu1 %v6613_v43  ;;  %v6880_v43 = vpop.f32.mrf.mxu0 }
 0x4a3   : > { %4972 = vrot.lane.b32.xlu1 %v6834_v37, %s8330_s29  ;;  %5002 = vrot.lane.b32.xlu0 %v6820_v52, %s5594_s14 }
 0x4a4   : > { %5312 = vmatmul.mubr.msk.f32.vlgmr.msra.gmra.mxu1 %vm722_vm1, %v6569_v13  ;;  %5318 = vmatmul.mubr.msk.f32.vlgmr.msra.gmra.mxu0 %vm722_vm1, %v6569_v13  ;;  %v356_v13 = vld [vmem:[%s8311_s4 + $0x70] sm:$0xff] }
 0x4a5   : > { %3539 = vmatprep.mubr.f32.mxu1 %v8368_v42  ;;  %3640 = vmatprep.mubr.f32.mxu0 %v8368_v42 }
 0x4a6   : > { %3880 = vmatprep.subr.mxu0 %v6507_v59  ;;  %3780 = vmatpush1.msra.mxu1 %v6652_v9  ;;  %v357_v59 = vld [vmem:[%s8311_s4 + $0x78] sm:$0xff]  ;;  %v6893_v9 = vpop.f32.mrf.mxu0 }
 0x4a7   : > { %5004 = vrot.lane.b32.xlu1 %v6834_v37, %s5594_s14  ;;  %5034 = vrot.lane.b32.xlu0 %v6820_v52, %s8374_s28 }
 0x4a8   : > { %5313 = vmatmul.mubr.msk.f32.gmra.mxu1 %vm722_vm1, %v6600_v4  ;;  %5319 = vmatmul.mubr.msk.f32.gmra.mxu0 %vm722_vm1, %v6600_v4  ;;  %v358_v4 = vld [vmem:[%s8311_s4 + $0x80] sm:$0xff] }
 0x4a9   : > { %3545 = vmatprep.mubr.f32.mxu1 %v8368_v42  ;;  %3646 = vmatprep.mubr.f32.mxu0 %v8368_v42 }
 0x4aa   : > { %3881 = vmatpush1.msra.mxu0 %v6540_v57  ;;  %3781 = vmatprep.subr.mxu1 %v6659_v60  ;;  %v359_v57 = vld [vmem:[%s8311_s4 + $0x88] sm:$0xff]  ;;  %v6910_v60 = vpop.f32.mrf.mxu0 }
 0x4ab   : > { %5036 = vrot.lane.b32.xlu1 %v6834_v37, %s8374_s28  ;;  %1111 = vperm.xlu0 %5457, %v356_v13  }
 0x4ac   : > { %5314 = vmatmul.mubr.msk.f32.gmra.mxu1 %vm722_vm1, %v6591_v38  ;;  %5320 = vmatmul.mubr.msk.f32.gmra.mxu0 %vm722_vm1, %v6591_v38  ;;  %v360_v38 = vld [vmem:[%s8311_s4 + $0x90] sm:$0xff] }
 0x4ad   : > { %3551 = vmatprep.mubr.f32.mxu1 %v8368_v42  ;;  %3652 = vmatprep.mubr.f32.mxu0 %v8368_v42 }
 0x4ae   : > { %3882 = vmatprep.subr.mxu0 %v6551_v62  ;;  %3782 = vmatpush1.msra.mxu1 %v6678_v5  ;;  %v361_v62 = vld [vmem:[%s8311_s4 + $0x98] sm:$0xff]  ;;  %v6923_v5 = vpop.f32.mrf.mxu0 }
 0x4af   : > { %1116 = vperm.xlu1 %5458, %v357_v59   ;;  %1121 = vperm.xlu0 %5457, %v358_v4   ;;  %v477_v59 = vld [vmem:[%s8314_s7 + $0x248] sm:$0xff] }
 0x4b0   : > { %5315 = vmatmul.mubr.msk.f32.gmra.mxu1 %vm722_vm1, %v6627_v40  ;;  %5321 = vmatmul.mubr.msk.f32.gmra.mxu0 %vm722_vm1, %v6627_v40  ;;  %v449_v40 = vld [vmem:[%s8314_s7 + $0x168] sm:$0xff] }
 0x4b1   : > { %3883 = vmatpush1.msra.mxu0 %v6564_v39  ;;  %3557 = vmatprep.mubr.f32.mxu1 %v8368_v42  ;;  %v6935_v39 = vpop.f32.mrf.mxu0 }
 0x4b2   : > { %3658 = vmatprep.mubr.f32.mxu0 %v8368_v42  ;;  %3783 = vmatprep.subr.mxu1 %v6685_v54 }
 0x4b3   : > { %1126 = vperm.xlu1 %5458, %v359_v57   ;;  %1131 = vperm.xlu0 %5457, %v360_v38   ;;  %v444_v57 = vld [vmem:[%s8314_s7 + $0x140] sm:$0xff] }
 0x4b4   : > { %5316 = vmatmul.mubr.msk.f32.gmra.mxu1 %vm722_vm1, %v6617_v7  ;;  %5322 = vmatmul.mubr.msk.f32.gmra.mxu0 %vm722_vm1, %v6617_v7  ;;  %v448_v7 = vld [vmem:[%s8314_s7 + $0x160] sm:$0xff] }
 0x4b5   : > { %3884 = vmatprep.subr.mxu0 %v6575_v3  ;;  %3563 = vmatprep.mubr.f32.mxu1 %v8368_v42  ;;  %v6958_v3 = vpop.f32.mrf.mxu0  ;;  %v476_v38 = vld [vmem:[%s8314_s7 + $0x240] sm:$0xff] }
 0x4b6   : > { %3664 = vmatprep.mubr.f32.mxu0 %v8368_v42  ;;  %3784 = vmatpush1.msra.mxu1 %v6702_v16  ;;  %v451_v16 = vld [vmem:[%s8314_s7 + $0x178] sm:$0xff] }
 0x4b7   : > { %1136 = vperm.xlu1 %5458, %v361_v62   ;;  %3885 = vmatpush1.msra.mxu0 %v6588_v41  ;;  %v481_v41 = vld [vmem:[%s8314_s7 + $0x268] sm:$0xff] }
 0x4b8   : > { %5317 = vmatmul.mubr.msk.f32.gmra.mxu1 %vm722_vm1, %v6639_v20  ;;  %5323 = vmatmul.mubr.msk.f32.gmra.mxu0 %vm722_vm1, %v6639_v20  ;;  %v483_v20 = vld [vmem:[%s8314_s7 + $0x278] sm:$0xff] }
 0x4b9   : > { %3785 = vmatprep.subr.mxu1 %v6709_v58  ;;  %3886 = vmatprep.subr.mxu0 %v6597_v55  ;;  %v6971_v55 = vpop.f32.mrf.mxu0  ;;  %v479_v58 = vld [vmem:[%s8314_s7 + $0x258] sm:$0xff] }
 0x4ba   : > { %3786 = vmatpush1.msra.mxu1 %v6726_v15  ;;  %3887 = vmatpush1.msra.mxu0 %v6498_v6  ;;  %v450_v15 = vld [vmem:[%s8314_s7 + $0x170] sm:$0xff] }
 0x4bb   : > { %3819 = vmatprep.mubr.f32.mxu1 %v8368_v42  ;;  %3920 = vmatprep.mubr.f32.mxu0 %v8368_v42  ;;  %v482_v6 = vld [vmem:[%s8314_s7 + $0x270] sm:$0xff]  ;;  %v6986_v54 = vpop.f32.mrf.mxu0 }
 0x4bc   : > { %4197 = vmatprep.subr.mxu1 %v8368_v42  ;;  %4502 = vmatprep.subr.mxu0 %v8368_v42 }
 0x4bd   : > { %5324 = vmatmul.mubr.msk.f32.vlgmr.msra.gmra.mxu1 %vm722_vm1, %v6637_v56  ;;  %5330 = vmatmul.mubr.msk.f32.vlgmr.msra.gmra.mxu0 %vm722_vm1, %v6637_v56  ;;  %v480_v56 = vld [vmem:[%s8314_s7 + $0x260] sm:$0xff]  ;;  %v7008_v13 = vpop.f32.mrf.mxu0 }
 0x4be   : > { %4198 = vmatpush1.msra.mxu1 %v451_v16  ;;  %4503 = vmatpush1.msra.mxu0 %v483_v20  ;;  %v1311_v16 = vadd.f32 %v6210_v25, %v6734_v14  ;;  %v475_v20 = vld [vmem:[%s8314_s7 + $0x238] sm:$0xff]  ;;  %v442_v25 = vld [vmem:[%s8314_s7 + $0x130] sm:$0xff] }
 0x4bf   : > { %4199 = vmatprep.subr.mxu1 %v8368_v42  ;;  %4504 = vmatprep.subr.mxu0 %v8368_v42  ;;  %v7021_v4 = vpop.f32.mrf.mxu0 }
 0x4c0   : > { %4200 = vmatpush1.msra.mxu1 %v450_v15  ;;  %4505 = vmatpush1.msra.mxu0 %v482_v6  ;;  %v1505_v15 = vld [vmem:[%s8312_s5 + $0x8] sm:$0xff]  ;;  %v474_v6 = vld [vmem:[%s8314_s7 + $0x230] sm:$0xff] }
 0x4c1   : > { %3825 = vmatprep.mubr.f32.mxu1 %v8368_v42  ;;  %3926 = vmatprep.mubr.f32.mxu0 %v8368_v42  ;;  %v7036_v62 = vpop.f32.mrf.mxu0 }
 0x4c2   : > { %4201 = vmatprep.subr.mxu1 %v8368_v42  ;;  %4506 = vmatprep.subr.mxu0 %v8368_v42 }
 0x4c3   : > { %5325 = vmatmul.mubr.msk.f32.gmra.mxu1 %vm722_vm1, %v6673_v18  ;;  %5331 = vmatmul.mubr.msk.f32.gmra.mxu0 %vm722_vm1, %v6673_v18  ;;  %v447_v18 = vld [vmem:[%s8314_s7 + $0x158] sm:$0xff] }
 0x4c4   : > { %4202 = vmatpush1.msra.mxu1 %v449_v40  ;;  %4507 = vmatpush1.msra.mxu0 %v481_v41  ;;  %v1448_v40 = vadd.f32 %v6635_v21, %v6734_v14  ;;  %v7065_v41 = vpop.f32.mrf.mxu0  ;;  %v473_v21 = vld [vmem:[%s8314_s7 + $0x228] sm:$0xff] }
 0x4c5   : > { %4203 = vmatprep.subr.mxu1 %v8368_v42  ;;  %4508 = vmatprep.subr.mxu0 %v8368_v42 }
 0x4c6   : > { %4204 = vmatpush1.msra.mxu1 %v448_v7  ;;  %4509 = vmatpush1.msra.mxu0 %v480_v56  ;;  %v7068_v7 = vadd.f32 %v1505_v15, %v1311_v16  ;;  %v7080_v56 = vadd.f32 %v1505_v15, %v1448_v40  ;;  %v469_v16 = vld [vmem:[%s8314_s7 + $0x208] sm:$0xff]  ;;  %v468_v15 = vld [vmem:[%s8314_s7 + $0x200] sm:$0xff]  ;;  %v499_v40 = vld [vmem:[%s8314_s7 + $0x2f8] sm:$0xff] }
 0x4c7   : > { %3831 = vmatprep.mubr.f32.mxu1 %v8368_v42  ;;  %3932 = vmatprep.mubr.f32.mxu0 %v8368_v42 }
 0x4c8   : > { %4205 = vmatprep.subr.mxu1 %v8368_v42  ;;  %4510 = vmatprep.subr.mxu0 %v8368_v42 }
 0x4c9   : > { %5326 = vmatmul.mubr.msk.f32.gmra.mxu1 %vm722_vm1, %v6663_v51  ;;  %5332 = vmatmul.mubr.msk.f32.gmra.mxu0 %vm722_vm1, %v6663_v51  ;;  %v445_v51 = vld [vmem:[%s8314_s7 + $0x148] sm:$0xff] }
 0x4ca   : > { %4206 = vmatpush1.msra.mxu1 %v447_v18  ;;  %4511 = vmatpush1.msra.mxu0 %v479_v58  ;;  %v7082_v18 = vpop.f32.mrf.mxu0  ;;  %v1968_v58 = vmul.f32 %v6774_v46, %v7068_v7  ;;  %v439_v46 = vld [vmem:[%s8314_s7 + $0x118] sm:$0xff] }
 0x4cb   : > { %4207 = vmatprep.subr.mxu1 %v8368_v42  ;;  %4512 = vmatprep.subr.mxu0 %v8368_v42 }
 0x4cc   : > { %4208 = vmatpush1.msra.mxu1 %v446_v53  ;;  %4513 = vmatpush1.msra.mxu0 %v478_v35  ;;  %v440_v53 = vld [vmem:[%s8314_s7 + $0x120] sm:$0xff]  ;;  %v1970_v35 = vmul.f32 %v6958_v3, %v7080_v56  ;;  %v471_v3 = vld [vmem:[%s8314_s7 + $0x218] sm:$0xff] }
 0x4cd   : > { %3837 = vmatprep.mubr.f32.mxu1 %v8368_v42  ;;  %3938 = vmatprep.mubr.f32.mxu0 %v8368_v42 }
 0x4ce   : > { %4209 = vmatprep.subr.mxu1 %v8368_v42  ;;  %4514 = vmatprep.subr.mxu0 %v8368_v42 }
 0x4cf   : > { %5327 = vmatmul.mubr.msk.f32.gmra.mxu1 %vm722_vm1, %v6713_v63  ;;  %5333 = vmatmul.mubr.msk.f32.gmra.mxu0 %vm722_vm1, %v6713_v63  ;;  %v443_v63 = vld [vmem:[%s8314_s7 + $0x138] sm:$0xff] }
 0x4d0   : > { %4210 = vmatpush1.msra.mxu1 %v445_v51  ;;  %4515 = vmatpush1.msra.mxu0 %v477_v59  ;;  %v472_v51 = vld [vmem:[%s8314_s7 + $0x220] sm:$0xff]  ;;  %v438_v59 = vld [vmem:[%s8314_s7 + $0x110] sm:$0xff] }
 0x4d1   : > { %4211 = vmatprep.subr.mxu1 %v8368_v42  ;;  %4516 = vmatprep.subr.mxu0 %v8368_v42 }
 0x4d2   : > { %4212 = vmatpush1.msra.mxu1 %v444_v57  ;;  %4517 = vmatpush1.msra.mxu0 %v476_v38  ;;  %v470_v57 = vld [vmem:[%s8314_s7 + $0x210] sm:$0xff]  ;;  %v437_v38 = vld [vmem:[%s8314_s7 + $0x108] sm:$0xff] }
 0x4d3   : > { %3843 = vmatprep.mubr.f32.mxu1 %v8368_v42  ;;  %3944 = vmatprep.mubr.f32.mxu0 %v8368_v42 }
 0x4d4   : > { %4213 = vmatprep.subr.mxu1 %v8368_v42  ;;  %4518 = vmatprep.subr.mxu0 %v8368_v42 }
 0x4d5   : > { %5328 = vmatmul.mubr.msk.f32.gmra.mxu1 %vm722_vm1, %v6697_v17  ;;  %5334 = vmatmul.mubr.msk.f32.gmra.mxu0 %vm722_vm1, %v6697_v17  ;;  %v441_v17 = vld [vmem:[%s8314_s7 + $0x128] sm:$0xff] }
 0x4d6   : > { %4214 = vmatpush1.msra.mxu1 %v443_v63  ;;  %4519 = vmatpush1.msra.mxu0 %v475_v20  ;;  %v436_v20 = vld [vmem:[%s8314_s7 + $0x100] sm:$0xff] }
 0x4d7   : > { %4215 = vmatprep.subr.mxu1 %v8368_v42  ;;  %4520 = vmatprep.subr.mxu0 %v8368_v42 }
 0x4d8   : > { %4216 = vmatpush1.msra.mxu1 %v442_v25  ;;  %4521 = vmatpush1.msra.mxu0 %v474_v6  ;;  %v467_v25 = vld [vmem:[%s8314_s7 + $0x1f8] sm:$0xff] }
 0x4d9   : > { %3849 = vmatprep.mubr.f32.mxu1 %v8368_v42  ;;  %3950 = vmatprep.mubr.f32.mxu0 %v8368_v42 }
 0x4da   : > { %4217 = vmatprep.subr.mxu1 %v8368_v42  ;;  %4522 = vmatprep.subr.mxu0 %v8368_v42 }
 0x4db   : > { %5329 = vmatmul.mubr.msk.f32.gmra.mxu1 %vm722_vm1, %v6732_v49  ;;  %5335 = vmatmul.mubr.msk.f32.gmra.mxu0 %vm722_vm1, %v6732_v49  ;;  %v7104_v49 = vpop.f32.mrf.mxu0 }
 0x4dc   : > { %4218 = vmatpush1.msra.mxu1 %v441_v17  ;;  %4523 = vmatpush1.msra.mxu0 %v473_v21  ;;  %v466_v17 = vld [vmem:[%s8314_s7 + $0x1f0] sm:$0xff] }
 0x4dd   : > { %4219 = vmatprep.subr.mxu1 %v8368_v42  ;;  %4261 = vmatprep.mubr.f32.mxu1 %v1968_v58  ;;  %v7121_v63 = vpop.f32.mrf.mxu0  ;;  %v498_v21 = vld [vmem:[%s8314_s7 + $0x2f0] sm:$0xff] }
 0x4de   : > { %4524 = vmatprep.subr.mxu0 %v8368_v42  ;;  %4566 = vmatprep.mubr.f32.mxu0 %v1970_v35  ;;  %v465_v35 = vld [vmem:[%s8314_s7 + $0x1e8] sm:$0xff] }
 0x4df   : > { %4220 = vmatpush1.msra.mxu1 %v440_v53  ;;  %4525 = vmatpush1.msra.mxu0 %v472_v51  ;;  %v7139_v6 = vpop.f32.mrf.mxu0  ;;  %v497_v51 = vld [vmem:[%s8314_s7 + $0x2e8] sm:$0xff] }
 0x4e0   : > { %4221 = vmatprep.subr.mxu1 %v8368_v42  ;;  %4526 = vmatprep.subr.mxu0 %v8368_v42 }
 0x4e1   : > { %4222 = vmatpush1.msra.mxu1 %v439_v46  ;;  %4527 = vmatpush1.msra.mxu0 %v471_v3 }
 0x4e2   : > { %4223 = vmatprep.subr.mxu1 %v8368_v42  ;;  %4528 = vmatprep.subr.mxu0 %v8368_v42 }
 0x4e3   : > { %4224 = vmatpush1.msra.mxu1 %v438_v59  ;;  %4529 = vmatpush1.msra.mxu0 %v470_v57  ;;  %v464_v59 = vld [vmem:[%s8314_s7 + $0x1e0] sm:$0xff] }
 0x4e4   : > { %4225 = vmatprep.subr.mxu1 %v8368_v42  ;;  %4530 = vmatprep.subr.mxu0 %v8368_v42  ;;  %v496_v57 = vld [vmem:[%s8314_s7 + $0x2e0] sm:$0xff] }
 0x4e5   : > { %4226 = vmatpush1.msra.mxu1 %v437_v38  ;;  %4531 = vmatpush1.msra.mxu0 %v469_v16 }
 0x4e6   : > { %4227 = vmatprep.subr.mxu1 %v8368_v42  ;;  %4532 = vmatprep.subr.mxu0 %v8368_v42 }
 0x4e7   : > { %4228 = vmatpush1.msra.mxu1 %v436_v20  ;;  %4533 = vmatpush1.msra.mxu0 %v468_v15  ;;  %v463_v20 = vld [vmem:[%s8314_s7 + $0x1d8] sm:$0xff] }
 0x4e8   : > { %4229 = vmatprep.subr.mxu1 %v8368_v42  ;;  %4534 = vmatprep.subr.mxu0 %v8368_v42  ;;  %v495_v15 = vld [vmem:[%s8314_s7 + $0x2d8] sm:$0xff] }
 0x4e9   : > { %4230 = vmatpush2.msra.mxu1 %v467_v25  ;;  %4535 = vmatpush2.msra.mxu0 %v499_v40 }
 0x4ea   : > { %4231 = vmatprep.subr.mxu1 %v8368_v42  ;;  %4536 = vmatprep.subr.mxu0 %v8368_v42 }
 0x4eb   : > { %4232 = vmatpush2.msra.mxu1 %v466_v17  ;;  %4537 = vmatpush2.msra.mxu0 %v498_v21  ;;  %v462_v17 = vld [vmem:[%s8314_s7 + $0x1d0] sm:$0xff] }
 0x4ec   : > { %v7153_v58 = vpop.f32.mrf.mxu1  ;;  %v7155_v53 = vpop.f32.mrf.mxu0  ;;  %4233 = vmatprep.subr.mxu1 %v8368_v42  ;;  %4538 = vmatprep.subr.mxu0 %v8368_v42  ;;  %v494_v21 = vld [vmem:[%s8314_s7 + $0x2d0] sm:$0xff] }
 0x4ed   : > { %4234 = vmatpush2.msra.mxu1 %v465_v35  ;;  %4539 = vmatpush2.msra.mxu0 %v497_v51 }
 0x4ee   : > { %v7165_v46 = vpop.f32.mrf.mxu1  ;;  %v7167_v3 = vpop.f32.mrf.mxu0  ;;  %4235 = vmatprep.subr.mxu1 %v8368_v42  ;;  %4540 = vmatprep.subr.mxu0 %v8368_v42 }
 0x4ef   : > { %4236 = vmatpush2.msra.mxu1 %v464_v59  ;;  %4541 = vmatpush2.msra.mxu0 %v496_v57  ;;  %v461_v59 = vld [vmem:[%s8314_s7 + $0x1c8] sm:$0xff] }
 0x4f0   : > { %v7177_v38 = vpop.f32.mrf.mxu1  ;;  %v7179_v16 = vpop.f32.mrf.mxu0  ;;  %4237 = vmatprep.subr.mxu1 %v8368_v42  ;;  %4542 = vmatprep.subr.mxu0 %v8368_v42  ;;  %v493_v57 = vld [vmem:[%s8314_s7 + $0x2c8] sm:$0xff] }
 0x4f1   : > { %8377 = vst [vmem:[#allocation47_spill] sm:$0xff] %v7179_v16  ;;  %4238 = vmatpush2.msra.mxu1 %v463_v20  ;;  %4543 = vmatpush2.msra.mxu0 %v495_v15  ;;  %v460_v15 = vld [vmem:[%s8314_s7 + $0x1c0] sm:$0xff] }
 0x4f2   : > { %v7189_v25 = vpop.f32.mrf.mxu1  ;;  %v7191_v40 = vpop.f32.mrf.mxu0  ;;  %4239 = vmatprep.subr.mxu1 %v8368_v42  ;;  %4544 = vmatprep.subr.mxu0 %v8368_v42 }
 0x4f3   : > { %4240 = vmatpush2.msra.mxu1 %v462_v17  ;;  %4545 = vmatpush2.msra.mxu0 %v494_v21  ;;  %v492_v17 = vld [vmem:[%s8314_s7 + $0x2c0] sm:$0xff]  ;;  %v459_v21 = vld [vmem:[%s8314_s7 + $0x1b8] sm:$0xff] }
 0x4f4   : > { %v7201_v35 = vpop.f32.mrf.mxu1  ;;  %v7203_v51 = vpop.f32.mrf.mxu0  ;;  %4241 = vmatprep.subr.mxu1 %v8368_v42  ;;  %4546 = vmatprep.subr.mxu0 %v8368_v42 }
 0x4f5   : > { %8378 = vst [vmem:[#allocation48_spill] sm:$0xff] %v7201_v35  ;;  %8379 = vst [vmem:[#allocation49_spill] sm:$0xff] %v7203_v51  ;;  %4242 = vmatpush2.msra.mxu1 %v461_v59  ;;  %4547 = vmatpush2.msra.mxu0 %v493_v57  ;;  %v491_v59 = vld [vmem:[%s8314_s7 + $0x2b8] sm:$0xff]  ;;  %v458_v57 = vld [vmem:[%s8314_s7 + $0x1b0] sm:$0xff] }
 0x4f6   : > { %v7213_v20 = vpop.f32.mrf.mxu1  ;;  %v7215_v37 = vpop.f32.mrf.mxu0  ;;  %4243 = vmatprep.subr.mxu1 %v8368_v42  ;;  %4548 = vmatprep.subr.mxu0 %v8368_v42  ;;  %v1507_v35 = vld [vmem:[%s8312_s5 + $0x18] sm:$0xff] }
 0x4f7   : > { %8380 = vst [vmem:[#allocation50_spill] sm:$0xff] %v7213_v20  ;;  %8381 = vst [vmem:[#allocation51_spill] sm:$0xff] %v7215_v37  ;;  %4244 = vmatpush2.msra.mxu1 %v460_v15  ;;  %4549 = vmatpush2.msra.mxu0 %v492_v17  ;;  %v490_v15 = vld [vmem:[%s8314_s7 + $0x2b0] sm:$0xff]  ;;  %v457_v17 = vld [vmem:[%s8314_s7 + $0x1a8] sm:$0xff] }
 0x4f8   : > { %v7225_v52 = vpop.f32.mrf.mxu1  ;;  %v7227_v61 = vpop.f32.mrf.mxu0  ;;  %4245 = vmatprep.subr.mxu1 %v8368_v42  ;;  %4550 = vmatprep.subr.mxu0 %v8368_v42 }
 0x4f9   : > { %8382 = vst [vmem:[#allocation52_spill] sm:$0xff] %v7225_v52  ;;  %8383 = vst [vmem:[#allocation53_spill] sm:$0xff] %v7227_v61  ;;  %v7241_v52 = vpop.permute.xlu0 %4815  ;;  %4246 = vmatpush2.msra.mxu1 %v459_v21  ;;  %4551 = vmatpush2.msra.mxu0 %v491_v59  ;;  %v489_v21 = vld [vmem:[%s8314_s7 + $0x2a8] sm:$0xff]  ;;  %v456_v59 = vld [vmem:[%s8314_s7 + $0x1a0] sm:$0xff] }
 0x4fa   : > { %v7237_v32 = vpop.f32.mrf.mxu1  ;;  %v7239_v51 = vpop.f32.mrf.mxu0  ;;  %8386 = vst [vmem:[#allocation56_spill] sm:$0xff] %v7241_v52  ;;  %4247 = vmatprep.subr.mxu1 %v8368_v42  ;;  %4552 = vmatprep.subr.mxu0 %v8368_v42 }
 0x4fb   : > { %8384 = vst [vmem:[#allocation54_spill] sm:$0xff] %v7237_v32  ;;  %8385 = vst [vmem:[#allocation55_spill] sm:$0xff] %v7239_v51  ;;  %4248 = vmatpush2.msra.mxu1 %v458_v57  ;;  %4553 = vmatpush2.msra.mxu0 %v490_v15  ;;  %v488_v57 = vld [vmem:[%s8314_s7 + $0x2a0] sm:$0xff]  ;;  %v1309_v15 = vadd.f32 %v6208_v24, %v6734_v14  ;;  %v487_v24 = vld [vmem:[%s8314_s7 + $0x298] sm:$0xff] }
 0x4fc   : > { %v7251_v61 = vpop.f32.mrf.mxu1  ;;  %v7253_v32 = vpop.f32.mrf.mxu0  ;;  %4249 = vmatprep.subr.mxu1 %v8368_v42  ;;  %4554 = vmatprep.subr.mxu0 %v8368_v42 }
 0x4fd   : > { %8387 = vst [vmem:[#allocation57_spill] sm:$0xff] %v7251_v61  ;;  %8388 = vst [vmem:[#allocation58_spill] sm:$0xff] %v7253_v32  ;;  %v7267_v61 = vpop.permute.xlu1 %4820  ;;  %4250 = vmatpush2.msra.mxu1 %v457_v17  ;;  %4555 = vmatpush2.msra.mxu0 %v489_v21  ;;  %v455_v17 = vld [vmem:[%s8314_s7 + $0x198] sm:$0xff] }
 0x4fe   : > { %v7263_v52 = vpop.f32.mrf.mxu1  ;;  %v7265_v51 = vpop.f32.mrf.mxu0  ;;  %8391 = vst [vmem:[#allocation61_spill] sm:$0xff] %v7267_v61  ;;  %4251 = vmatprep.subr.mxu1 %v8368_v42  ;;  %4556 = vmatprep.subr.mxu0 %v8368_v42 }
 0x4ff   : > { %8389 = vst [vmem:[#allocation59_spill] sm:$0xff] %v7263_v52  ;;  %8390 = vst [vmem:[#allocation60_spill] sm:$0xff] %v7265_v51  ;;  %v7283_v61 = vpop.permute.xlu0 %4827  ;;  %v1504_v51 = vld [vmem:[%s8312_s5] sm:$0xff]  ;;  %4252 = vmatpush2.msra.mxu1 %v456_v59  ;;  %4557 = vmatpush2.msra.mxu0 %v488_v57  ;;  %v1315_v59 = vadd.f32 %v6212_v26, %v6744_v0  ;;  %v1454_v26 = vadd.f32 %v6671_v19, %v6744_v0  ;;  %v485_v19 = vld [vmem:[%s8314_s7 + $0x288] sm:$0xff] }
 0x500   : > { %v7277_v32 = vpop.f32.mrf.mxu1  ;;  %v7279_v52 = vpop.f32.mrf.mxu0  ;;  %8394 = vst [vmem:[#allocation64_spill] sm:$0xff] %v7283_v61  ;;  %4253 = vmatprep.subr.mxu1 %v8368_v42  ;;  %4558 = vmatprep.subr.mxu0 %v8368_v42  ;;  %v7321_v57 = vadd.f32 %v1504_v51, %v1309_v15  ;;  %v453_v15 = vld [vmem:[%s8314_s7 + $0x188] sm:$0xff] }
 0x501   : > { %8392 = vst [vmem:[#allocation62_spill] sm:$0xff] %v7277_v32  ;;  %8393 = vst [vmem:[#allocation63_spill] sm:$0xff] %v7279_v52  ;;  %v1317_v32 = vadd.f32 %v6214_v27, %v6744_v0  ;;  %v1446_v52 = vadd.f32 %v6625_v44, %v6734_v14  ;;  %v454_v27 = vld [vmem:[%s8314_s7 + $0x190] sm:$0xff]  ;;  %4254 = vmatpush2.msra.mxu1 %v455_v17  ;;  %v1323_v17 = vadd.f32 %v6218_v29, %v6748_v12  ;;  %v7330_v37 = vpop.permute.xlu1 %4832 }
 0x502   : > { %v7298_v21 = vpop.f32.mrf.mxu1  ;;  %v7300_v61 = vpop.f32.mrf.mxu0  ;;  %v486_v14 = vld [vmem:[%s8314_s7 + $0x290] sm:$0xff]  ;;  %8399 = vst [vmem:[#allocation69_spill] sm:$0xff] %v7330_v37  ;;  %4559 = vmatpush2.msra.mxu0 %v487_v24  ;;  %4255 = vmatprep.subr.mxu1 %v8368_v42 }
 0x503   : > { %8395 = vst [vmem:[#allocation65_spill] sm:$0xff] %v7298_v21  ;;  %8396 = vst [vmem:[#allocation66_spill] sm:$0xff] %v7300_v61  ;;  %v1506_v21 = vld [vmem:[%s8312_s5 + $0x10] sm:$0xff]  ;;  %4560 = vmatprep.subr.mxu0 %v8368_v42  ;;  %4256 = vmatpush2.msra.mxu1 %v454_v27  ;;  %v7349_v37 = vadd.f32 %v1504_v51, %v1446_v52  ;;  %v452_v27 = vld [vmem:[%s8314_s7 + $0x180] sm:$0xff]  ;;  %v1460_v52 = vadd.f32 %v6721_v50, %v6748_v12 }
 0x504   : > { %v7317_v44 = vpop.f32.mrf.mxu1  ;;  %v7319_v61 = vpop.f32.mrf.mxu0  ;;  %4561 = vmatpush2.msra.mxu0 %v486_v14  ;;  %4257 = vmatprep.subr.mxu1 %v8368_v42  ;;  %v7359_v16 = vadd.f32 %v1506_v21, %v1315_v59  ;;  %v7371_v51 = vadd.f32 %v1507_v35, %v1454_v26  ;;  %v1508_v59 = vld [vmem:[%s8312_s5 + $0x20] sm:$0xff] }
 0x505   : > { %8397 = vst [vmem:[#allocation67_spill] sm:$0xff] %v7317_v44  ;;  %8398 = vst [vmem:[#allocation68_spill] sm:$0xff] %v7319_v61  ;;  %v7336_v61 = vadd.f32 %v1507_v35, %v1317_v32  ;;  %v1509_v44 = vld [vmem:[%s8312_s5 + $0x28] sm:$0xff]  ;;  %v7345_v29 = vpop.permute.xlu0 %4855  ;;  %v1452_v32 = vadd.f32 %v6647_v2, %v6744_v0  ;;  %4562 = vmatprep.subr.mxu0 %v8368_v42  ;;  %4258 = vmatpush2.msra.mxu1 %v453_v15  ;;  %v484_v0 = vld [vmem:[%s8314_s7 + $0x280] sm:$0xff] }
 0x506   : > { %8400 = vst [vmem:[#allocation70_spill] sm:$0xff] %v7345_v29  ;;  %v7347_v24 = vpop.f32.mrf.mxu1  ;;  %v7357_v20 = vpop.f32.mrf.mxu0  ;;  %v1321_v29 = vadd.f32 %v6216_v28, %v6748_v12  ;;  %v7376_v14 = vadd.f32 %v1509_v44, %v1323_v17  ;;  %4563 = vmatpush2.msra.mxu0 %v485_v19  ;;  %4259 = vmatprep.subr.mxu1 %v8368_v42 }
 0x507   : > { %v1967_v28 = vmul.f32 %v6764_v36, %v7321_v57  ;;  %v1329_v35 = vadd.f32 %v6222_v31, %v6756_v47  ;;  %v1969_v26 = vmul.f32 %v6935_v39, %v7349_v37  ;;  %4564 = vmatprep.subr.mxu0 %v8368_v42  ;;  %4260 = vmatpush2.msra.mxu1 %v452_v27  ;;  %v1511_v36 = vld [vmem:[%s8312_s5 + $0x38] sm:$0xff] }
 0x508   : > { %v7369_v2 = vpop.f32.mrf.mxu1  ;;  %v7381_v50 = vpop.f32.mrf.mxu0  ;;  %v1972_v17 = vmul.f32 %v6804_v10, %v7336_v61  ;;  %4565 = vmatpush2.msra.mxu0 %v484_v0  ;;  %v7401_v39 = vadd.f32 %v1506_v21, %v1452_v32  ;;  %v1458_v42 = vadd.f32 %v6695_v1, %v6748_v12  ;;  %v7405_v27 = vadd.f32 %v1508_v59, %v1321_v29  ;;  %v1510_v29 = vld [vmem:[%s8312_s5 + $0x30] sm:$0xff] }
 0x509   : > { %8401 = vst [vmem:[#allocation71_spill] sm:$0xff] %v7369_v2  ;;  %8402 = vst [vmem:[#allocation72_spill] sm:$0xff] %v7381_v50  ;;  %v7383_v15 = vpop.permute.xlu1 %4857  ;;  %4262 = vmatmul.mubr.f32.vlgmr.msra.gmra.mxu1 %v1967_v28  ;;  %4567 = vmatmul.mubr.f32.vlgmr.msra.gmra.mxu0 %v1969_v26  ;;  %v7407_v10 = vpop.permute.xlu0 %4888  ;;  %v7411_v2 = vadd.f32 %v1509_v44, %v1460_v52  ;;  %v1466_v21 = vadd.f32 %v6753_v11, %v6756_v47 }
 0x50a   : > { %8403 = vst [vmem:[#allocation73_spill] sm:$0xff] %v7383_v15  ;;  %v7392_v19 = vpop.f32.mrf.mxu1  ;;  %v1974_v15 = vmul.f32 %v6986_v54, %v7371_v51  ;;  %v7399_v31 = vpop.f32.mrf.mxu0  ;;  %4266 = vmatprep.mubr.f32.mxu1 %v1972_v17  ;;  %8404 = vst [vmem:[#allocation74_spill] sm:$0xff] %v7407_v10  ;;  %v1327_v54 = vadd.f32 %v6220_v30, %v6756_v47  ;;  %v1971_v12 = vmul.f32 %v6790_v8, %v7359_v16  ;;  %v1513_v8 = vld [vmem:[%s8312_s5 + $0x48] sm:$0xff] }
 0x50b   : > { %v7424_v32 = vadd.f32 %v1511_v36, %v1329_v35  ;;  %v1335_v44 = vadd.f32 %v6226_v34, %v6760_v48  ;;  %v1973_v30 = vmul.f32 %v6971_v55, %v7401_v39  ;;  %v1976_v11 = vmul.f32 %v6832_v23, %v7376_v14  ;;  %v8407_v55 = vld [vmem:[#allocation41_spill] sm:$0xff]  ;;  %v8408_v23 = vld [vmem:[#allocation22_spill] sm:$0xff] }
 0x50c   : > { %v7409_v50 = vpop.f32.mrf.mxu1  ;;  %4571 = vmatprep.mubr.f32.mxu0 %v1974_v15  ;;  %v7419_v1 = vpop.f32.mrf.mxu0  ;;  %v1978_v0 = vmul.f32 %v7021_v4, %v7411_v2  ;;  %v7443_v34 = vadd.f32 %v1508_v59, %v1458_v42  ;;  %v1464_v35 = vadd.f32 %v8407_v55, %v6756_v47  ;;  %v1333_v26 = vadd.f32 %v8408_v23, %v6760_v48  ;;  %v8410_v59 = vld [vmem:[#allocation26_spill] sm:$0xff] }
 0x50d   : > { %8405 = vst [vmem:[#allocation75_spill] sm:$0xff] %v7419_v1  ;;  %4267 = vmatmul.mubr.f32.gmra.mxu1 %v1971_v12  ;;  %v7439_v28 = vpop.permute.xlu1 %4890  ;;  %4572 = vmatmul.mubr.f32.gmra.mxu0 %v1973_v30  ;;  %v7451_v10 = vadd.f32 %v1510_v29, %v1327_v54  ;;  %v7453_v4 = vadd.f32 %v1511_v36, %v1466_v21  ;;  %v1512_v12 = vld [vmem:[%s8312_s5 + $0x40] sm:$0xff]  ;;  %v8413_v54 = vld [vmem:[#allocation24_spill] sm:$0xff] }
 0x50e   : > { %v7432_v52 = vpop.f32.mrf.mxu1  ;;  %8406 = vst [vmem:[#allocation76_spill] sm:$0xff] %v7439_v28  ;;  %v7441_v15 = vpop.f32.mrf.mxu0  ;;  %4271 = vmatprep.mubr.f32.mxu1 %v1976_v11  ;;  %v1472_v42 = vadd.f32 %v8410_v59, %v6760_v48  ;;  %4576 = vmatprep.mubr.f32.mxu0 %v1978_v0  ;;  %v1975_v47 = vmul.f32 %v6818_v33, %v7405_v27  ;;  %v8412_v11 = vld [vmem:[#allocation42_spill] sm:$0xff]  ;;  %v1515_v33 = vld [vmem:[%s8312_s5 + $0x58] sm:$0xff] }
 0x50f   : > { %v7464_v30 = vadd.f32 %v1513_v8, %v1335_v44  ;;  %v1341_v23 = vadd.f32 %v8413_v54, %v8412_v11  ;;  %v1977_v36 = vmul.f32 %v7008_v13, %v7443_v34  ;;  %v1980_v21 = vmul.f32 %v6862_v22, %v7424_v32  ;;  %v7472_v28 = vpop.permute.xlu0 %4921  ;;  %v8416_v13 = vld [vmem:[#allocation25_spill] sm:$0xff] }
 0x510   : > { %v7449_v17 = vpop.f32.mrf.mxu1  ;;  %v7462_v55 = vpop.f32.mrf.mxu0  ;;  %8414 = vst [vmem:[#allocation26_spill] sm:$0xff] %v7472_v28  ;;  %v1982_v44 = vmul.f32 %v7065_v41, %v7453_v4  ;;  %v7483_v54 = vadd.f32 %v1510_v29, %v1464_v35  ;;  %v7487_v22 = vadd.f32 %v1512_v12, %v1333_v26  ;;  %v8418_v41 = vld [vmem:[#allocation28_spill] sm:$0xff]  ;;  %v1979_v29 = vmul.f32 %v6848_v45, %v7451_v10 }
 0x511   : > { %8409 = vst [vmem:[#allocation41_spill] sm:$0xff] %v7449_v17  ;;  %8411 = vst [vmem:[#allocation22_spill] sm:$0xff] %v7462_v55  ;;  %4272 = vmatmul.mubr.f32.gmra.mxu1 %v1975_v47  ;;  %v1470_v55 = vadd.f32 %v8416_v13, %v6760_v48  ;;  %4577 = vmatmul.mubr.f32.gmra.mxu0 %v1977_v36  ;;  %v7491_v17 = vadd.f32 %v1513_v8, %v1472_v42  ;;  %v7499_v35 = vpop.permute.xlu1 %4923  ;;  %v1514_v26 = vld [vmem:[%s8312_s5 + $0x50] sm:$0xff]  ;;  %v8420_v13 = vld [vmem:[#allocation27_spill] sm:$0xff] }
 0x512   : > { %v7474_v59 = vpop.f32.mrf.mxu1  ;;  %v7481_v0 = vpop.f32.mrf.mxu0  ;;  %4276 = vmatprep.mubr.f32.mxu1 %v1980_v21  ;;  %v1478_v47 = vadd.f32 %v8418_v41, %v8412_v11  ;;  %4581 = vmatprep.mubr.f32.mxu0 %v1982_v44  ;;  %8419 = vst [vmem:[#allocation24_spill] sm:$0xff] %v7499_v35  ;;  %v7506_v8 = vadd.f32 %v1515_v33, %v1341_v23 }
 0x513   : > { %8415 = vst [vmem:[#allocation42_spill] sm:$0xff] %v7474_v59  ;;  %v8417_v59 = vld [vmem:[#allocation23_spill] sm:$0xff]  ;;  %v1981_v42 = vmul.f32 %v7036_v62, %v7483_v54  ;;  %v1984_v36 = vmul.f32 %v6893_v9, %v7464_v30  ;;  %v1986_v45 = vmul.f32 %v7104_v49, %v7491_v17  ;;  %v7518_v44 = vadd.f32 %v1512_v12, %v1470_v55  ;;  %v7522_v41 = vpop.permute.xlu0 %4970 }
 0x514   : > { %v7489_v28 = vpop.f32.mrf.mxu1  ;;  %v1339_v1 = vadd.f32 %v8417_v59, %v8412_v11  ;;  %v7501_v48 = vpop.f32.mrf.mxu0  ;;  %v1476_v23 = vadd.f32 %v8420_v13, %v8412_v11  ;;  %8421 = vst [vmem:[#allocation25_spill] sm:$0xff] %v7522_v41  ;;  %v7528_v35 = vadd.f32 %v1515_v33, %v1478_v47  ;;  %v1983_v49 = vmul.f32 %v6880_v43, %v7487_v22 }
 0x515   : > { %4277 = vmatmul.mubr.f32.gmra.mxu1 %v1979_v29  ;;  %4582 = vmatmul.mubr.f32.gmra.mxu0 %v1981_v42  ;;  %v1985_v12 = vmul.f32 %v7082_v18, %v7518_v44  ;;  %v1988_v55 = vmul.f32 %v6923_v5, %v7506_v8  ;;  %v7542_v33 = vpop.permute.xlu1 %4972  ;;  %v2256_v13 = vmul.f32 %v7167_v3, %v7080_v56 }
 0x516   : > { %v7512_v21 = vpop.f32.mrf.mxu1  ;;  %v7516_v59 = vpop.f32.mrf.mxu0  ;;  %4281 = vmatprep.mubr.f32.mxu1 %v1984_v36  ;;  %v7526_v9 = vadd.f32 %v1514_v26, %v1339_v1  ;;  %4586 = vmatprep.mubr.f32.mxu0 %v1986_v45  ;;  %v1990_v1 = vmul.f32 %v7139_v6, %v7528_v35  ;;  %8422 = vst [vmem:[#allocation23_spill] sm:$0xff] %v7542_v33 }
 0x517   : > { %v7546_v42 = vadd.f32 %v1514_v26, %v1476_v23  ;;  %v2254_v36 = vmul.f32 %v7165_v46, %v7068_v7  ;;  %v7558_v45 = vpop.permute.xlu0 %5002  ;;  %v2255_v3 = vmul.f32 %v7155_v53, %v7349_v37  ;;  %v2257_v53 = vmul.f32 %v7177_v38, %v7359_v16  ;;  %v8439_v38 = vld [vmem:[#allocation48_spill] sm:$0xff] }
 0x518   : > { %v7524_v62 = vpop.f32.mrf.mxu1  ;;  %v7532_v29 = vpop.f32.mrf.mxu0  ;;  %v1987_v5 = vmul.f32 %v6910_v60, %v7526_v9  ;;  %8424 = vst [vmem:[#allocation27_spill] sm:$0xff] %v7558_v45 }
 0x519   : > { %4282 = vmatmul.mubr.f32.gmra.mxu1 %v1983_v49  ;;  %4587 = vmatmul.mubr.f32.gmra.mxu0 %v1985_v12  ;;  %v1989_v6 = vmul.f32 %v7121_v63, %v7546_v42  ;;  %v2253_v63 = vmul.f32 %v7153_v58, %v7321_v57  ;;  %v7570_v49 = vpop.permute.xlu1 %5004  ;;  %v2258_v12 = vmul.f32 %v7189_v25, %v7336_v61 }
 0x51a   : > { %v7538_v11 = vpop.f32.mrf.mxu1  ;;  %v7544_v47 = vpop.f32.mrf.mxu0  ;;  %4286 = vmatprep.mubr.f32.mxu1 %v1988_v55  ;;  %4591 = vmatprep.mubr.f32.mxu0 %v1990_v1  ;;  %8426 = vst [vmem:[#allocation78_spill] sm:$0xff] %v7570_v49  ;;  %v2260_v1 = vmul.f32 %v7191_v40, %v7371_v51  ;;  %v8434_v40 = vld [vmem:[#allocation50_spill] sm:$0xff] }
 0x51c   : > { %v7548_v43 = vpop.f32.mrf.mxu1  ;;  %v7552_v18 = vpop.f32.mrf.mxu0 }
 0x51d   : > { %8423 = vst [vmem:[#allocation28_spill] sm:$0xff] %v7552_v18  ;;  %4287 = vmatmul.mubr.f32.gmra.mxu1 %v1987_v5  ;;  %4592 = vmatmul.mubr.f32.gmra.mxu0 %v1989_v6  ;;  %v7587_v5 = vpop.permute.xlu0 %5034 }
 0x51e   : > { %v7560_v26 = vpop.f32.mrf.mxu1  ;;  %v7564_v23 = vpop.f32.mrf.mxu0  ;;  %4291 = vmatprep.mubr.f32.mxu1 %v2254_v36  ;;  %4596 = vmatprep.mubr.f32.mxu0 %v2256_v13  ;;  %8430 = vst [vmem:[#allocation82_spill] sm:$0xff] %v7587_v5  ;;  %v8433_v36 = vld [vmem:[#allocation47_spill] sm:$0xff] }
 0x51f   : > { %v2259_v13 = vmul.f32 %v8433_v36, %v7401_v39  ;;  %v7604_v5 = vpop.permute.xlu1 %5036 }
 0x520   : > { %v7566_v60 = vpop.f32.mrf.mxu1  ;;  %v7572_v46 = vpop.f32.mrf.mxu0  ;;  %8437 = vst [vmem:[#allocation50_spill] sm:$0xff] %v7604_v5 }
 0x521   : > { %8425 = vst [vmem:[#allocation77_spill] sm:$0xff] %v7566_v60  ;;  %8427 = vst [vmem:[#allocation79_spill] sm:$0xff] %v7572_v46  ;;  %4292 = vmatmul.mubr.f32.gmra.mxu1 %v2253_v63  ;;  %4597 = vmatmul.mubr.f32.gmra.mxu0 %v2255_v3  ;;  %v2262_v63 = vmul.f32 %v8434_v40, %v7376_v14  ;;  %v8436_v3 = vld [vmem:[#allocation51_spill] sm:$0xff]  ;;  %v8441_v40 = vld [vmem:[#allocation10_spill] sm:$0xff] }
 0x522   : > { %v7581_v55 = vpop.f32.mrf.mxu1  ;;  %v7585_v58 = vpop.f32.mrf.mxu0  ;;  %4296 = vmatprep.mubr.f32.mxu1 %v2258_v12  ;;  %4601 = vmatprep.mubr.f32.mxu0 %v2260_v1  ;;  %v2264_v12 = vmul.f32 %v8436_v3, %v7411_v2  ;;  %v2261_v1 = vmul.f32 %v8439_v38, %v7405_v27 }
 0x523   : > { %8428 = vst [vmem:[#allocation80_spill] sm:$0xff] %v7581_v55  ;;  %8429 = vst [vmem:[#allocation81_spill] sm:$0xff] %v7585_v58 }
 0x524   : > { %v7589_v6 = vpop.f32.mrf.mxu1  ;;  %v7594_v25 = vpop.f32.mrf.mxu0 }
 0x525   : > { %8431 = vst [vmem:[#allocation83_spill] sm:$0xff] %v7589_v6  ;;  %8432 = vst [vmem:[#allocation84_spill] sm:$0xff] %v7594_v25  ;;  %4297 = vmatmul.mubr.f32.gmra.mxu1 %v2257_v53  ;;  %4602 = vmatmul.mubr.f32.gmra.mxu0 %v2259_v13  ;;  %v8442_v25 = vld [vmem:[#allocation11_spill] sm:$0xff]  ;;  %v8444_v53 = vld [vmem:[#allocation30_spill] sm:$0xff] }
 0x526   : > { %v7600_v49 = vpop.f32.mrf.mxu1  ;;  %v7606_v45 = vpop.f32.mrf.mxu0  ;;  %4301 = vmatprep.mubr.f32.mxu1 %v2262_v63  ;;  %4606 = vmatprep.mubr.f32.mxu0 %v2264_v12  ;;  %v8447_v13 = vld [vmem:[#allocation54_spill] sm:$0xff]  ;;  %v8449_v12 = vld [vmem:[#allocation52_spill] sm:$0xff] }
 0x527   : > { %8435 = vst [vmem:[#allocation47_spill] sm:$0xff] %v7600_v49  ;;  %8438 = vst [vmem:[#allocation51_spill] sm:$0xff] %v7606_v45  ;;  %v1112_v33 = vpop.permute.xlu0 %1111  ;;  %v8443_v49 = vld [vmem:[#allocation29_spill] sm:$0xff]  ;;  %v2266_v63 = vmul.f32 %v8447_v13, %v7424_v32 }
 0x528   : > { %v7610_v36 = vpop.f32.mrf.mxu1  ;;  %v1273_v41 = vadd.f32 %v8441_v40, %v1112_v33  ;;  %v1275_v6 = vadd.f32 %v8442_v25, %v1112_v33  ;;  %v1410_v3 = vadd.f32 %v8443_v49, %v1112_v33  ;;  %v1412_v46 = vadd.f32 %v8444_v53, %v1112_v33  ;;  %v7616_v5 = vpop.f32.mrf.mxu0  ;;  %v8446_v45 = vld [vmem:[#allocation49_spill] sm:$0xff]  ;;  %v8450_v40 = vld [vmem:[#allocation55_spill] sm:$0xff]  ;;  %v8452_v49 = vld [vmem:[#allocation12_spill] sm:$0xff] }
 0x529   : > { %8440 = vst [vmem:[#allocation48_spill] sm:$0xff] %v7610_v36  ;;  %8445 = vst [vmem:[#allocation10_spill] sm:$0xff] %v7616_v5  ;;  %v2263_v60 = vmul.f32 %v8446_v45, %v7443_v34  ;;  %v2265_v36 = vmul.f32 %v8449_v12, %v7451_v10  ;;  %v2268_v25 = vmul.f32 %v8450_v40, %v7453_v4  ;;  %4302 = vmatmul.mubr.f32.gmra.mxu1 %v2261_v1  ;;  %v8453_v53 = vld [vmem:[#allocation13_spill] sm:$0xff]  ;;  %v8454_v12 = vld [vmem:[#allocation31_spill] sm:$0xff] }
 0x52a   : > { %v7622_v38 = vpop.f32.mrf.mxu1  ;;  %1480 = vst [vmem:[%s7628_s16] sm:$0xff] %v1273_v41  ;;  %1481 = vst [vmem:[%s7628_s16 + $0x8] sm:$0xff] %v1275_v6  ;;  %v1117_v33 = vpop.permute.xlu1 %1116  ;;  %4306 = vmatprep.mubr.f32.mxu1 %v2266_v63  ;;  %v8456_v41 = vld [vmem:[#allocation32_spill] sm:$0xff]  ;;  %v8457_v6 = vld [vmem:[#allocation14_spill] sm:$0xff] }
 0x52b   : > { %8448 = vst [vmem:[#allocation11_spill] sm:$0xff] %v7622_v38  ;;  %1482 = vst [vmem:[%s7628_s16 + $0x10] sm:$0xff] %v1410_v3  ;;  %v7634_v45 = vpop.f32.mrf.mxu0  ;;  %4607 = vmatmul.mubr.f32.gmra.mxu0 %v2263_v60  ;;  %v1279_v1 = vadd.f32 %v8452_v49, %v1117_v33  ;;  %v1281_v13 = vadd.f32 %v8453_v53, %v1117_v33  ;;  %v1416_v40 = vadd.f32 %v8454_v12, %v1117_v33  ;;  %v1122_v5 = vpop.permute.xlu0 %1121  ;;  %v8458_v3 = vld [vmem:[#allocation15_spill] sm:$0xff]  ;;  %v8461_v53 = vld [vmem:[#allocation53_spill] sm:$0xff] }
 0x52c   : > { %1483 = vst [vmem:[%s7628_s16 + $0x18] sm:$0xff] %v1412_v46  ;;  %8451 = vst [vmem:[#allocation29_spill] sm:$0xff] %v7634_v45  ;;  %v7639_v38 = vpop.f32.mrf.mxu1  ;;  %4611 = vmatprep.mubr.f32.mxu0 %v2268_v25  ;;  %v1418_v46 = vadd.f32 %v8456_v41, %v1117_v33  ;;  %v1285_v60 = vadd.f32 %v8457_v6, %v1122_v5  ;;  %v1287_v63 = vadd.f32 %v8458_v3, %v1122_v5  ;;  %v8459_v45 = vld [vmem:[#allocation33_spill] sm:$0xff]  ;;  %v8463_v25 = vld [vmem:[#allocation34_spill] sm:$0xff] }
 0x52d   : > { %8455 = vst [vmem:[#allocation30_spill] sm:$0xff] %v7639_v38  ;;  %v1422_v49 = vadd.f32 %v8459_v45, %v1122_v5  ;;  %v7645_v58 = vpop.f32.mrf.mxu0  ;;  %v2267_v12 = vmul.f32 %v8461_v53, %v7483_v54  ;;  %v8462_v38 = vld [vmem:[#allocation59_spill] sm:$0xff]  ;;  %1484 = vst [vmem:[%s7628_s16 + $0x20] sm:$0xff] %v1279_v1  ;;  %v1424_v33 = vadd.f32 %v8463_v25, %v1122_v5  ;;  %v8465_v6 = vld [vmem:[#allocation60_spill] sm:$0xff]  ;;  %4307 = vmatmul.mubr.f32.gmra.mxu1 %v2265_v36 }
 0x52e   : > { %8460 = vst [vmem:[#allocation49_spill] sm:$0xff] %v7645_v58  ;;  %v2270_v55 = vmul.f32 %v8462_v38, %v7464_v30  ;;  %1485 = vst [vmem:[%s7628_s16 + $0x28] sm:$0xff] %v1281_v13  ;;  %v7655_v41 = vpop.f32.mrf.mxu1  ;;  %v2272_v3 = vmul.f32 %v8465_v6, %v7491_v17  ;;  %v8467_v38 = vld [vmem:[#allocation57_spill] sm:$0xff]  ;;  %v8468_v13 = vld [vmem:[#allocation58_spill] sm:$0xff]  ;;  %v1127_v25 = vpop.permute.xlu1 %1126 }
 0x52f   : > { %1486 = vst [vmem:[%s7628_s16 + $0x30] sm:$0xff] %v1416_v40  ;;  %8464 = vst [vmem:[#allocation54_spill] sm:$0xff] %v7655_v41  ;;  %v7663_v45 = vpop.f32.mrf.mxu0  ;;  %v2269_v1 = vmul.f32 %v8467_v38, %v7487_v22  ;;  %v2271_v40 = vmul.f32 %v8468_v13, %v7518_v44  ;;  %v8469_v5 = vld [vmem:[#allocation65_spill] sm:$0xff]  ;;  %4612 = vmatmul.mubr.f32.gmra.mxu0 %v2267_v12  ;;  %v8473_v6 = vld [vmem:[#allocation35_spill] sm:$0xff] }
 0x530   : > { %1487 = vst [vmem:[%s7628_s16 + $0x38] sm:$0xff] %v1418_v46  ;;  %1488 = vst [vmem:[%s7628_s16 + $0x40] sm:$0xff] %v1285_v60  ;;  %v2274_v53 = vmul.f32 %v8469_v5, %v7506_v8  ;;  %4311 = vmatprep.mubr.f32.mxu1 %v2270_v55  ;;  %v7672_v36 = vpop.f32.mrf.mxu1  ;;  %4616 = vmatprep.mubr.f32.mxu0 %v2272_v3  ;;  %v8471_v46 = vld [vmem:[#allocation16_spill] sm:$0xff]  ;;  %v1428_v38 = vadd.f32 %v8473_v6, %v1127_v25  ;;  %v1132_v5 = vpop.permute.xlu0 %1131  ;;  %v8475_v55 = vld [vmem:[#allocation18_spill] sm:$0xff] }
 0x531   : > { %1489 = vst [vmem:[%s7628_s16 + $0x48] sm:$0xff] %v1287_v63  ;;  %1490 = vst [vmem:[%s7628_s16 + $0x50] sm:$0xff] %v1422_v49  ;;  %v1291_v60 = vadd.f32 %v8471_v46, %v1127_v25  ;;  %v8472_v63 = vld [vmem:[#allocation17_spill] sm:$0xff]  ;;  %v8474_v13 = vld [vmem:[#allocation36_spill] sm:$0xff]  ;;  %v7678_v12 = vpop.f32.mrf.mxu0  ;;  %4312 = vmatmul.mubr.f32.gmra.mxu1 %v2269_v1 }
 0x532   : > { %8466 = vst [vmem:[#allocation52_spill] sm:$0xff] %v7663_v45  ;;  %1491 = vst [vmem:[%s7628_s16 + $0x58] sm:$0xff] %v1424_v33  ;;  %v1293_v49 = vadd.f32 %v8472_v63, %v1127_v25  ;;  %v1430_v58 = vadd.f32 %v8474_v13, %v1127_v25  ;;  %v1297_v33 = vadd.f32 %v8475_v55, %v1132_v5  ;;  %v8476_v45 = vld [vmem:[#allocation19_spill] sm:$0xff]  ;;  %v8477_v3 = vld [vmem:[#allocation37_spill] sm:$0xff]  ;;  %v7684_v63 = vpop.f32.mrf.mxu1  ;;  %4316 = vmatprep.mubr.f32.mxu1 %v2274_v53 }
 0x533   : > { %8470 = vst [vmem:[#allocation55_spill] sm:$0xff] %v7672_v36  ;;  %v1299_v36 = vadd.f32 %v8476_v45, %v1132_v5  ;;  %v1434_v41 = vadd.f32 %v8477_v3, %v1132_v5  ;;  %v8478_v46 = vld [vmem:[#allocation38_spill] sm:$0xff]  ;;  %1492 = vst [vmem:[%s7628_s16 + $0x60] sm:$0xff] %v1291_v60  ;;  %v7692_v13 = vpop.f32.mrf.mxu0  ;;  %4617 = vmatmul.mubr.f32.gmra.mxu0 %v2271_v40  ;;  %v8483_v3 = vld [vmem:[#allocation39_spill] sm:$0xff] }
 0x534   : > { %v1436_v18 = vadd.f32 %v8478_v46, %v1132_v5  ;;  %v8479_v6 = vld [vmem:[#allocation66_spill] sm:$0xff]  ;;  %1493 = vst [vmem:[%s7628_s16 + $0x68] sm:$0xff] %v1293_v49  ;;  %1494 = vst [vmem:[%s7628_s16 + $0x70] sm:$0xff] %v1428_v38  ;;  %v1137_v5 = vpop.permute.xlu1 %1136  ;;  %v7700_v1 = vpop.f32.mrf.mxu1  ;;  %v8482_v49 = vld [vmem:[#allocation21_spill] sm:$0xff] }
 0x535   : > { %v2276_v25 = vmul.f32 %v8479_v6, %v7528_v35  ;;  %1495 = vst [vmem:[%s7628_s16 + $0x78] sm:$0xff] %v1430_v58  ;;  %v8480_v45 = vld [vmem:[#allocation62_spill] sm:$0xff]  ;;  %1496 = vst [vmem:[%s7628_s16 + $0x80] sm:$0xff] %v1297_v33  ;;  %v8481_v58 = vld [vmem:[#allocation20_spill] sm:$0xff]  ;;  %v1305_v38 = vadd.f32 %v8482_v49, %v1137_v5  ;;  %v1440_v46 = vadd.f32 %v8483_v3, %v1137_v5  ;;  %v7706_v33 = vpop.f32.mrf.mxu0 }
 0x536   : > { %v2273_v55 = vmul.f32 %v8480_v45, %v7526_v9  ;;  %1497 = vst [vmem:[%s7628_s16 + $0x88] sm:$0xff] %v1299_v36  ;;  %1498 = vst [vmem:[%s7628_s16 + $0x90] sm:$0xff] %v1434_v41  ;;  %v1303_v60 = vadd.f32 %v8481_v58, %v1137_v5  ;;  %v8484_v40 = vld [vmem:[#allocation40_spill] sm:$0xff]  ;;  %v8485_v41 = vld [vmem:[#allocation63_spill] sm:$0xff]  ;;  %v7712_v6 = vpop.f32.mrf.mxu1 }
 0x537   : > { %1499 = vst [vmem:[%s7628_s16 + $0x98] sm:$0xff] %v1436_v18  ;;  %4621 = vmatprep.mubr.f32.mxu0 %v2276_v25  ;;  %v1442_v53 = vadd.f32 %v8484_v40, %v1137_v5  ;;  %v2275_v36 = vmul.f32 %v8485_v41, %v7546_v42  ;;  %v2540_v18 = vmul.f32 %v7347_v24, %v7068_v7  ;;  %1501 = vst [vmem:[%s7628_s16 + $0xa8] sm:$0xff] %v1305_v38  ;;  %v7720_v45 = vpop.f32.mrf.mxu0  ;;  %v8486_v58 = vld [vmem:[#allocation67_spill] sm:$0xff]  ;;  %v8487_v3 = vld [vmem:[#allocation68_spill] sm:$0xff] }
 0x538   : > { %v2542_v25 = vmul.f32 %v7357_v20, %v7080_v56  ;;  %4317 = vmatmul.mubr.f32.gmra.mxu1 %v2273_v55  ;;  %1500 = vst [vmem:[%s7628_s16 + $0xa0] sm:$0xff] %v1303_v60  ;;  %1502 = vst [vmem:[%s7628_s16 + $0xb0] sm:$0xff] %v1440_v46  ;;  %v7722_v5 = vpop.f32.mrf.mxu1  ;;  %v2539_v49 = vmul.f32 %v8486_v58, %v7321_v57  ;;  %v2541_v20 = vmul.f32 %v8487_v3, %v7349_v37 }
 0x539   : > { %1503 = vst [vmem:[%s7628_s16 + $0xb8] sm:$0xff] %v1442_v53  ;;  %4622 = vmatmul.mubr.f32.gmra.mxu0 %v2275_v36  ;;  %4321 = vmatprep.mubr.f32.mxu1 %v2540_v18  ;;  %v7726_v24 = vpop.f32.mrf.mxu0  ;;  %v2544_v55 = vmul.f32 %v7392_v19, %v7336_v61  ;;  %v2546_v38 = vmul.f32 %v7399_v31, %v7371_v51  ;;  %v8488_v53 = vld [vmem:[#allocation71_spill] sm:$0xff]  ;;  %v8489_v19 = vld [vmem:[#allocation72_spill] sm:$0xff] }
 0x53a   : > { %4626 = vmatprep.mubr.f32.mxu0 %v2542_v25  ;;  %v7732_v60 = vpop.f32.mrf.mxu1  ;;  %v2543_v41 = vmul.f32 %v8488_v53, %v7359_v16  ;;  %v2545_v18 = vmul.f32 %v8489_v19, %v7401_v39  ;;  %v2548_v25 = vmul.f32 %v7432_v52, %v7376_v14  ;;  %v2550_v58 = vmul.f32 %v7441_v15, %v7411_v2  ;;  %v8492_v52 = vld [vmem:[#allocation75_spill] sm:$0xff]  ;;  %v8493_v53 = vld [vmem:[#allocation42_spill] sm:$0xff] }
 0x53b   : > { %v7736_v46 = vpop.f32.mrf.mxu0  ;;  %v2552_v19 = vmul.f32 %v8493_v53, %v7424_v32  ;;  %v8495_v53 = vld [vmem:[#allocation22_spill] sm:$0xff] }
 0x53c   : > { %4322 = vmatmul.mubr.f32.gmra.mxu1 %v2539_v49  ;;  %v7738_v40 = vpop.f32.mrf.mxu1 }
 0x53d   : > { %4627 = vmatmul.mubr.f32.gmra.mxu0 %v2541_v20  ;;  %4326 = vmatprep.mubr.f32.mxu1 %v2544_v55  ;;  %v7742_v36 = vpop.f32.mrf.mxu0  ;;  %v2547_v20 = vmul.f32 %v7409_v50, %v7405_v27 }
 0x53e   : > { %4631 = vmatprep.mubr.f32.mxu0 %v2546_v38  ;;  %v7748_v31 = vpop.f32.mrf.mxu1  ;;  %v2549_v38 = vmul.f32 %v8492_v52, %v7443_v34 }
 0x53f   : > { %v7752_v49 = vpop.f32.mrf.mxu0 }
 0x540   : > { %4327 = vmatmul.mubr.f32.gmra.mxu1 %v2543_v41  ;;  %v7754_v3 = vpop.f32.mrf.mxu1  ;;  %v2554_v41 = vmul.f32 %v7481_v0, %v7453_v4 }
 0x541   : > { %4632 = vmatmul.mubr.f32.gmra.mxu0 %v2545_v18  ;;  %4331 = vmatprep.mubr.f32.mxu1 %v2548_v25  ;;  %8490 = vst [vmem:[#allocation12_spill] sm:$0xff] %v7754_v3  ;;  %v7758_v55 = vpop.f32.mrf.mxu0  ;;  %v8494_v25 = vld [vmem:[#allocation41_spill] sm:$0xff]  ;;  %v2556_v3 = vmul.f32 %v7512_v21, %v7464_v30  ;;  %v2557_v21 = vmul.f32 %v7501_v48, %v7518_v44 }
 0x542   : > { %4636 = vmatprep.mubr.f32.mxu0 %v2550_v58  ;;  %8491 = vst [vmem:[#allocation13_spill] sm:$0xff] %v7758_v55  ;;  %v7764_v15 = vpop.f32.mrf.mxu1  ;;  %v2551_v58 = vmul.f32 %v8494_v25, %v7451_v10  ;;  %v2553_v55 = vmul.f32 %v8495_v53, %v7483_v54  ;;  %v2560_v53 = vmul.f32 %v7538_v11, %v7506_v8 }
 0x543   : > { %v7768_v18 = vpop.f32.mrf.mxu0  ;;  %v2561_v11 = vmul.f32 %v7532_v29, %v7546_v42 }
 0x544   : > { %4332 = vmatmul.mubr.f32.gmra.mxu1 %v2547_v20  ;;  %v7770_v50 = vpop.f32.mrf.mxu1  ;;  %v2558_v20 = vmul.f32 %v7516_v59, %v7491_v17 }
 0x545   : > { %4637 = vmatmul.mubr.f32.gmra.mxu0 %v2549_v38  ;;  %4336 = vmatprep.mubr.f32.mxu1 %v2552_v19  ;;  %v7774_v52 = vpop.f32.mrf.mxu0 }
 0x546   : > { %4641 = vmatprep.mubr.f32.mxu0 %v2554_v41  ;;  %v7780_v0 = vpop.f32.mrf.mxu1  ;;  %v2555_v41 = vmul.f32 %v7489_v28, %v7487_v22 }
 0x547   : > { %v7784_v38 = vpop.f32.mrf.mxu0 }
 0x548   : > { %4337 = vmatmul.mubr.f32.gmra.mxu1 %v2551_v58  ;;  %v7786_v19 = vpop.f32.mrf.mxu1  ;;  %v2559_v58 = vmul.f32 %v7524_v62, %v7526_v9 }
 0x549   : > { %4642 = vmatmul.mubr.f32.gmra.mxu0 %v2553_v55  ;;  %4341 = vmatprep.mubr.f32.mxu1 %v2556_v3  ;;  %v7790_v25 = vpop.f32.mrf.mxu0  ;;  %v2562_v55 = vmul.f32 %v7544_v47, %v7528_v35 }
 0x54a   : > { %4646 = vmatprep.mubr.f32.mxu0 %v2558_v20  ;;  %v7796_v59 = vpop.f32.mrf.mxu1  ;;  %v2826_v20 = vmul.f32 %v7560_v26, %v7068_v7  ;;  %v8501_v26 = vld [vmem:[#allocation28_spill] sm:$0xff] }
 0x54b   : > { %v7800_v3 = vpop.f32.mrf.mxu0 }
 0x54c   : > { %4342 = vmatmul.mubr.f32.gmra.mxu1 %v2555_v41  ;;  %v7802_v28 = vpop.f32.mrf.mxu1  ;;  %v2828_v41 = vmul.f32 %v7564_v23, %v7080_v56 }
 0x54d   : > { %4647 = vmatmul.mubr.f32.gmra.mxu0 %v2557_v21  ;;  %4346 = vmatprep.mubr.f32.mxu1 %v2560_v53  ;;  %8496 = vst [vmem:[#allocation31_spill] sm:$0xff] %v7802_v28  ;;  %v7806_v48 = vpop.f32.mrf.mxu0  ;;  %v2825_v53 = vmul.f32 %v7548_v43, %v7321_v57  ;;  %v8506_v43 = vld [vmem:[#allocation77_spill] sm:$0xff] }
 0x54e   : > { %4651 = vmatprep.mubr.f32.mxu0 %v2562_v55  ;;  %8497 = vst [vmem:[#allocation32_spill] sm:$0xff] %v7806_v48  ;;  %v7812_v47 = vpop.f32.mrf.mxu1  ;;  %v2827_v55 = vmul.f32 %v8501_v26, %v7349_v37  ;;  %v8502_v48 = vld [vmem:[#allocation80_spill] sm:$0xff] }
 0x54f   : > { %v7816_v21 = vpop.f32.mrf.mxu0  ;;  %v2830_v28 = vmul.f32 %v8502_v48, %v7336_v61  ;;  %v8509_v48 = vld [vmem:[#allocation79_spill] sm:$0xff] }
 0x550   : > { %4347 = vmatmul.mubr.f32.gmra.mxu1 %v2559_v58  ;;  %8498 = vst [vmem:[#allocation14_spill] sm:$0xff] %v7816_v21  ;;  %v7818_v62 = vpop.f32.mrf.mxu1  ;;  %v8504_v58 = vld [vmem:[#allocation81_spill] sm:$0xff] }
 0x551   : > { %4652 = vmatmul.mubr.f32.gmra.mxu0 %v2561_v11  ;;  %4351 = vmatprep.mubr.f32.mxu1 %v2826_v20  ;;  %8499 = vst [vmem:[#allocation15_spill] sm:$0xff] %v7818_v62  ;;  %v7822_v29 = vpop.f32.mrf.mxu0  ;;  %v2832_v11 = vmul.f32 %v8504_v58, %v7371_v51  ;;  %v2831_v62 = vmul.f32 %v8509_v48, %v7401_v39 }
 0x552   : > { %4656 = vmatprep.mubr.f32.mxu0 %v2828_v41  ;;  %8500 = vst [vmem:[#allocation33_spill] sm:$0xff] %v7822_v29  ;;  %v7828_v23 = vpop.f32.mrf.mxu1  ;;  %v2829_v41 = vmul.f32 %v8506_v43, %v7359_v16 }
 0x553   : > { %8503 = vst [vmem:[#allocation53_spill] sm:$0xff] %v7828_v23  ;;  %v7832_v20 = vpop.f32.mrf.mxu0  ;;  %v8510_v23 = vld [vmem:[#allocation47_spill] sm:$0xff] }
 0x554   : > { %4352 = vmatmul.mubr.f32.gmra.mxu1 %v2825_v53  ;;  %8505 = vst [vmem:[#allocation59_spill] sm:$0xff] %v7832_v20  ;;  %v7836_v29 = vpop.f32.mrf.mxu1  ;;  %v2834_v21 = vmul.f32 %v8510_v23, %v7376_v14  ;;  %v8511_v53 = vld [vmem:[#allocation51_spill] sm:$0xff]  ;;  %v8517_v23 = vld [vmem:[#allocation84_spill] sm:$0xff] }
 0x555   : > { %4657 = vmatmul.mubr.f32.gmra.mxu0 %v2827_v55  ;;  %4356 = vmatprep.mubr.f32.mxu1 %v2830_v28  ;;  %8507 = vst [vmem:[#allocation34_spill] sm:$0xff] %v7836_v29  ;;  %v7838_v26 = vpop.f32.mrf.mxu0  ;;  %v2836_v58 = vmul.f32 %v8511_v53, %v7411_v2  ;;  %v2835_v29 = vmul.f32 %v8517_v23, %v7443_v34  ;;  %v8518_v53 = vld [vmem:[#allocation11_spill] sm:$0xff] }
 0x556   : > { %4661 = vmatprep.mubr.f32.mxu0 %v2832_v11  ;;  %8508 = vst [vmem:[#allocation60_spill] sm:$0xff] %v7838_v26  ;;  %v7846_v55 = vpop.f32.mrf.mxu1  ;;  %v8514_v11 = vld [vmem:[#allocation83_spill] sm:$0xff] }
 0x557   : > { %8512 = vst [vmem:[#allocation57_spill] sm:$0xff] %v7846_v55  ;;  %v7848_v28 = vpop.f32.mrf.mxu0  ;;  %v2833_v43 = vmul.f32 %v8514_v11, %v7405_v27  ;;  %v8519_v55 = vld [vmem:[#allocation29_spill] sm:$0xff] }
 0x558   : > { %4357 = vmatmul.mubr.f32.gmra.mxu1 %v2829_v41  ;;  %8513 = vst [vmem:[#allocation58_spill] sm:$0xff] %v7848_v28  ;;  %v7852_v26 = vpop.f32.mrf.mxu1  ;;  %v2838_v41 = vmul.f32 %v8518_v53, %v7424_v32  ;;  %v2840_v20 = vmul.f32 %v8519_v55, %v7453_v4  ;;  %v8524_v53 = vld [vmem:[#allocation10_spill] sm:$0xff] }
 0x559   : > { %4662 = vmatmul.mubr.f32.gmra.mxu0 %v2831_v62  ;;  %4361 = vmatprep.mubr.f32.mxu1 %v2834_v21  ;;  %8515 = vst [vmem:[#allocation65_spill] sm:$0xff] %v7852_v26  ;;  %v7854_v48 = vpop.f32.mrf.mxu0  ;;  %v2839_v26 = vmul.f32 %v8524_v53, %v7483_v54  ;;  %v8525_v55 = vld [vmem:[#allocation54_spill] sm:$0xff] }
 0x55a   : > { %4666 = vmatprep.mubr.f32.mxu0 %v2836_v58  ;;  %8516 = vst [vmem:[#allocation16_spill] sm:$0xff] %v7854_v48  ;;  %v7862_v62 = vpop.f32.mrf.mxu1  ;;  %v8521_v58 = vld [vmem:[#allocation48_spill] sm:$0xff] }
 0x55b   : > { %8520 = vst [vmem:[#allocation17_spill] sm:$0xff] %v7862_v62  ;;  %v7864_v21 = vpop.f32.mrf.mxu0  ;;  %v2837_v11 = vmul.f32 %v8521_v58, %v7451_v10  ;;  %v8526_v62 = vld [vmem:[#allocation52_spill] sm:$0xff] }
 0x55c   : > { %4362 = vmatmul.mubr.f32.gmra.mxu1 %v2833_v43  ;;  %v7868_v48 = vpop.f32.mrf.mxu1  ;;  %v2842_v43 = vmul.f32 %v8525_v55, %v7464_v30  ;;  %v2844_v28 = vmul.f32 %v8526_v62, %v7491_v17  ;;  %v2846_v55 = vmul.f32 %v7684_v63, %v7506_v8  ;;  %v2847_v63 = vmul.f32 %v7678_v12, %v7546_v42 }
 0x55d   : > { %4667 = vmatmul.mubr.f32.gmra.mxu0 %v2835_v29  ;;  %4366 = vmatprep.mubr.f32.mxu1 %v2838_v41  ;;  %8522 = vst [vmem:[#allocation35_spill] sm:$0xff] %v7868_v48  ;;  %v7870_v23 = vpop.f32.mrf.mxu0 }
 0x55e   : > { %4671 = vmatprep.mubr.f32.mxu0 %v2840_v20  ;;  %8523 = vst [vmem:[#allocation36_spill] sm:$0xff] %v7870_v23  ;;  %v7878_v29 = vpop.f32.mrf.mxu1  ;;  %v8527_v20 = vld [vmem:[#allocation30_spill] sm:$0xff]  ;;  %v8528_v23 = vld [vmem:[#allocation49_spill] sm:$0xff] }
 0x55f   : > { %v7880_v41 = vpop.f32.mrf.mxu0  ;;  %v2841_v58 = vmul.f32 %v8527_v20, %v7487_v22  ;;  %v2843_v53 = vmul.f32 %v8528_v23, %v7518_v44  ;;  %v3100_v20 = vmul.f32 %v7712_v6, %v7068_v7  ;;  %v3101_v6 = vmul.f32 %v7706_v33, %v7349_v37 }
 0x560   : > { %4367 = vmatmul.mubr.f32.gmra.mxu1 %v2837_v11  ;;  %v7888_v48 = vpop.f32.mrf.mxu1  ;;  %v2848_v11 = vmul.f32 %v7692_v13, %v7528_v35  ;;  %v3102_v13 = vmul.f32 %v7720_v45, %v7080_v56  ;;  %v3104_v45 = vmul.f32 %v7732_v60, %v7336_v61  ;;  %v3105_v33 = vmul.f32 %v7726_v24, %v7401_v39 }
 0x561   : > { %4672 = vmatmul.mubr.f32.gmra.mxu0 %v2839_v26  ;;  %4371 = vmatprep.mubr.f32.mxu1 %v2842_v43  ;;  %v7890_v62 = vpop.f32.mrf.mxu0  ;;  %v3108_v60 = vmul.f32 %v7748_v31, %v7376_v14  ;;  %v3109_v24 = vmul.f32 %v7742_v36, %v7443_v34  ;;  %v3112_v31 = vmul.f32 %v7764_v15, %v7424_v32 }
 0x562   : > { %4676 = vmatprep.mubr.f32.mxu0 %v2844_v28  ;;  %v7894_v26 = vpop.f32.mrf.mxu1  ;;  %v8529_v28 = vld [vmem:[#allocation55_spill] sm:$0xff]  ;;  %v3116_v15 = vmul.f32 %v7780_v0, %v7464_v30  ;;  %v3120_v0 = vmul.f32 %v7796_v59, %v7506_v8  ;;  %v3386_v59 = vmul.f32 %v7812_v47, %v7068_v7 }
 0x563   : > { %v7896_v43 = vpop.f32.mrf.mxu0  ;;  %v2845_v23 = vmul.f32 %v8529_v28, %v7526_v9  ;;  %v3106_v28 = vmul.f32 %v7736_v46, %v7371_v51  ;;  %v3110_v46 = vmul.f32 %v7752_v49, %v7411_v2  ;;  %v3114_v49 = vmul.f32 %v7768_v18, %v7453_v4 }
 0x564   : > { %4372 = vmatmul.mubr.f32.gmra.mxu1 %v2841_v58  ;;  %v7906_v58 = vpop.f32.mrf.mxu1  ;;  %v3118_v18 = vmul.f32 %v7784_v38, %v7491_v17  ;;  %v3122_v38 = vmul.f32 %v7800_v3, %v7528_v35 }
 0x565   : > { %4677 = vmatmul.mubr.f32.gmra.mxu0 %v2843_v53  ;;  %4376 = vmatprep.mubr.f32.mxu1 %v2846_v55  ;;  %v7908_v53 = vpop.f32.mrf.mxu0  ;;  %v3099_v55 = vmul.f32 %v7700_v1, %v7321_v57 }
 0x566   : > { %4681 = vmatprep.mubr.f32.mxu0 %v2848_v11  ;;  %v7912_v11 = vpop.f32.mrf.mxu1 }
 0x567   : > { %v7914_v12 = vpop.f32.mrf.mxu0 }
 0x568   : > { %4377 = vmatmul.mubr.f32.gmra.mxu1 %v2845_v23  ;;  %v7922_v23 = vpop.f32.mrf.mxu1 }
 0x569   : > { %4682 = vmatmul.mubr.f32.gmra.mxu0 %v2847_v63  ;;  %4381 = vmatprep.mubr.f32.mxu1 %v3100_v20  ;;  %v7924_v1 = vpop.f32.mrf.mxu0  ;;  %v3103_v63 = vmul.f32 %v7722_v5, %v7359_v16  ;;  %v3107_v5 = vmul.f32 %v7738_v40, %v7405_v27 }
 0x56a   : > { %4686 = vmatprep.mubr.f32.mxu0 %v3102_v13  ;;  %v7934_v20 = vpop.f32.mrf.mxu1 }
 0x56b   : > { %v7936_v13 = vpop.f32.mrf.mxu0 }
 0x56c   : > { %4382 = vmatmul.mubr.f32.gmra.mxu1 %v3099_v55  ;;  %v7946_v55 = vpop.f32.mrf.mxu1 }
 0x56d   : > { %4687 = vmatmul.mubr.f32.gmra.mxu0 %v3101_v6  ;;  %4386 = vmatprep.mubr.f32.mxu1 %v3104_v45  ;;  %v7948_v6 = vpop.f32.mrf.mxu0  ;;  %v8530_v45 = vld [vmem:[#allocation12_spill] sm:$0xff] }
 0x56e   : > { %4691 = vmatprep.mubr.f32.mxu0 %v3106_v28  ;;  %v3111_v40 = vmul.f32 %v8530_v45, %v7451_v10  ;;  %v8531_v28 = vld [vmem:[#allocation13_spill] sm:$0xff] }
 0x56f   : > { %v3113_v36 = vmul.f32 %v8531_v28, %v7483_v54  ;;  %v8534_v28 = vld [vmem:[#allocation32_spill] sm:$0xff] }
 0x570   : > { %4387 = vmatmul.mubr.f32.gmra.mxu1 %v3103_v63  ;;  %v7958_v63 = vpop.f32.mrf.mxu1 }
 0x571   : > { %4692 = vmatmul.mubr.f32.gmra.mxu0 %v3105_v33  ;;  %4391 = vmatprep.mubr.f32.mxu1 %v3108_v60  ;;  %v7960_v33 = vpop.f32.mrf.mxu0  ;;  %v3115_v60 = vmul.f32 %v7770_v50, %v7487_v22  ;;  %v3119_v50 = vmul.f32 %v7786_v19, %v7526_v9 }
 0x572   : > { %4696 = vmatprep.mubr.f32.mxu0 %v3110_v46  ;;  %v3117_v46 = vmul.f32 %v7774_v52, %v7518_v44  ;;  %v3121_v52 = vmul.f32 %v7790_v25, %v7546_v42  ;;  %v3387_v25 = vmul.f32 %v8534_v28, %v7349_v37 }
 0x574   : > { %4392 = vmatmul.mubr.f32.gmra.mxu1 %v3107_v5  ;;  %v7970_v5 = vpop.f32.mrf.mxu1 }
 0x575   : > { %4697 = vmatmul.mubr.f32.gmra.mxu0 %v3109_v24  ;;  %4396 = vmatprep.mubr.f32.mxu1 %v3112_v31  ;;  %v7972_v24 = vpop.f32.mrf.mxu0  ;;  %v8532_v31 = vld [vmem:[#allocation14_spill] sm:$0xff] }
 0x576   : > { %4701 = vmatprep.mubr.f32.mxu0 %v3114_v49  ;;  %v3388_v3 = vmul.f32 %v8532_v31, %v7080_v56  ;;  %v7982_v49 = vpop.f32.mrf.mxu1 }
 0x577   : > { %v7984_v45 = vpop.f32.mrf.mxu0 }
 0x578   : > { %4397 = vmatmul.mubr.f32.gmra.mxu1 %v3111_v40  ;;  %v8533_v40 = vld [vmem:[#allocation31_spill] sm:$0xff] }
 0x579   : > { %4702 = vmatmul.mubr.f32.gmra.mxu0 %v3113_v36  ;;  %4401 = vmatprep.mubr.f32.mxu1 %v3116_v15  ;;  %v3385_v19 = vmul.f32 %v8533_v40, %v7321_v57  ;;  %v8535_v36 = vld [vmem:[#allocation53_spill] sm:$0xff]  ;;  %v8536_v15 = vld [vmem:[#allocation59_spill] sm:$0xff] }
 0x57a   : > { %4706 = vmatprep.mubr.f32.mxu0 %v3118_v18  ;;  %v3390_v47 = vmul.f32 %v8535_v36, %v7336_v61  ;;  %v3392_v18 = vmul.f32 %v8536_v15, %v7371_v51 }
 0x57c   : > { %4402 = vmatmul.mubr.f32.gmra.mxu1 %v3115_v60  ;;  %v7994_v60 = vpop.f32.mrf.mxu1 }
 0x57d   : > { %4707 = vmatmul.mubr.f32.gmra.mxu0 %v3117_v46  ;;  %4406 = vmatprep.mubr.f32.mxu1 %v3120_v0  ;;  %v7996_v46 = vpop.f32.mrf.mxu0  ;;  %v8537_v0 = vld [vmem:[#allocation15_spill] sm:$0xff] }
 0x57e   : > { %4711 = vmatprep.mubr.f32.mxu0 %v3122_v38  ;;  %v3389_v38 = vmul.f32 %v8537_v0, %v7359_v16 }
 0x57f   : > { %v8008_v28 = vpop.f32.mrf.mxu0 }
 0x580   : > { %4407 = vmatmul.mubr.f32.gmra.mxu1 %v3119_v50  ;;  %v8538_v50 = vld [vmem:[#allocation33_spill] sm:$0xff] }
 0x581   : > { %4712 = vmatmul.mubr.f32.gmra.mxu0 %v3121_v52  ;;  %4411 = vmatprep.mubr.f32.mxu1 %v3386_v59  ;;  %v3391_v52 = vmul.f32 %v8538_v50, %v7401_v39  ;;  %v8539_v59 = vld [vmem:[#allocation57_spill] sm:$0xff]  ;;  %v3400_v50 = vmul.f32 %v7864_v21, %v7453_v4  ;;  %v3404_v21 = vmul.f32 %v7880_v41, %v7491_v17 }
 0x582   : > { %4716 = vmatprep.mubr.f32.mxu0 %v3388_v3  ;;  %v3394_v31 = vmul.f32 %v8539_v59, %v7376_v14  ;;  %v8540_v3 = vld [vmem:[#allocation58_spill] sm:$0xff]  ;;  %v3408_v41 = vmul.f32 %v7896_v43, %v7528_v35  ;;  %v3674_v43 = vmul.f32 %v7914_v12, %v7080_v56 }
 0x583   : > { %v3396_v40 = vmul.f32 %v8540_v3, %v7411_v2  ;;  %v8545_v3 = vld [vmem:[#allocation16_spill] sm:$0xff] }
 0x584   : > { %4412 = vmatmul.mubr.f32.gmra.mxu1 %v3385_v19  ;;  %v8006_v19 = vpop.f32.mrf.mxu1 }
 0x585   : > { %4717 = vmatmul.mubr.f32.gmra.mxu0 %v3387_v25  ;;  %4416 = vmatprep.mubr.f32.mxu1 %v3390_v47  ;;  %v8541_v25 = vld [vmem:[#allocation34_spill] sm:$0xff]  ;;  %v8542_v47 = vld [vmem:[#allocation60_spill] sm:$0xff] }
 0x586   : > { %4721 = vmatprep.mubr.f32.mxu0 %v3392_v18  ;;  %v3393_v36 = vmul.f32 %v8541_v25, %v7405_v27  ;;  %v3395_v15 = vmul.f32 %v8542_v47, %v7443_v34  ;;  %v8543_v18 = vld [vmem:[#allocation17_spill] sm:$0xff]  ;;  %v8018_v59 = vpop.f32.mrf.mxu1  ;;  %v3402_v25 = vmul.f32 %v7878_v29, %v7464_v30  ;;  %v3406_v29 = vmul.f32 %v7894_v26, %v7506_v8 }
 0x587   : > { %v3398_v0 = vmul.f32 %v8543_v18, %v7424_v32  ;;  %v3672_v26 = vmul.f32 %v7912_v11, %v7068_v7  ;;  %v3678_v11 = vmul.f32 %v7936_v13, %v7371_v51  ;;  %v3682_v13 = vmul.f32 %v7960_v33, %v7411_v2 }
 0x588   : > { %4417 = vmatmul.mubr.f32.gmra.mxu1 %v3389_v38  ;;  %v8020_v38 = vpop.f32.mrf.mxu0  ;;  %v8030_v47 = vpop.f32.mrf.mxu1 }
 0x589   : > { %4722 = vmatmul.mubr.f32.gmra.mxu0 %v3391_v52  ;;  %4421 = vmatprep.mubr.f32.mxu1 %v3394_v31  ;;  %v8544_v52 = vld [vmem:[#allocation65_spill] sm:$0xff] }
 0x58a   : > { %4726 = vmatprep.mubr.f32.mxu0 %v3396_v40  ;;  %v3397_v31 = vmul.f32 %v8544_v52, %v7451_v10  ;;  %v3399_v40 = vmul.f32 %v8545_v3, %v7483_v54  ;;  %v8042_v52 = vpop.f32.mrf.mxu1  ;;  %v3405_v3 = vmul.f32 %v7888_v48, %v7526_v9  ;;  %v3673_v48 = vmul.f32 %v7908_v53, %v7349_v37 }
 0x58b   : > { %v3677_v53 = vmul.f32 %v7924_v1, %v7401_v39  ;;  %v3684_v1 = vmul.f32 %v7982_v49, %v7424_v32  ;;  %v3690_v49 = vmul.f32 %v8008_v28, %v7491_v17 }
 0x58c   : > { %4422 = vmatmul.mubr.f32.gmra.mxu1 %v3393_v36  ;;  %v8032_v36 = vpop.f32.mrf.mxu0 }
 0x58d   : > { %4727 = vmatmul.mubr.f32.gmra.mxu0 %v3395_v15  ;;  %4426 = vmatprep.mubr.f32.mxu1 %v3398_v0  ;;  %v8546_v15 = vld [vmem:[#allocation35_spill] sm:$0xff]  ;;  %v8547_v0 = vld [vmem:[#allocation36_spill] sm:$0xff] }
 0x58e   : > { %4731 = vmatprep.mubr.f32.mxu0 %v3400_v50  ;;  %v3401_v18 = vmul.f32 %v8546_v15, %v7487_v22  ;;  %v3403_v50 = vmul.f32 %v8547_v0, %v7518_v44  ;;  %v3671_v15 = vmul.f32 %v7906_v58, %v7321_v57  ;;  %v3675_v58 = vmul.f32 %v7922_v23, %v7359_v16 }
 0x58f   : > { %v3681_v23 = vmul.f32 %v7948_v6, %v7443_v34  ;;  %v3688_v6 = vmul.f32 %v8006_v19, %v7464_v30  ;;  %v3694_v19 = vmul.f32 %v8032_v36, %v7528_v35  ;;  %v3957_v36 = vmul.f32 %v8042_v52, %v7321_v57 }
 0x590   : > { %4427 = vmatmul.mubr.f32.gmra.mxu1 %v3397_v31  ;;  %v8044_v31 = vpop.f32.mrf.mxu0 }
 0x591   : > { %4732 = vmatmul.mubr.f32.gmra.mxu0 %v3399_v40  ;;  %4431 = vmatprep.mubr.f32.mxu1 %v3402_v25  ;;  %v3407_v40 = vmul.f32 %v7890_v62, %v7546_v42  ;;  %v3823_v25 = vpop.f32.mrf.mxu1  ;;  %v3676_v62 = vmul.f32 %v7934_v20, %v7336_v61  ;;  %v3680_v20 = vmul.f32 %v7958_v63, %v7376_v14 }
 0x592   : > { %4736 = vmatprep.mubr.f32.mxu0 %v3404_v21  ;;  %v3924_v21 = vpop.f32.mrf.mxu0  ;;  %v3686_v63 = vmul.f32 %v7984_v45, %v7453_v4 }
 0x594   : > { %4432 = vmatmul.mubr.f32.gmra.mxu1 %v3401_v18  ;;  %v8062_v18 = vpop.f32.mrf.mxu1  ;;  %v8064_v12 = vpop.f32.mrf.mxu0 }
 0x595   : > { %4737 = vmatmul.mubr.f32.gmra.mxu0 %v3403_v50  ;;  %4436 = vmatprep.mubr.f32.mxu1 %v3406_v29  ;;  %v3679_v29 = vmul.f32 %v7946_v55, %v7405_v27  ;;  %v3685_v55 = vmul.f32 %v7972_v24, %v7483_v54  ;;  %v3692_v24 = vmul.f32 %v8030_v47, %v7506_v8 }
 0x596   : > { %4741 = vmatprep.mubr.f32.mxu0 %v3408_v41  ;;  %v3829_v0 = vpop.f32.mrf.mxu1  ;;  %v3930_v50 = vpop.f32.mrf.mxu0  ;;  %v3963_v57 = vmul.f32 %v8064_v12, %v7401_v39 }
 0x598   : > { %4437 = vmatmul.mubr.f32.gmra.mxu1 %v3405_v3  ;;  %v3833_v41 = vpop.f32.mrf.mxu1  ;;  %v3934_v33 = vpop.f32.mrf.mxu0  ;;  %v3683_v3 = vmul.f32 %v7970_v5, %v7451_v10  ;;  %v3689_v5 = vmul.f32 %v7996_v46, %v7518_v44  ;;  %v3958_v46 = vmul.f32 %v3823_v25, %v7068_v7 }
 0x599   : > { %4742 = vmatmul.mubr.f32.gmra.mxu0 %v3407_v40  ;;  %4441 = vmatprep.mubr.f32.mxu1 %v3672_v26  ;;  %v3687_v26 = vmul.f32 %v7994_v60, %v7487_v22  ;;  %v3693_v60 = vmul.f32 %v8020_v38, %v7546_v42  ;;  %v3964_v38 = vmul.f32 %v3930_v50, %v7371_v51 }
 0x59a   : > { %4746 = vmatprep.mubr.f32.mxu0 %v3674_v43  ;;  %v3835_v40 = vpop.f32.mrf.mxu1  ;;  %v3936_v45 = vpop.f32.mrf.mxu0  ;;  %v3965_v51 = vmul.f32 %v3833_v41, %v7405_v27  ;;  %v3967_v25 = vmul.f32 %v3934_v33, %v7443_v34 }
 0x59b   : > { %v3966_v52 = vmul.f32 %v3835_v40, %v7376_v14 }
 0x59c   : > { %4442 = vmatmul.mubr.f32.gmra.mxu1 %v3671_v15  ;;  %v3839_v43 = vpop.f32.mrf.mxu1  ;;  %v3940_v28 = vpop.f32.mrf.mxu0  ;;  %v3691_v15 = vmul.f32 %v8018_v59, %v7526_v9  ;;  %v3959_v59 = vmul.f32 %v8044_v31, %v7349_v37  ;;  %v3968_v37 = vmul.f32 %v3936_v45, %v7411_v2 }
 0x59d   : > { %4747 = vmatmul.mubr.f32.gmra.mxu0 %v3673_v48  ;;  %4446 = vmatprep.mubr.f32.mxu1 %v3676_v62  ;;  %v3960_v48 = vmul.f32 %v3924_v21, %v7080_v56  ;;  %v3961_v56 = vmul.f32 %v8062_v18, %v7359_v16  ;;  %v3969_v2 = vmul.f32 %v3839_v43, %v7451_v10 }
 0x59e   : > { %4751 = vmatprep.mubr.f32.mxu0 %v3678_v11  ;;  %v3841_v47 = vpop.f32.mrf.mxu1  ;;  %v3942_v62 = vpop.f32.mrf.mxu0  ;;  %v3962_v11 = vmul.f32 %v3829_v0, %v7336_v61  ;;  %v3971_v14 = vmul.f32 %v3940_v28, %v7483_v54 }
 0x59f   : > { %v3970_v16 = vmul.f32 %v3841_v47, %v7424_v32  ;;  %v3972_v21 = vmul.f32 %v3942_v62, %v7453_v4 }
 0x5a0   : > { %4447 = vmatmul.mubr.f32.gmra.mxu1 %v3675_v58  ;;  %v3845_v58 = vpop.f32.mrf.mxu1  ;;  %v3946_v7 = vpop.f32.mrf.mxu0 }
 0x5a1   : > { %4752 = vmatmul.mubr.f32.gmra.mxu0 %v3677_v53  ;;  %4451 = vmatprep.mubr.f32.mxu1 %v3680_v20  ;;  %v3973_v32 = vmul.f32 %v3845_v58, %v7487_v22  ;;  %v3975_v4 = vmul.f32 %v3946_v7, %v7518_v44 }
 0x5a2   : > { %4756 = vmatprep.mubr.f32.mxu0 %v3682_v13  ;;  %v3847_v31 = vpop.f32.mrf.mxu1  ;;  %v3948_v61 = vpop.f32.mrf.mxu0 }
 0x5a3   : > { %v3974_v12 = vmul.f32 %v3847_v31, %v7464_v30  ;;  %v3976_v27 = vmul.f32 %v3948_v61, %v7491_v17 }
 0x5a4   : > { %4452 = vmatmul.mubr.f32.gmra.mxu1 %v3679_v29  ;;  %v3851_v18 = vpop.f32.mrf.mxu1  ;;  %v3952_v39 = vpop.f32.mrf.mxu0 }
 0x5a5   : > { %4757 = vmatmul.mubr.f32.gmra.mxu0 %v3681_v23  ;;  %4456 = vmatprep.mubr.f32.mxu1 %v3684_v1  ;;  %v3977_v30 = vmul.f32 %v3851_v18, %v7526_v9  ;;  %v3979_v17 = vmul.f32 %v3952_v39, %v7546_v42  ;;  %v8553_v39 = vld [vmem:[#allocation44_spill] sm:$0xff] }
 0x5a6   : > { %4761 = vmatprep.mubr.f32.mxu0 %v3686_v63  ;;  %v3853_v53 = vpop.f32.mrf.mxu1  ;;  %v3954_v34 = vpop.f32.mrf.mxu0 }
 0x5a7   : > { %v3978_v20 = vmul.f32 %v3853_v53, %v7506_v8  ;;  %v3980_v10 = vmul.f32 %v3954_v34, %v7528_v35 }
 0x5a8   : > { %4457 = vmatmul.mubr.f32.gmra.mxu1 %v3683_v3 }
 0x5a9   : > { %4762 = vmatmul.mubr.f32.gmra.mxu0 %v3685_v55  ;;  %4461 = vmatprep.mubr.f32.mxu1 %v3688_v6 }
 0x5aa   : > { %4766 = vmatprep.mubr.f32.mxu0 %v3690_v49 }
 0x5ac   : > { %4462 = vmatmul.mubr.f32.gmra.mxu1 %v3687_v26 }
 0x5ad   : > { %4767 = vmatmul.mubr.f32.gmra.mxu0 %v3689_v5  ;;  %4466 = vmatprep.mubr.f32.mxu1 %v3692_v24 }
 0x5ae   : > { %4771 = vmatprep.mubr.f32.mxu0 %v3694_v19 }
 0x5b0   : > { %4467 = vmatmul.mubr.f32.gmra.mxu1 %v3691_v15 }
 0x5b1   : > { %4772 = vmatmul.mubr.f32.gmra.mxu0 %v3693_v60  ;;  %4471 = vmatprep.mubr.f32.mxu1 %v3958_v46  ;;  %v8548_v46 = vld [vmem:[#allocation56_spill] sm:$0xff] }
 0x5b2   : > { %4776 = vmatprep.mubr.f32.mxu0 %v3960_v48 }
 0x5b4   : > { %4472 = vmatmul.mubr.f32.gmra.mxu1 %v3957_v36 }
 0x5b5   : > { %4777 = vmatmul.mubr.f32.gmra.mxu0 %v3959_v59  ;;  %4476 = vmatprep.mubr.f32.mxu1 %v3962_v11  ;;  %v8549_v59 = vld [vmem:[#allocation64_spill] sm:$0xff] }
 0x5b6   : > { %4781 = vmatprep.mubr.f32.mxu0 %v3964_v38 }
 0x5b8   : > { %4477 = vmatmul.mubr.f32.gmra.mxu1 %v3961_v56  ;;  %v8550_v56 = vld [vmem:[#allocation43_spill] sm:$0xff] }
 0x5b9   : > { %4782 = vmatmul.mubr.f32.gmra.mxu0 %v3963_v57  ;;  %4481 = vmatprep.mubr.f32.mxu1 %v3966_v52  ;;  %v8551_v52 = vld [vmem:[#allocation61_spill] sm:$0xff] }
 0x5ba   : > { %4786 = vmatprep.mubr.f32.mxu0 %v3968_v37 }
 0x5bc   : > { %4482 = vmatmul.mubr.f32.gmra.mxu1 %v3965_v51 }
 0x5bd   : > { %4787 = vmatmul.mubr.f32.gmra.mxu0 %v3967_v25  ;;  %4486 = vmatprep.mubr.f32.mxu1 %v3970_v16  ;;  %v8552_v25 = vld [vmem:[#allocation69_spill] sm:$0xff] }
 0x5be   : > { %4791 = vmatprep.mubr.f32.mxu0 %v3972_v21 }
 0x5c0   : > { %4487 = vmatmul.mubr.f32.gmra.mxu1 %v3969_v2 }
 0x5c1   : > { %4792 = vmatmul.mubr.f32.gmra.mxu0 %v3971_v14  ;;  %4491 = vmatprep.mubr.f32.mxu1 %v3974_v12 }
 0x5c2   : > { %4796 = vmatprep.mubr.f32.mxu0 %v3976_v27 }
 0x5c4   : > { %4492 = vmatmul.mubr.f32.gmra.mxu1 %v3973_v32 }
 0x5c5   : > { %4797 = vmatmul.mubr.f32.gmra.mxu0 %v3975_v4  ;;  %4496 = vmatprep.mubr.f32.mxu1 %v3978_v20 }
 0x5c6   : > { %4801 = vmatprep.mubr.f32.mxu0 %v3980_v10 }
 0x5c8   : > { %4497 = vmatmul.mubr.f32.gmra.mxu1 %v3977_v30 }
 0x5c9   : > { %4802 = vmatmul.mubr.f32.gmra.mxu0 %v3979_v17  ;;  %v4263_v54 = vpop.f32.mrf.mxu1  ;;  %v4568_v13 = vpop.f32.mrf.mxu0 }
 0x5ca   : > { %v4569_v42 = vadd.f32 %v4568_v13, %v4263_v54 }
 0x5cb   : > { %v4265_v22 = vpop.f32.mrf.mxu1  ;;  %v4570_v0 = vpop.f32.mrf.mxu0 }
 0x5cd   : > { %v4268_v50 = vpop.f32.mrf.mxu1  ;;  %v4573_v44 = vpop.f32.mrf.mxu0 }
 0x5ce   : > { %v4574_v19 = vadd.f32 %v4573_v44, %v4268_v50 }
 0x5cf   : > { %v4270_v29 = vpop.f32.mrf.mxu1  ;;  %v4575_v8 = vpop.f32.mrf.mxu0 }
 0x5d1   : > { %v4273_v23 = vpop.f32.mrf.mxu1  ;;  %v4578_v35 = vpop.f32.mrf.mxu0 }
 0x5d2   : > { %v4579_v9 = vadd.f32 %v4578_v35, %v4273_v23 }
 0x5d3   : > { %v4275_v1 = vpop.f32.mrf.mxu1  ;;  %v4580_v63 = vpop.f32.mrf.mxu0 }
 0x5d4   : > { %v4807_v40 = vadd.f32 %v4579_v9, %v4569_v42 }
 0x5d5   : > { %v4278_v41 = vpop.f32.mrf.mxu1  ;;  %v4583_v33 = vpop.f32.mrf.mxu0 }
 0x5d6   : > { %v4584_v45 = vadd.f32 %v4583_v33, %v4278_v41 }
 0x5d7   : > { %v4280_v3 = vpop.f32.mrf.mxu1  ;;  %v4585_v55 = vpop.f32.mrf.mxu0 }
 0x5d8   : > { %v4808_v60 = vadd.f32 %v4584_v45, %v4574_v19 }
 0x5d9   : > { %v4283_v6 = vpop.f32.mrf.mxu1  ;;  %v4588_v49 = vpop.f32.mrf.mxu0 }
 0x5da   : > { %v4589_v26 = vadd.f32 %v4588_v49, %v4283_v6 }
 0x5db   : > { %v4285_v5 = vpop.f32.mrf.mxu1  ;;  %v4590_v24 = vpop.f32.mrf.mxu0 }
 0x5dc   : > { %v4809_v43 = vadd.f32 %v4807_v40, %v4589_v26  ;;  %v8554_v24 = vld [vmem:[#allocation70_spill] sm:$0xff] }
 0x5dd   : > { %v4288_v28 = vpop.f32.mrf.mxu1  ;;  %v4593_v15 = vpop.f32.mrf.mxu0 }
 0x5de   : > { %v4823_v48 = vmul.f32 %v8548_v46, %v4809_v43  ;;  %v4594_v47 = vadd.f32 %v4593_v15, %v4288_v28 }
 0x5df   : > { %v4290_v62 = vpop.f32.mrf.mxu1  ;;  %v4595_v36 = vpop.f32.mrf.mxu0 }
 0x5e0   : > { %v4835_v11 = vadd.f32 %v8549_v59, %v4823_v48  ;;  %v4810_v38 = vadd.f32 %v4808_v60, %v4594_v47  ;;  %v8555_v62 = vld [vmem:[#allocation73_spill] sm:$0xff] }
 0x5e1   : > { %v4293_v58 = vpop.f32.mrf.mxu1  ;;  %v4598_v7 = vpop.f32.mrf.mxu0 }
 0x5e2   : > { %v4837_v57 = vadd.f32 %v4835_v11, %v8550_v56  ;;  %v4824_v37 = vmul.f32 %v8551_v52, %v4810_v38  ;;  %v4599_v13 = vadd.f32 %v4598_v7, %v4293_v58 }
 0x5e3   : > { %v4295_v31 = vpop.f32.mrf.mxu1  ;;  %v4600_v61 = vpop.f32.mrf.mxu0 }
 0x5e4   : > { %v4839_v51 = vmax.f32 %v4837_v57, 0.0  ;;  %v4836_v16 = vadd.f32 %v8552_v25, %v4824_v37 }
 0x5e5   : > { %v4298_v21 = vpop.f32.mrf.mxu1  ;;  %v4603_v18 = vpop.f32.mrf.mxu0 }
 0x5e6   : > { %v4838_v2 = vadd.f32 %v4836_v16, %v8553_v39  ;;  %4841 = vst.msk [vmem:[%s8137_s25] sm:$0xff] %vm722_vm1, %v4839_v51  ;;  %v4604_v35 = vadd.f32 %v4603_v18, %v4298_v21 }
 0x5e7   : > { %v4300_v14 = vpop.f32.mrf.mxu1  ;;  %v4605_v12 = vpop.f32.mrf.mxu0 }
 0x5e8   : > { %v4840_v27 = vmax.f32 %v4838_v2, 0.0 }
 0x5e9   : > { %v4303_v53 = vpop.f32.mrf.mxu1 }
 0x5ea   : > { %4842 = vst.msk [vmem:[%s8137_s25 + $0x10] sm:$0xff] %vm722_vm1, %v4840_v27 }
 0x5eb   : > { %v4608_v34 = vpop.f32.mrf.mxu0  ;;  %v4305_v32 = vpop.f32.mrf.mxu1 }
 0x5ec   : > { %v4609_v30 = vadd.f32 %v4608_v34, %v4303_v53 }
 0x5ed   : > { %v4610_v4 = vpop.f32.mrf.mxu0  ;;  %v4308_v20 = vpop.f32.mrf.mxu1 }
 0x5ee   : > { %v4843_v50 = vadd.f32 %v4609_v30, %v4599_v13 }
 0x5ef   : > { %v4613_v10 = vpop.f32.mrf.mxu0  ;;  %v4310_v17 = vpop.f32.mrf.mxu1 }
 0x5f0   : > { %v4614_v44 = vadd.f32 %v4613_v10, %v4308_v20 }
 0x5f1   : > { %v4615_v54 = vpop.f32.mrf.mxu0  ;;  %v4313_v22 = vpop.f32.mrf.mxu1 }
 0x5f2   : > { %v4844_v33 = vadd.f32 %v4614_v44, %v4604_v35 }
 0x5f3   : > { %v4618_v0 = vpop.f32.mrf.mxu0  ;;  %v4315_v8 = vpop.f32.mrf.mxu1 }
 0x5f4   : > { %v4619_v29 = vadd.f32 %v4618_v0, %v4313_v22 }
 0x5f5   : > { %v4620_v23 = vpop.f32.mrf.mxu0 }
 0x5f6   : > { %v4845_v1 = vadd.f32 %v4843_v50, %v4619_v29  ;;  %v8556_v23 = vld [vmem:[#allocation74_spill] sm:$0xff] }
 0x5f8   : > { %v4318_v63 = vpop.f32.mrf.mxu1  ;;  %v4849_v9 = vmul.f32 %v4845_v1, %v8548_v46 }
 0x5f9   : > { %v4623_v41 = vpop.f32.mrf.mxu0 }
 0x5fa   : > { %v4624_v3 = vadd.f32 %v4623_v41, %v4318_v63  ;;  %v4320_v55 = vpop.f32.mrf.mxu1  ;;  %v4851_v40 = vadd.f32 %v4849_v9, %v8549_v59 }
 0x5fb   : > { %v4625_v42 = vpop.f32.mrf.mxu0  ;;  %v8557_v55 = vld [vmem:[#allocation76_spill] sm:$0xff] }
 0x5fc   : > { %v4846_v6 = vadd.f32 %v4844_v33, %v4624_v3  ;;  %v4323_v49 = vpop.f32.mrf.mxu1  ;;  %v4861_v19 = vadd.f32 %v8554_v24, %v4851_v40 }
 0x5fd   : > { %v4628_v45 = vpop.f32.mrf.mxu0 }
 0x5fe   : > { %v4850_v26 = vmul.f32 %v4846_v6, %v8551_v52  ;;  %v4325_v5 = vpop.f32.mrf.mxu1  ;;  %v4863_v15 = vmax.f32 %v4861_v19, 0.0  ;;  %v4629_v21 = vadd.f32 %v4628_v45, %v4323_v49 }
 0x5ff   : > { %v4630_v43 = vpop.f32.mrf.mxu0 }
 0x600   : > { %v4328_v28 = vpop.f32.mrf.mxu1  ;;  %v4852_v60 = vadd.f32 %v4850_v26, %v8552_v25  ;;  %4867 = vrot.lane.b32.xlu0 %v4863_v15, %s8374_s28 }
 0x601   : > { %v4633_v48 = vpop.f32.mrf.mxu0 }
 0x602   : > { %v4330_v47 = vpop.f32.mrf.mxu1  ;;  %v4862_v36 = vadd.f32 %v8555_v62, %v4852_v60  ;;  %v4634_v34 = vadd.f32 %v4633_v48, %v4328_v28 }
 0x603   : > { %v4635_v11 = vpop.f32.mrf.mxu0 }
 0x604   : > { %v4333_v38 = vpop.f32.mrf.mxu1  ;;  %v4864_v58 = vmax.f32 %v4862_v36, 0.0 }
 0x605   : > { %v4638_v7 = vpop.f32.mrf.mxu0 }
 0x606   : > { %4869 = vrot.lane.b32.xlu1 %v4864_v58, %s8374_s28  ;;  %v4335_v56 = vpop.f32.mrf.mxu1  ;;  %v4639_v61 = vadd.f32 %v4638_v7, %v4333_v38 }
 0x607   : > { %v4640_v57 = vpop.f32.mrf.mxu0 }
 0x608   : > { %v4338_v37 = vpop.f32.mrf.mxu1  ;;  %v4876_v2 = vadd.f32 %v4639_v61, %v4629_v21 }
 0x609   : > { %v4643_v31 = vpop.f32.mrf.mxu0 }
 0x60a   : > { %v4340_v51 = vpop.f32.mrf.mxu1  ;;  %v4644_v14 = vadd.f32 %v4643_v31, %v4338_v37 }
 0x60b   : > { %v4645_v16 = vpop.f32.mrf.mxu0 }
 0x60c   : > { %v4343_v18 = vpop.f32.mrf.mxu1  ;;  %v4877_v10 = vadd.f32 %v4644_v14, %v4634_v34 }
 0x60d   : > { %v4648_v39 = vpop.f32.mrf.mxu0 }
 0x60e   : > { %v4649_v12 = vadd.f32 %v4648_v39, %v4343_v18  ;;  %v4345_v27 = vpop.f32.mrf.mxu1 }
 0x60f   : > { %v4650_v53 = vpop.f32.mrf.mxu0 }
 0x610   : > { %v4878_v32 = vadd.f32 %v4876_v2, %v4649_v12  ;;  %v4348_v4 = vpop.f32.mrf.mxu1  ;;  %v8558_v53 = vld [vmem:[#allocation26_spill] sm:$0xff] }
 0x611   : > { %v4653_v20 = vpop.f32.mrf.mxu0 }
 0x612   : > { %v4882_v30 = vmul.f32 %v4878_v32, %v8548_v46  ;;  %v4654_v17 = vadd.f32 %v4653_v20, %v4348_v4  ;;  %v4350_v54 = vpop.f32.mrf.mxu1 }
 0x613   : > { %v4655_v13 = vpop.f32.mrf.mxu0  ;;  %v8559_v54 = vld [vmem:[#allocation24_spill] sm:$0xff] }
 0x614   : > { %v4879_v22 = vadd.f32 %v4877_v10, %v4654_v17  ;;  %v4353_v0 = vpop.f32.mrf.mxu1  ;;  %v4884_v50 = vadd.f32 %v4882_v30, %v8549_v59 }
 0x615   : > { %v4658_v44 = vpop.f32.mrf.mxu0 }
 0x616   : > { %v4883_v29 = vmul.f32 %v4879_v22, %v8551_v52  ;;  %v4355_v8 = vpop.f32.mrf.mxu1  ;;  %v4894_v35 = vadd.f32 %v8556_v23, %v4884_v50  ;;  %v4659_v60 = vadd.f32 %v4658_v44, %v4353_v0 }
 0x617   : > { %v4660_v1 = vpop.f32.mrf.mxu0 }
 0x618   : > { %v4358_v63 = vpop.f32.mrf.mxu1  ;;  %v4896_v41 = vmax.f32 %v4894_v35, 0.0  ;;  %v4885_v33 = vadd.f32 %v4883_v29, %v8552_v25 }
 0x619   : > { %v4663_v9 = vpop.f32.mrf.mxu0 }
 0x61a   : > { %4900 = vrot.lane.b32.xlu0 %v4896_v41, %s5594_s14  ;;  %v4360_v3 = vpop.f32.mrf.mxu1  ;;  %v4895_v42 = vadd.f32 %v8557_v55, %v4885_v33  ;;  %v4664_v7 = vadd.f32 %v4663_v9, %v4358_v63 }
 0x61b   : > { %v4665_v6 = vpop.f32.mrf.mxu0 }
 0x61c   : > { %v4363_v49 = vpop.f32.mrf.mxu1  ;;  %v4897_v40 = vmax.f32 %v4895_v42, 0.0 }
 0x61d   : > { %v4668_v45 = vpop.f32.mrf.mxu0 }
 0x61e   : > { %4902 = vrot.lane.b32.xlu1 %v4897_v40, %s5594_s14  ;;  %v4365_v26 = vpop.f32.mrf.mxu1  ;;  %v4669_v43 = vadd.f32 %v4668_v45, %v4363_v49 }
 0x61f   : > { %v4670_v5 = vpop.f32.mrf.mxu0 }
 0x620   : > { %v4368_v24 = vpop.f32.mrf.mxu1  ;;  %v4909_v62 = vadd.f32 %v4669_v43, %v4659_v60 }
 0x621   : > { %v4673_v19 = vpop.f32.mrf.mxu0 }
 0x622   : > { %v4370_v28 = vpop.f32.mrf.mxu1  ;;  %v4674_v36 = vadd.f32 %v4673_v19, %v4368_v24 }
 0x623   : > { %v4675_v15 = vpop.f32.mrf.mxu0 }
 0x624   : > { %v4373_v48 = vpop.f32.mrf.mxu1  ;;  %v4910_v31 = vadd.f32 %v4674_v36, %v4664_v7 }
 0x625   : > { %v4678_v47 = vpop.f32.mrf.mxu0 }
 0x626   : > { %v4679_v11 = vadd.f32 %v4678_v47, %v4373_v48  ;;  %v4375_v38 = vpop.f32.mrf.mxu1 }
 0x627   : > { %v4680_v58 = vpop.f32.mrf.mxu0 }
 0x628   : > { %v4911_v56 = vadd.f32 %v4909_v62, %v4679_v11  ;;  %v4378_v57 = vpop.f32.mrf.mxu1  ;;  %v8560_v11 = vld [vmem:[#allocation45_spill] sm:$0xff] }
 0x629   : > { %v4683_v37 = vpop.f32.mrf.mxu0 }
 0x62a   : > { %v4915_v61 = vmul.f32 %v4911_v56, %v8548_v46  ;;  %v4684_v51 = vadd.f32 %v4683_v37, %v4378_v57  ;;  %v4380_v16 = vpop.f32.mrf.mxu1 }
 0x62b   : > { %v4685_v21 = vpop.f32.mrf.mxu0 }
 0x62c   : > { %v4912_v18 = vadd.f32 %v4910_v31, %v4684_v51  ;;  %v4383_v39 = vpop.f32.mrf.mxu1  ;;  %v4917_v2 = vadd.f32 %v4915_v61, %v8549_v59  ;;  %v8561_v51 = vld [vmem:[#allocation46_spill] sm:$0xff] }
 0x62d   : > { %v4688_v14 = vpop.f32.mrf.mxu0 }
 0x62e   : > { %v4916_v12 = vmul.f32 %v4912_v18, %v8551_v52  ;;  %v4385_v27 = vpop.f32.mrf.mxu1  ;;  %v4927_v34 = vadd.f32 %v8558_v53, %v4917_v2  ;;  %v4689_v33 = vadd.f32 %v4688_v14, %v4383_v39 }
 0x62f   : > { %v4690_v32 = vpop.f32.mrf.mxu0 }
 0x630   : > { %v4388_v4 = vpop.f32.mrf.mxu1  ;;  %v4929_v20 = vmax.f32 %v4927_v34, 0.0  ;;  %v4918_v10 = vadd.f32 %v4916_v12, %v8552_v25 }
 0x631   : > { %v4693_v30 = vpop.f32.mrf.mxu0 }
 0x632   : > { %4933 = vrot.lane.b32.xlu0 %v4929_v20, %s8330_s29  ;;  %v4390_v17 = vpop.f32.mrf.mxu1  ;;  %v4928_v13 = vadd.f32 %v8559_v54, %v4918_v10  ;;  %v4694_v45 = vadd.f32 %v4693_v30, %v4388_v4 }
 0x633   : > { %v4695_v22 = vpop.f32.mrf.mxu0 }
 0x634   : > { %v4393_v0 = vpop.f32.mrf.mxu1  ;;  %v4930_v50 = vmax.f32 %v4928_v13, 0.0 }
 0x635   : > { %v4698_v44 = vpop.f32.mrf.mxu0 }
 0x636   : > { %4935 = vrot.lane.b32.xlu1 %v4930_v50, %s8330_s29  ;;  %v4395_v29 = vpop.f32.mrf.mxu1  ;;  %v4699_v1 = vadd.f32 %v4698_v44, %v4393_v0 }
 0x637   : > { %v4700_v8 = vpop.f32.mrf.mxu0 }
 0x638   : > { %v4398_v23 = vpop.f32.mrf.mxu1  ;;  %v4942_v55 = vadd.f32 %v4699_v1, %v4689_v33 }
 0x639   : > { %v4703_v35 = vpop.f32.mrf.mxu0 }
 0x63a   : > { %v4400_v63 = vpop.f32.mrf.mxu1  ;;  %v4704_v42 = vadd.f32 %v4703_v35, %v4398_v23 }
 0x63b   : > { %v4705_v41 = vpop.f32.mrf.mxu0 }
 0x63c   : > { %v4403_v9 = vpop.f32.mrf.mxu1  ;;  %v4943_v19 = vadd.f32 %v4704_v42, %v4694_v45 }
 0x63d   : > { %v4708_v3 = vpop.f32.mrf.mxu0 }
 0x63e   : > { %v4709_v6 = vadd.f32 %v4708_v3, %v4403_v9  ;;  %v4405_v49 = vpop.f32.mrf.mxu1 }
 0x63f   : > { %v4710_v40 = vpop.f32.mrf.mxu0 }
 0x640   : > { %v4944_v26 = vadd.f32 %v4942_v55, %v4709_v6  ;;  %v4408_v5 = vpop.f32.mrf.mxu1  ;;  %v8562_v40 = vld [vmem:[#allocation25_spill] sm:$0xff] }
 0x641   : > { %v4713_v24 = vpop.f32.mrf.mxu0 }
 0x642   : > { %v4948_v43 = vmul.f32 %v4944_v26, %v8548_v46  ;;  %v4714_v28 = vadd.f32 %v4713_v24, %v4408_v5  ;;  %v4410_v15 = vpop.f32.mrf.mxu1 }
 0x643   : > { %v4715_v60 = vpop.f32.mrf.mxu0  ;;  %v8563_v15 = vld [vmem:[#allocation23_spill] sm:$0xff] }
 0x644   : > { %v4950_v48 = vadd.f32 %v4948_v43, %v8549_v59  ;;  %v4945_v47 = vadd.f32 %v4943_v19, %v4714_v28  ;;  %v4413_v62 = vpop.f32.mrf.mxu1 }
 0x645   : > { %v4718_v36 = vpop.f32.mrf.mxu0 }
 0x646   : > { %v4952_v38 = vadd.f32 %v4950_v48, %v8560_v11  ;;  %v4949_v58 = vmul.f32 %v4945_v47, %v8551_v52  ;;  %v4415_v7 = vpop.f32.mrf.mxu1  ;;  %v4719_v10 = vadd.f32 %v4718_v36, %v4413_v62 }
 0x647   : > { %v4720_v56 = vpop.f32.mrf.mxu0 }
 0x648   : > { %v4954_v57 = vmax.f32 %v4952_v38, 0.0  ;;  %v4951_v37 = vadd.f32 %v4949_v58, %v8552_v25  ;;  %v4418_v31 = vpop.f32.mrf.mxu1 }
 0x649   : > { %v4723_v61 = vpop.f32.mrf.mxu0 }
 0x64a   : > { %v4953_v16 = vadd.f32 %v4951_v37, %v8561_v51  ;;  %v4420_v21 = vpop.f32.mrf.mxu1  ;;  %4956 = vst.msk [vmem:[%s8137_s25 + $0x8] sm:$0xff] %vm722_vm1, %v4954_v57  ;;  %v4724_v44 = vadd.f32 %v4723_v61, %v4418_v31 }
 0x64b   : > { %v4725_v18 = vpop.f32.mrf.mxu0 }
 0x64c   : > { %v4955_v39 = vmax.f32 %v4953_v16, 0.0  ;;  %v4423_v2 = vpop.f32.mrf.mxu1 }
 0x64d   : > { %v4728_v14 = vpop.f32.mrf.mxu0 }
 0x64e   : > { %v4425_v12 = vpop.f32.mrf.mxu1  ;;  %4957 = vst.msk [vmem:[%s8137_s25 + $0x18] sm:$0xff] %vm722_vm1, %v4955_v39  ;;  %v4729_v32 = vadd.f32 %v4728_v14, %v4423_v2 }
 0x64f   : > { %v4730_v27 = vpop.f32.mrf.mxu0 }
 0x650   : > { %v4428_v53 = vpop.f32.mrf.mxu1  ;;  %v4958_v54 = vadd.f32 %v4729_v32, %v4719_v10 }
 0x651   : > { %v4733_v34 = vpop.f32.mrf.mxu0 }
 0x652   : > { %v4430_v4 = vpop.f32.mrf.mxu1  ;;  %v4734_v13 = vadd.f32 %v4733_v34, %v4428_v53 }
 0x653   : > { %v4735_v20 = vpop.f32.mrf.mxu0 }
 0x654   : > { %v4433_v30 = vpop.f32.mrf.mxu1  ;;  %v4959_v35 = vadd.f32 %v4734_v13, %v4724_v44  ;;  %v8564_v44 = vld [vmem:[#allocation27_spill] sm:$0xff] }
 0x655   : > { %v4738_v17 = vpop.f32.mrf.mxu0 }
 0x656   : > { %v4739_v22 = vadd.f32 %v4738_v17, %v4433_v30  ;;  %v4435_v0 = vpop.f32.mrf.mxu1 }
 0x657   : > { %v4740_v50 = vpop.f32.mrf.mxu0 }
 0x658   : > { %v4960_v29 = vadd.f32 %v4958_v54, %v4739_v22  ;;  %v4438_v8 = vpop.f32.mrf.mxu1 }
 0x659   : > { %v4743_v23 = vpop.f32.mrf.mxu0 }
 0x65a   : > { %v4964_v1 = vmul.f32 %v4960_v29, %v8548_v46  ;;  %v4744_v63 = vadd.f32 %v4743_v23, %v4438_v8  ;;  %v4440_v41 = vpop.f32.mrf.mxu1 }
 0x65b   : > { %v4745_v33 = vpop.f32.mrf.mxu0 }
 0x65c   : > { %v4961_v9 = vadd.f32 %v4959_v35, %v4744_v63  ;;  %v4443_v3 = vpop.f32.mrf.mxu1  ;;  %v4966_v55 = vadd.f32 %v4964_v1, %v8549_v59 }
 0x65d   : > { %v4748_v42 = vpop.f32.mrf.mxu0 }
 0x65e   : > { %v4965_v6 = vmul.f32 %v4961_v9, %v8551_v52  ;;  %v4445_v49 = vpop.f32.mrf.mxu1  ;;  %v4976_v45 = vadd.f32 %v8562_v40, %v4966_v55  ;;  %v4749_v31 = vadd.f32 %v4748_v42, %v4443_v3  ;;  %v8565_v9 = vld [vmem:[#allocation78_spill] sm:$0xff] }
 0x65f   : > { %v4750_v26 = vpop.f32.mrf.mxu0 }
 0x660   : > { %v4448_v5 = vpop.f32.mrf.mxu1  ;;  %v4978_v24 = vmax.f32 %v4976_v45, 0.0  ;;  %v4967_v19 = vadd.f32 %v4965_v6, %v8552_v25 }
 0x661   : > { %v4753_v43 = vpop.f32.mrf.mxu0 }
 0x662   : > { %4982 = vrot.lane.b32.xlu0 %v4978_v24, %s8374_s28  ;;  %v4450_v28 = vpop.f32.mrf.mxu1  ;;  %v4977_v60 = vadd.f32 %v8563_v15, %v4967_v19  ;;  %v4754_v14 = vadd.f32 %v4753_v43, %v4448_v5 }
 0x663   : > { %v4755_v48 = vpop.f32.mrf.mxu0 }
 0x664   : > { %v4453_v47 = vpop.f32.mrf.mxu1  ;;  %v4979_v62 = vmax.f32 %v4977_v60, 0.0 }
 0x665   : > { %v4758_v36 = vpop.f32.mrf.mxu0 }
 0x666   : > { %4984 = vrot.lane.b32.xlu1 %v4979_v62, %s8374_s28  ;;  %v4455_v11 = vpop.f32.mrf.mxu1  ;;  %v4759_v56 = vadd.f32 %v4758_v36, %v4453_v47 }
 0x667   : > { %v4760_v38 = vpop.f32.mrf.mxu0 }
 0x668   : > { %v4458_v58 = vpop.f32.mrf.mxu1  ;;  %v4990_v16 = vadd.f32 %v4759_v56, %v4749_v31 }
 0x669   : > { %v4763_v7 = vpop.f32.mrf.mxu0 }
 0x66a   : > { %v4460_v57 = vpop.f32.mrf.mxu1  ;;  %v4764_v21 = vadd.f32 %v4763_v7, %v4458_v58 }
 0x66b   : > { %v4765_v37 = vpop.f32.mrf.mxu0 }
 0x66c   : > { %v4463_v61 = vpop.f32.mrf.mxu1  ;;  %v4991_v34 = vadd.f32 %v4764_v21, %v4754_v14 }
 0x66d   : > { %v4768_v51 = vpop.f32.mrf.mxu0 }
 0x66e   : > { %v4769_v18 = vadd.f32 %v4768_v51, %v4463_v61  ;;  %v4465_v39 = vpop.f32.mrf.mxu1 }
 0x66f   : > { %v4770_v2 = vpop.f32.mrf.mxu0  ;;  %v8566_v39 = vld [vmem:[#allocation82_spill] sm:$0xff] }
 0x670   : > { %v4992_v12 = vadd.f32 %v4990_v16, %v4769_v18  ;;  %v4468_v27 = vpop.f32.mrf.mxu1 }
 0x671   : > { %v4773_v53 = vpop.f32.mrf.mxu0 }
 0x672   : > { %v4996_v32 = vmul.f32 %v4992_v12, %v8548_v46  ;;  %v4774_v4 = vadd.f32 %v4773_v53, %v4468_v27  ;;  %v4470_v20 = vpop.f32.mrf.mxu1  ;;  %v4868_v17 = vpop.permute.xlu0 %4867 }
 0x673   : > { %v4775_v10 = vpop.f32.mrf.mxu0  ;;  %4874 = vst.msk [vmem:[%s8137_s25] sm:$0xff] %vm4873_vm3, %v4868_v17 }
 0x674   : > { %v4993_v30 = vadd.f32 %v4991_v34, %v4774_v4  ;;  %v4473_v54 = vpop.f32.mrf.mxu1  ;;  %v4998_v13 = vadd.f32 %v4996_v32, %v8549_v59 }
 0x675   : > { %v4778_v22 = vpop.f32.mrf.mxu0 }
 0x676   : > { %v4997_v0 = vmul.f32 %v4993_v30, %v8551_v52  ;;  %v4475_v50 = vpop.f32.mrf.mxu1  ;;  %v5008_v29 = vadd.f32 %v8564_v44, %v4998_v13  ;;  %v4779_v28 = vadd.f32 %v4778_v22, %v4473_v54 }
 0x677   : > { %v4780_v8 = vpop.f32.mrf.mxu0 }
 0x678   : > { %v4870_v23 = vpop.permute.xlu1 %4869  ;;  %v4478_v35 = vpop.f32.mrf.mxu1  ;;  %v5010_v1 = vmax.f32 %v5008_v29, 0.0  ;;  %v4999_v63 = vadd.f32 %v4997_v0, %v8552_v25 }
 0x679   : > { %4875 = vst.msk [vmem:[%s8137_s25 + $0x10] sm:$0xff] %vm4873_vm3, %v4870_v23  ;;  %v4783_v41 = vpop.f32.mrf.mxu0 }
 0x67a   : > { %5014 = vrot.lane.b32.xlu0 %v5010_v1, %s5594_s14  ;;  %v4480_v33 = vpop.f32.mrf.mxu1  ;;  %v5009_v3 = vadd.f32 %v8565_v9, %v4999_v63  ;;  %v4784_v38 = vadd.f32 %v4783_v41, %v4478_v35 }
 0x67b   : > { %v4785_v55 = vpop.f32.mrf.mxu0 }
 0x67c   : > { %v4483_v42 = vpop.f32.mrf.mxu1  ;;  %v5011_v6 = vmax.f32 %v5009_v3, 0.0 }
 0x67d   : > { %v4788_v49 = vpop.f32.mrf.mxu0 }
 0x67e   : > { %5016 = vrot.lane.b32.xlu1 %v5011_v6, %s5594_s14  ;;  %v4485_v40 = vpop.f32.mrf.mxu1  ;;  %v4789_v24 = vadd.f32 %v4788_v49, %v4483_v42  ;;  %s5503_s14 = sshll.u32 %s5596_s26, 4  ;;  %s5504_s14 = int_to_ptr.vmem [resolvable:$false] %s5503_s14 }
 0x67f   : > { %v4790_v45 = vpop.f32.mrf.mxu0  ;;  %s5505_s16 = scalar_lea.vmem %s5504_s14, 6144  ;;  %p5506_p0 = scmp.lt.s32.totalorder %s8208_s24, %s5504_s14 }
 0x680   : > { %v4488_v26 = vpop.f32.mrf.mxu1  ;;  %v5022_v48 = vadd.f32 %v4789_v24, %v4779_v28  ;;  %p5507_p1 = scmp.lt.s32.totalorder %s5505_s16, %s5499_s23 }
 0x681   : > { %v4793_v5 = vpop.f32.mrf.mxu0 }
 0x682   : > { %v4490_v19 = vpop.f32.mrf.mxu1  ;;  %v4794_v47 = vadd.f32 %v4793_v5, %v4488_v26  ;;  %p5508_p2 = por %p5507_p1, %p5506_p0 }
 0x683   : > { %v4795_v43 = vpop.f32.mrf.mxu0 }
 0x684   : > { %v4493_v15 = vpop.f32.mrf.mxu1  ;;  %v5023_v57 = vadd.f32 %v4794_v47, %v4784_v38  ;;  %p5509_p3 = pnand %p5508_p2, %p5502_p13 }
 0x685   : > { %v4798_v60 = vpop.f32.mrf.mxu0 }
 0x686   : > { %v4799_v62 = vadd.f32 %v4798_v60, %v4493_v15  ;;  %v4495_v36 = vpop.f32.mrf.mxu1 }
 0x687   : > { %v4800_v11 = vpop.f32.mrf.mxu0 }
 0x688   : > { %v5024_v58 = vadd.f32 %v5022_v48, %v4799_v62  ;;  %v4498_v7 = vpop.f32.mrf.mxu1 }
 0x689   : > { %v4803_v56 = vpop.f32.mrf.mxu0 }
 0x68a   : > { %v5028_v37 = vmul.f32 %v5024_v58, %v8548_v46  ;;  %v4804_v31 = vadd.f32 %v4803_v56, %v4498_v7  ;;  %v4500_v61 = vpop.f32.mrf.mxu1 }
 0x68b   : > { %v4805_v51 = vpop.f32.mrf.mxu0 }
 0x68c   : > { %v5025_v16 = vadd.f32 %v5023_v57, %v4804_v31  ;;  %v4901_v21 = vpop.permute.xlu0 %4900  ;;  %v5030_v18 = vadd.f32 %v5028_v37, %v8549_v59 }
 0x68d   : > { %4907 = vst.msk [vmem:[%s8137_s25] sm:$0xff] %vm4906_vm4, %v4901_v21 }
 0x68e   : > { %v5029_v46 = vmul.f32 %v5025_v16, %v8551_v52  ;;  %v5040_v2 = vadd.f32 %v8566_v39, %v5030_v18 }
 0x68f   : > { %5512 = shalt.err (!%p5509_p3)
}
 0x690   : > { %s5513_s27 = scalar_lea.hbm %s8202_s22, 3072  ;;  %s5517_s26 = scalar_lea.hbm %s8316_s9, 6144 }
 0x691   : > { %p5514_p4 = scmp.ne.s32.totalorder %s8202_s22, %s5513_s27  ;;  %p5518_p9 = scmp.lt.s32.totalorder %s8202_s22, %s8316_s9 }
 0x692   : > { %p5519_p10 = scmp.lt.s32.totalorder %s5517_s26, %s5513_s27 }
 0x693   : > { %p5515_p7 = pnand %p5514_p4, %p5689_p5 }
 0x694   : > { %p5520_p11 = por %p5519_p10, %p5518_p9 }
 0x695   : > { %p5516_p8 = pneg %p5515_p7 }
 0x697   : > { %p5521_p12 = pnand %p5520_p11, %p5516_p8 }
 0x699   : > { %5524 = shalt.err (!%p5521_p12)
}
 0x69a   : > { %s5597_s23 = smov 512   ;;  %s8567_s14 = scalar_lea.sflag [#allocation7], %s7575_s21  ;;  %v4903_v59 = vpop.permute.xlu1 %4902  ;;  %v5042_v52 = vmax.f32 %v5040_v2, 0.0  ;;  %v5031_v14 = vadd.f32 %v5029_v46, %v8552_v25  ;;  %v8569_v12 = vld [vmem:[#allocation50_spill] sm:$0xff]  ;;  %vm4939_vm5 = vcmask 1048320  }
 0x69b   : > { %5406 = dma.vmem_to_hbm [thread:$0]  (%p5689_p5), %s8208_s24, 3072, %s8202_s22, %s8567_s14, %s5597_s23, %s5597_s23, %s8374_s28  }
 0x69c   : > { %4908 = vst.msk [vmem:[%s8137_s25 + $0x10] sm:$0xff] %vm4906_vm4, %v4903_v59  ;;  %s8568_s0 = smov 96   ;;  %v5041_v27 = vadd.f32 %v8569_v12, %v5031_v14  ;;  %s5343_s1 = sshll.u32 %s5672_s13, 9 }
 0x69d   : > { %5046 = vrot.lane.b32.xlu0 %v5042_v52, %s8568_s0  ;;  %s5073_s29 = sshll.u32 %s8137_s25, 4  ;;  %s8261_s24 = scalar_lea.hbm %s8315_s8, %s5343_s1  ;;  %s8263_s29 = int_to_ptr.vmem [resolvable:$true] %s5073_s29 }
 0x69e   : > { %v5043_v53 = vmax.f32 %v5041_v27, 0.0  ;;  %s5055_s17 = scalar_lea.sflag [#allocation5], %s7575_s21  ;;  %s5525_s16 = scalar_lea.vmem %s8263_s29, 512 }
 0x69f   : > { %p5526_p13 = scmp.ne.s32.totalorder %s8263_s29, %s5525_s16  ;;  %s5598_s13 = smov [#allocation4]  }
 0x6a0   : > { %5048 = vrot.lane.b32.xlu1 %v5043_v53, %s8568_s0  ;;  %s5529_s27 = sshll.u32 %s5598_s13, 4  ;;  %s5530_s27 = int_to_ptr.vmem [resolvable:$false] %s5529_s27 }
 0x6a1   : > { %p5527_p0 = pnand %p5526_p13, %p5689_p5  ;;  %s5531_s26 = scalar_lea.vmem %s5530_s27, 1024 }
 0x6a2   : > { %p5532_p2 = scmp.lt.s32.totalorder %s8263_s29, %s5530_s27  ;;  %p5533_p3 = scmp.lt.s32.totalorder %s5531_s26, %s5525_s16 }
 0x6a3   : > { %p5528_p1 = pneg %p5527_p0 }
 0x6a4   : > { %v4934_v34 = vpop.permute.xlu0 %4933  ;;  %p5534_p4 = por %p5533_p3, %p5532_p2 }
 0x6a5   : > { %4940 = vst.msk [vmem:[%s8137_s25] sm:$0xff] %vm4939_vm5, %v4934_v34 }
 0x6a6   : > { %p5535_p7 = pnand %p5534_p4, %p5528_p1 }
 0x6a8   : > { %v4936_v32 = vpop.permute.xlu1 %4935 }
 0x6a9   : > { %4941 = vst.msk [vmem:[%s8137_s25 + $0x10] sm:$0xff] %vm4939_vm5, %v4936_v32 }
 0x6d4   : > { %v4983_v25 = vpop.permute.xlu0 %4982 }
 0x6d5   : > { %4988 = vst.msk [vmem:[%s8137_s25 + $0x8] sm:$0xff] %vm4873_vm3, %v4983_v25 }
 0x6d8   : > { %v4985_v4 = vpop.permute.xlu1 %4984 }
 0x6d9   : > { %4989 = vst.msk [vmem:[%s8137_s25 + $0x18] sm:$0xff] %vm4873_vm3, %v4985_v4 }
 0x6ec   : > { %v5015_v20 = vpop.permute.xlu0 %5014 }
 0x6ed   : > { %5020 = vst.msk [vmem:[%s8137_s25 + $0x8] sm:$0xff] %vm4906_vm4, %v5015_v20 }
 0x6f0   : > { %v5017_v10 = vpop.permute.xlu1 %5016 }
 0x6f1   : > { %5021 = vst.msk [vmem:[%s8137_s25 + $0x18] sm:$0xff] %vm4906_vm4, %v5017_v10 }
 0x70f   : > { %v5047_v30 = vpop.permute.xlu0 %5046 }
 0x710   : > { %5052 = vst.msk [vmem:[%s8137_s25 + $0x8] sm:$0xff] %vm4939_vm5, %v5047_v30 }
 0x712   : > { %v5049_v17 = vpop.permute.xlu1 %5048 }
 0x713   : > { %5053 = vst.msk [vmem:[%s8137_s25 + $0x18] sm:$0xff] %vm4939_vm5, %v5049_v17 }
 0x714   : > { %5538 = shalt.err (!%p5535_p7)
}
 0x715   : > { %s5539_s25 = scalar_lea.hbm %s8261_s24, 512  ;;  %s5543_s0 = scalar_lea.hbm %s8315_s8, 1024 }
 0x716   : > { %p5540_p8 = scmp.ne.s32.totalorder %s8261_s24, %s5539_s25  ;;  %p5544_p11 = scmp.lt.s32.totalorder %s8261_s24, %s8315_s8 }
 0x717   : > { %p5545_p12 = scmp.lt.s32.totalorder %s5543_s0, %s5539_s25 }
 0x718   : > { %p5541_p9 = pnand %p5540_p8, %p5689_p5 }
 0x719   : > { %p5546_p13 = por %p5545_p12, %p5544_p11 }
 0x71a   : > { %p5542_p10 = pneg %p5541_p9 }
 0x71c   : > { %p5547_p0 = pnand %p5546_p13, %p5542_p10 }
 0x71e   : > { %5550 = shalt.err (!%p5547_p0)
}
 0x71f   : > { %s5599_s22 = smov 256   ;;  %s5600_s16 = smov 16  }
 0x720   : > { %5405 = dma.vmem_to_hbm [thread:$0]  (%p5689_p5), %s8263_s29, 512, %s8261_s24, %s5055_s17, %s5599_s22, %s5599_s22, %s5600_s16  }
 0x721 PF: > { %p5416_p1 = scmp.ge.s32.totalorder %s5589_s12, 2  ;;  %s5104_s13 = sand.u32 1, %s5577_s30  }
 0x722   : > { %s5105_s27 = scalar_lea.sflag [#allocation5], %s5104_s13 }
 0x723   : > { %p5410_p2 = pnand %p5416_p1, %p5693_p6 }
 0x725   : > { %p5411_p3 = pneg %p5410_p2 }
 0x727   : > { %5568 = dma.done.wait (%p5411_p3), %s5105_s27, 512  }
 0x728   : > { %5570 = vsyncadd (%p5411_p3), %s5105_s27, 4294966784  ;;  %s5114_s26 = scalar_lea.sflag [#allocation7], %s5104_s13 }
 0x729   : > { %5572 = dma.done.wait (%p5411_p3), %s5114_s26, 3072  }
 0x72a   : > { %5574 = vsyncadd (%p5411_p3), %s5114_s26, 4294964224  ;;  %p23_p5 = scmp.ge.s32.totalorder %s5676_s15, 4   ;;  %s8570_s30 = smov %s5581_s10 }
 0x72b   : > { %s8571_s10 = smov %s5585_s11  ;;  %s8572_s11 = smov %s5687_s18 }
 0x72c   : > { %s8573_s12 = smov %s5676_s15  ;;  %25 = sbr.rel (!%p23_p5) target bundleno = 8 (0x8), region = 104 }
 0x731   :  { %5119 = vsyncpa [#allocation5], 1 }
 0x732   :  { %5121 = vsyncpa [#allocation5 + $0x1], 1 }
 0x733   :  { %5122 = vsyncpa [#allocation7], 1 }
 0x734   :  { %5124 = vsyncpa [#allocation7 + $0x1], 1 }

</bundles_post_ra>
